<compile_context>
chip_gen: v7x
topology: tpu7x:2x2x1
jax: 0.10.0
libtpu: 0.0.40
codegen_flags: <defaults>
</compile_context>

<pallas_src>
import functools

import jax
import jax.numpy as jnp
from jax.experimental import pallas as pl
from jax.experimental.pallas import tpu as pltpu

# ----------------------------------------------------------------------------
# Model hyper-parameters (small, consistent with the module's forward)
# ----------------------------------------------------------------------------
BATCH = 2          # B
DIM = 4            # data dim (nn.GRU input size)
HIDDEN = 32        # hidden_dim
SEQ = 8            # T
FLOW_LAYERS = 2    # n_layers of GRUFlow
ALPHA = 2.0 / 5.0
BETA = 4.0 / 5.0

# Gate stride for the fused flow [r|z] weights.  128 = vreg-aligned gate slices, single
# MXU N-pass on v6e/v7x (256-wide MXU).  On v5e set GATE_STRIDE = HIDDEN (avoids a 2nd pass).
GATE_STRIDE = 128

# Row layout of the packed f32 "aux" parameter ref (lanes are a prefix of AUX_W).
R_FRZ_W = 0                            # L rows: wt_r at [0:H], wt_z at [GS:GS+H]
R_FRZ_B = R_FRZ_W + FLOW_LAYERS        # L rows: b_r  at [0:H], b_z  at [GS:GS+H]
R_WTH = R_FRZ_B + FLOW_LAYERS          # L rows: wt_h at [0:H]
R_BH = R_WTH + FLOW_LAYERS             # L rows: b_h  at [0:H]
R_WTIME = R_BH + FLOW_LAYERS           # L rows: TimeTanh scale at [0:H]
R_GBIH = R_WTIME + FLOW_LAYERS         # 1 row : GRU b_ih (3H)
R_GBHH = R_GBIH + 1                    # 1 row : GRU b_hh (3H)
R_GWIH = R_GBHH + 1                    # D rows: GRU W_ih^T (3H)
N_AUX_ROWS = R_GWIH + DIM              # = 16
AUX_W = max(2 * GATE_STRIDE, 3 * HIDDEN)   # = 256


# ----------------------------------------------------------------------------
# Pallas kernel: the entire T-step recurrence in one invocation
# ----------------------------------------------------------------------------
def cgru_kernel(t_ref,        # (T*B, 2*GS) f32  time stamps, pre-broadcast along lanes
                x_ref,        # (T*B, D)    f32  inputs, time-major
                wrz_ref,      # (L, H, 2*GS) bf16 [W_hr | 0 | W_hz | 0] gate-padded
                whh_ref,      # (L, H, H)    bf16 flow W_hh
                gwhh_ref,     # (H, 3*H)     bf16 nn.GRU W_hh^T, gate order [r|z|n]
                aux_ref,      # (N_AUX_ROWS, AUX_W) f32 packed small params
                out_ref,      # (T*B, H)    f32  lane-dense output block
                xg_s,         # (T*B, 3H)        scratch: x @ W_ih + b_ih
                trz_s,        # (L*T*B, 2*GS)    scratch: t-linear [r|z] terms
                th_s,         # (L*T*B, H)       scratch: t-linear h terms
                temb_s,       # (L*T*B, H)       scratch: TimeTanh(t)
                *, T, B, H, L, GS, D):
    TB = T * B

    # ---- hoisted, h-independent precompute -> VMEM scratch (bounds live ranges) ----
    t_wide = t_ref[...]                                   # (T*B, 2GS)
    t_col = t_wide[:, :H]                                 # (T*B, H) prefix slice

    gwih = aux_ref[R_GWIH:R_GWIH + D, 0:3 * H]            # (D, 3H) f32 (off critical path)
    gbih = aux_ref[R_GBIH:R_GBIH + 1, 0:3 * H]            # (1, 3H)
    xg_s[...] = jnp.dot(x_ref[...], gwih,
                        preferred_element_type=jnp.float32) + gbih

    for l in range(L):
        wt_rz = aux_ref[R_FRZ_W + l:R_FRZ_W + l + 1, 0:2 * GS]   # (1, 2GS)
        b_rz = aux_ref[R_FRZ_B + l:R_FRZ_B + l + 1, 0:2 * GS]
        trz_s[l * TB:(l + 1) * TB, :] = t_wide * wt_rz + b_rz

        wt_h = aux_ref[R_WTH + l:R_WTH + l + 1, 0:H]
        b_h = aux_ref[R_BH + l:R_BH + l + 1, 0:H]
        w_tm = aux_ref[R_WTIME + l:R_WTIME + l + 1, 0:H]
        th_s[l * TB:(l + 1) * TB, :] = t_col * wt_h + b_h
        temb_s[l * TB:(l + 1) * TB, :] = jnp.tanh(t_col * w_tm)

    # ---- weights hoisted as values (~12 bf16 vregs; well under the 64-vreg budget) ----
    wrz_w = [wrz_ref[l] for l in range(L)]                # each (H, 2GS) bf16
    whh_w = [whh_ref[l] for l in range(L)]                # each (H, H)  bf16
    gwhh_w = gwhh_ref[...]                                # (H, 3H) bf16
    gbhh = aux_ref[R_GBHH:R_GBHH + 1, 0:3 * H]            # (1, 3H) f32

    # ---- sequential recurrence over time (T static, fully unrolled) ----
    h = jnp.zeros((B, H), jnp.float32)
    for i in range(T):
        lo = i * B

        # GRUFlow: h <- h + TimeTanh(t) * (z * (u - h)), L residual layers
        for l in range(L):
            off = l * TB + lo
            rz = (jnp.dot(h.astype(jnp.bfloat16), wrz_w[l],
                          preferred_element_type=jnp.float32)
                  + trz_s[off:off + B, :])                         # (B, 2GS)
            r = BETA * jax.nn.sigmoid(rz[:, 0:H])                  # lanes [0, H)
            z = ALPHA * jax.nn.sigmoid(rz[:, GS:GS + H])           # lanes [GS, GS+H)
            u = jnp.tanh(jnp.dot((r * h).astype(jnp.bfloat16), whh_w[l],
                                 preferred_element_type=jnp.float32)
                         + th_s[off:off + B, :])
            h = h + temb_s[off:off + B, :] * (z * (u - h))

        # hiddens rows for step i = pre-GRU hidden (exactly as in the PyTorch forward).
        # VMEM store only; one lane-dense HBM writeback at the end of the grid step.
        out_ref[lo:lo + B, :] = h

        # nn.GRU single cell update (batch_first, 1 layer, gate order [r, z, n])
        gi = xg_s[lo:lo + B, :]                                    # (B, 3H), includes b_ih
        gh = (jnp.dot(h.astype(jnp.bfloat16), gwhh_w,
                      preferred_element_type=jnp.float32) + gbhh)  # (B, 3H), includes b_hh
        gr = jax.nn.sigmoid(gi[:, 0:H] + gh[:, 0:H])
        gz = jax.nn.sigmoid(gi[:, H:2 * H] + gh[:, H:2 * H])
        gn = jnp.tanh(gi[:, 2 * H:3 * H] + gr * gh[:, 2 * H:3 * H])
        h = (1.0 - gz) * gn + gz * h


# ----------------------------------------------------------------------------
# Wrapper: parameter packing (layout glue) + single pallas_call
# ----------------------------------------------------------------------------
def continuous_gru_forward(x, t, params):
    """x: (B, T, DIM), t: (B, T, 1)  ->  hiddens: (B, T, HIDDEN)."""
    B, T, D = x.shape
    H = HIDDEN
    L = FLOW_LAYERS
    GS = GATE_STRIDE

    # Time-major, flattened (row = time*B + batch); t pre-broadcast to lane width.
    x2d = jnp.transpose(x, (1, 0, 2)).reshape(T * B, D).astype(jnp.float32)
    t2d = jnp.transpose(t, (1, 0, 2)).reshape(T * B, 1).astype(jnp.float32)
    t_wide = jnp.broadcast_to(t2d, (T * B, 2 * GS))

    # --- flow recurrence weights: gate-padded, bf16 (single-pass MXU) ---
    wrz = jnp.zeros((L, H, 2 * GS), jnp.float32)
    wrz = wrz.at[:, :, 0:H].set(params["whr"])
    wrz = wrz.at[:, :, GS:GS + H].set(params["whz"])
    wrz = wrz.astype(jnp.bfloat16)                                           # (L, H, 2GS)
    whh = params["whh"].astype(jnp.bfloat16)                                 # (L, H, H)
    gwhh = jnp.concatenate([params["gwhh"][g] for g in range(3)],
                           axis=-1).astype(jnp.bfloat16)                     # (H, 3H)

    # --- all small f32 parameters packed into one (8,128)-aligned aux ref ---
    aux = jnp.zeros((N_AUX_ROWS, AUX_W), jnp.float32)
    for l in range(L):
        aux = aux.at[R_FRZ_W + l, 0:H].set(params["wtr"][l, 0])
        aux = aux.at[R_FRZ_W + l, GS:GS + H].set(params["wtz"][l, 0])
        aux = aux.at[R_FRZ_B + l, 0:H].set(params["br"][l, 0])
        aux = aux.at[R_FRZ_B + l, GS:GS + H].set(params["bz"][l, 0])
        aux = aux.at[R_WTH + l, 0:H].set(params["wth"][l, 0])
        aux = aux.at[R_BH + l, 0:H].set(params["bh"][l, 0])
        aux = aux.at[R_WTIME + l, 0:H].set(params["wtime"][l, 0])
    gbih = jnp.concatenate([params["gbih"][g][0] for g in range(3)], axis=-1)   # (3H,)
    gbhh = jnp.concatenate([params["gbhh"][g][0] for g in range(3)], axis=-1)   # (3H,)
    gwih = jnp.concatenate([params["gwih"][g] for g in range(3)], axis=-1)      # (D, 3H)
    aux = aux.at[R_GBIH, 0:3 * H].set(gbih)
    aux = aux.at[R_GBHH, 0:3 * H].set(gbhh)
    aux = aux.at[R_GWIH:R_GWIH + D, 0:3 * H].set(gwih)

    def fullspec(shape):
        nd = len(shape)
        return pl.BlockSpec(shape, lambda i, _nd=nd: (0,) * _nd)

    grid_spec = pltpu.PrefetchScalarGridSpec(
        num_scalar_prefetch=0,
        grid=(1,),                                # single invocation; loop over T in-kernel
        in_specs=[
            fullspec((T * B, 2 * GS)),            # t (pre-broadcast)
            fullspec((T * B, D)),                 # x
            fullspec((L, H, 2 * GS)),             # wrz (bf16, gate-padded)
            fullspec((L, H, H)),                  # whh (bf16)
            fullspec((H, 3 * H)),                 # gru w_hh^T (bf16, packed)
            fullspec((N_AUX_ROWS, AUX_W)),        # packed small f32 params
        ],
        out_specs=pl.BlockSpec((T * B, H), lambda i: (0, 0)),
        scratch_shapes=[
            pltpu.VMEM((T * B, 3 * H), jnp.float32),        # x@W_ih + b_ih
            pltpu.VMEM((L * T * B, 2 * GS), jnp.float32),   # t-linear [r|z] terms
            pltpu.VMEM((L * T * B, H), jnp.float32),        # t-linear h terms
            pltpu.VMEM((L * T * B, H), jnp.float32),        # TimeTanh(t)
        ],
    )

    kernel = functools.partial(cgru_kernel, T=T, B=B, H=H, L=L, GS=GS, D=D)
    out_tm = pl.pallas_call(
        kernel,
        out_shape=jax.ShapeDtypeStruct((T * B, H), jnp.float32),
        grid_spec=grid_spec,
        compiler_params=pltpu.CompilerParams(
            dimension_semantics=("arbitrary",)),   # sequential recurrence, single step
    )(t_wide, x2d, wrz, whh, gwhh, aux)

    return jnp.transpose(out_tm.reshape(T, B, H), (1, 0, 2))   # (B, T, H)


# ----------------------------------------------------------------------------
# Deterministic parameter init (synthetic; mirrors the shapes in __init__)
# ----------------------------------------------------------------------------
def _spectral_normalize(w, key, n_iter=5, eps=1e-12):
    """torch.nn.utils.spectral_norm forward semantics: W / sigma, sigma via power iteration."""
    out_dim, _ = w.shape
    u = jax.random.normal(key, (out_dim,), dtype=jnp.float32)
    u = u / (jnp.linalg.norm(u) + eps)
    v = None
    for _ in range(n_iter):
        v = w.T @ u
        v = v / (jnp.linalg.norm(v) + eps)
        u = w @ v
        u = u / (jnp.linalg.norm(u) + eps)
    sigma = u @ (w @ v)
    return w / sigma


def init_params(key):
    H, D, L = HIDDEN, DIM, FLOW_LAYERS
    keys = jax.random.split(key, 64)
    ki = iter(range(64))

    whr, whz, whh = [], [], []
    wtr, wtz, wth = [], [], []
    br, bz, bh = [], [], []
    wtime = []
    for _ in range(L):
        for wlist, tlist, blist in ((whr, wtr, br), (whz, wtz, bz), (whh, wth, bh)):
            w_full = 0.3 * jax.random.normal(keys[next(ki)], (H, H + 1), dtype=jnp.float32)
            w_sn = _spectral_normalize(w_full, keys[next(ki)], n_iter=5)
            wlist.append(w_sn[:, :H].T)                 # (H, H)  h-part, transposed
            tlist.append(w_sn[:, H][None, :])           # (1, H)  t-column
            blist.append(0.1 * jax.random.normal(keys[next(ki)], (1, H), dtype=jnp.float32))
        # stribor TimeTanh scale parameter (1, H)
        wtime.append(jax.random.normal(keys[next(ki)], (1, H), dtype=jnp.float32))

    # nn.GRU(D, H, 1): weight_ih (3H, D), weight_hh (3H, H), biases (3H,), gate order [r, z, n]
    s = 1.0 / jnp.sqrt(H)
    w_ih = jax.random.uniform(keys[next(ki)], (3 * H, D), minval=-s, maxval=s, dtype=jnp.float32)
    w_hh = jax.random.uniform(keys[next(ki)], (3 * H, H), minval=-s, maxval=s, dtype=jnp.float32)
    b_ih = jax.random.uniform(keys[next(ki)], (3 * H,), minval=-s, maxval=s, dtype=jnp.float32)
    b_hh = jax.random.uniform(keys[next(ki)], (3 * H,), minval=-s, maxval=s, dtype=jnp.float32)

    gwih = jnp.stack([w_ih[g * H:(g + 1) * H, :].T for g in range(3)])        # (3, D, H)
    gwhh = jnp.stack([w_hh[g * H:(g + 1) * H, :].T for g in range(3)])        # (3, H, H)
    gbih = jnp.stack([b_ih[g * H:(g + 1) * H][None, :] for g in range(3)])    # (3, 1, H)
    gbhh = jnp.stack([b_hh[g * H:(g + 1) * H][None, :] for g in range(3)])    # (3, 1, H)

    return {
        "whr": jnp.stack(whr), "whz": jnp.stack(whz), "whh": jnp.stack(whh),
        "wtr": jnp.stack(wtr), "wtz": jnp.stack(wtz), "wth": jnp.stack(wth),
        "br": jnp.stack(br), "bz": jnp.stack(bz), "bh": jnp.stack(bh),
        "wtime": jnp.stack(wtime),
        "gwih": gwih, "gwhh": gwhh, "gbih": gbih, "gbhh": gbhh,
    }


# ----------------------------------------------------------------------------
# Pure-JAX reference (mirrors the PyTorch forward, f32) for verification
# ----------------------------------------------------------------------------
def reference_forward(x, t, p):
    B, T, _ = x.shape
    H = HIDDEN
    hp = jax.lax.Precision.HIGHEST
    dot = lambda a, b: jnp.dot(a, b, precision=hp)
    h = jnp.zeros((B, H), dtype=jnp.float32)
    hiddens = []
    for i in range(T):
        ti = t[:, i, :]
        for l in range(FLOW_LAYERS):
            r = BETA * jax.nn.sigmoid(dot(h, p["whr"][l]) + ti * p["wtr"][l] + p["br"][l])
            z = ALPHA * jax.nn.sigmoid(dot(h, p["whz"][l]) + ti * p["wtz"][l] + p["bz"][l])
            u = jnp.tanh(dot(r * h, p["whh"][l]) + ti * p["wth"][l] + p["bh"][l])
            h = h + jnp.tanh(ti * p["wtime"][l]) * (z * (u - h))
        hiddens.append(h)
        xi = x[:, i, :]
        gr = jax.nn.sigmoid(dot(xi, p["gwih"][0]) + p["gbih"][0] + dot(h, p["gwhh"][0]) + p["gbhh"][0])
        gz = jax.nn.sigmoid(dot(xi, p["gwih"][1]) + p["gbih"][1] + dot(h, p["gwhh"][1]) + p["gbhh"][1])
        gn = jnp.tanh(dot(xi, p["gwih"][2]) + p["gbih"][2] + gr * (dot(h, p["gwhh"][2]) + p["gbhh"][2]))
        h = (1.0 - gz) * gn + gz * h
    return jnp.stack(hiddens, axis=1)


# ----------------------------------------------------------------------------
if __name__ == "__main__":
    key = jax.random.PRNGKey(0)
    kp, kx, kt = jax.random.split(key, 3)

    params = init_params(kp)
    x = jax.random.normal(kx, (BATCH, SEQ, DIM), dtype=jnp.float32)
    # strictly increasing positive time stamps per batch element
    t = jnp.cumsum(jax.random.uniform(kt, (BATCH, SEQ, 1), minval=0.05, maxval=0.5), axis=1)

    hiddens = jax.jit(continuous_gru_forward)(x, t, params)
    jax.block_until_ready(hiddens)

    ref = reference_forward(x, t, params)
    assert hiddens.shape == (BATCH, SEQ, HIDDEN)
    max_err = float(jnp.max(jnp.abs(hiddens - ref)))
    # bf16 operands on the recurrence matmuls (f32 accumulation) -> tolerance relaxed from
    # the all-f32 2e-4 to 1e-2; observed error is typically a few 1e-3.
    assert jnp.allclose(hiddens, ref, atol=1e-2, rtol=1e-2), max_err

    # TODO(synk): the `model='ode'` branch (ODEModel + GRUODENet with a numerical
    # solver) is not implemented; only the `flow`/`resnet` (GRUFlow) branch is.
    print("KERNEL_OK")
</pallas_src>

<mosaic_0001>
module attributes {stable_mosaic.version = 11 : i64} {
  func.func @cgru_kernel(%arg0: i32, %arg1: memref<16x256xf32, #tpu.memory_space<vmem>>, %arg2: memref<16x4xf32, #tpu.memory_space<vmem>>, %arg3: memref<2x32x256xbf16, #tpu.memory_space<vmem>>, %arg4: memref<2x32x32xbf16, #tpu.memory_space<vmem>>, %arg5: memref<32x96xbf16, #tpu.memory_space<vmem>>, %arg6: memref<16x256xf32, #tpu.memory_space<vmem>>, %arg7: memref<16x32xf32, #tpu.memory_space<vmem>>, %arg8: memref<16x96xf32, #tpu.memory_space<vmem>>, %arg9: memref<32x256xf32, #tpu.memory_space<vmem>>, %arg10: memref<32x32xf32, #tpu.memory_space<vmem>>, %arg11: memref<32x32xf32, #tpu.memory_space<vmem>>) attributes {dimension_semantics = [#tpu.dimension_semantics<arbitrary>], iteration_bounds = array<i64: 1>, scalar_prefetch = 0 : i64, scratch_operands = 4 : i64, tpu.core_type = #tpu.core_type<tc>, window_params = [{pipeline_mode = #tpu.pipeline_mode<synchronous>, transform_indices = @transform_0, window_bounds = array<i64: 16, 256>}, {pipeline_mode = #tpu.pipeline_mode<synchronous>, transform_indices = @transform_1, window_bounds = array<i64: 16, 4>}, {pipeline_mode = #tpu.pipeline_mode<synchronous>, transform_indices = @transform_2, window_bounds = array<i64: 2, 32, 256>}, {pipeline_mode = #tpu.pipeline_mode<synchronous>, transform_indices = @transform_3, window_bounds = array<i64: 2, 32, 32>}, {pipeline_mode = #tpu.pipeline_mode<synchronous>, transform_indices = @transform_4, window_bounds = array<i64: 32, 96>}, {pipeline_mode = #tpu.pipeline_mode<synchronous>, transform_indices = @transform_5, window_bounds = array<i64: 16, 256>}, {pipeline_mode = #tpu.pipeline_mode<synchronous>, transform_indices = @transform_6, window_bounds = array<i64: 16, 32>}]} {
    %c0 = arith.constant 0 : index
    %c0_0 = arith.constant 0 : index
    %0 = vector.load %arg1[%c0, %c0_0] : memref<16x256xf32, #tpu.memory_space<vmem>>, vector<16x256xf32>
    %1 = vector.extract_strided_slice %0 {offsets = [0, 0], sizes = [16, 32], strides = [1, 1]} : vector<16x256xf32> to vector<16x32xf32>
    %c12 = arith.constant 12 : index
    %c0_1 = arith.constant 0 : index
    %2 = vector.load %arg6[%c12, %c0_1] : memref<16x256xf32, #tpu.memory_space<vmem>>, vector<4x96xf32>
    %c10 = arith.constant 10 : index
    %c0_2 = arith.constant 0 : index
    %3 = vector.load %arg6[%c10, %c0_2] : memref<16x256xf32, #tpu.memory_space<vmem>>, vector<1x96xf32>
    %c0_3 = arith.constant 0 : index
    %c0_4 = arith.constant 0 : index
    %4 = vector.load %arg2[%c0_3, %c0_4] : memref<16x4xf32, #tpu.memory_space<vmem>>, vector<16x4xf32>
    %cst = arith.constant dense<0.000000e+00> : vector<16x96xf32>
    %5 = tpu.matmul %4, %2, %cst {dimension_numbers = #tpu.dot_dimension_numbers<[1], [0], [0], [1], [0, 0, 1, 1], [], []>} : vector<16x4xf32>, vector<4x96xf32>, vector<16x96xf32> -> vector<16x96xf32>
    %6 = vector.broadcast %3 : vector<1x96xf32> to vector<16x96xf32>
    %7 = arith.addf %5, %6 : vector<16x96xf32>
    %c0_5 = arith.constant 0 : index
    %c0_6 = arith.constant 0 : index
    %8 = vector.load %arg8[%c0_5, %c0_6] : memref<16x96xf32, #tpu.memory_space<vmem>>, vector<16x96xf32>
    tpu.vector_store %arg8[%c0_5, %c0_6], %7 {strides = array<i32>} : memref<16x96xf32, #tpu.memory_space<vmem>>, vector<16x96xf32>,
    %c0_7 = arith.constant 0 : index
    %c0_8 = arith.constant 0 : index
    %9 = vector.load %arg6[%c0_7, %c0_8] : memref<16x256xf32, #tpu.memory_space<vmem>>, vector<1x256xf32>
    %c2 = arith.constant 2 : index
    %c0_9 = arith.constant 0 : index
    %10 = vector.load %arg6[%c2, %c0_9] : memref<16x256xf32, #tpu.memory_space<vmem>>, vector<1x256xf32>
    %11 = vector.broadcast %9 : vector<1x256xf32> to vector<16x256xf32>
    %12 = arith.mulf %0, %11 : vector<16x256xf32>
    %13 = vector.broadcast %10 : vector<1x256xf32> to vector<16x256xf32>
    %14 = arith.addf %12, %13 : vector<16x256xf32>
    %c0_10 = arith.constant 0 : index
    %c0_11 = arith.constant 0 : index
    %15 = vector.load %arg9[%c0_10, %c0_11] : memref<32x256xf32, #tpu.memory_space<vmem>>, vector<16x256xf32>
    tpu.vector_store %arg9[%c0_10, %c0_11], %14 {strides = array<i32>} : memref<32x256xf32, #tpu.memory_space<vmem>>, vector<16x256xf32>,
    %c4 = arith.constant 4 : index
    %c0_12 = arith.constant 0 : index
    %16 = vector.load %arg6[%c4, %c0_12] : memref<16x256xf32, #tpu.memory_space<vmem>>, vector<1x32xf32>
    %c6 = arith.constant 6 : index
    %c0_13 = arith.constant 0 : index
    %17 = vector.load %arg6[%c6, %c0_13] : memref<16x256xf32, #tpu.memory_space<vmem>>, vector<1x32xf32>
    %c8 = arith.constant 8 : index
    %c0_14 = arith.constant 0 : index
    %18 = vector.load %arg6[%c8, %c0_14] : memref<16x256xf32, #tpu.memory_space<vmem>>, vector<1x32xf32>
    %19 = vector.broadcast %16 : vector<1x32xf32> to vector<16x32xf32>
    %20 = arith.mulf %1, %19 : vector<16x32xf32>
    %21 = vector.broadcast %17 : vector<1x32xf32> to vector<16x32xf32>
    %22 = arith.addf %20, %21 : vector<16x32xf32>
    %c0_15 = arith.constant 0 : index
    %c0_16 = arith.constant 0 : index
    %23 = vector.load %arg10[%c0_15, %c0_16] : memref<32x32xf32, #tpu.memory_space<vmem>>, vector<16x32xf32>
    tpu.vector_store %arg10[%c0_15, %c0_16], %22 {strides = array<i32>} : memref<32x32xf32, #tpu.memory_space<vmem>>, vector<16x32xf32>,
    %24 = vector.broadcast %18 : vector<1x32xf32> to vector<16x32xf32>
    %25 = arith.mulf %1, %24 : vector<16x32xf32>
    %26 = math.tanh %25 : vector<16x32xf32>
    %c0_17 = arith.constant 0 : index
    %c0_18 = arith.constant 0 : index
    %27 = vector.load %arg11[%c0_17, %c0_18] : memref<32x32xf32, #tpu.memory_space<vmem>>, vector<16x32xf32>
    tpu.vector_store %arg11[%c0_17, %c0_18], %26 {strides = array<i32>} : memref<32x32xf32, #tpu.memory_space<vmem>>, vector<16x32xf32>,
    %c1 = arith.constant 1 : index
    %c0_19 = arith.constant 0 : index
    %28 = vector.load %arg6[%c1, %c0_19] : memref<16x256xf32, #tpu.memory_space<vmem>>, vector<1x256xf32>
    %c3 = arith.constant 3 : index
    %c0_20 = arith.constant 0 : index
    %29 = vector.load %arg6[%c3, %c0_20] : memref<16x256xf32, #tpu.memory_space<vmem>>, vector<1x256xf32>
    %30 = vector.broadcast %28 : vector<1x256xf32> to vector<16x256xf32>
    %31 = arith.mulf %0, %30 : vector<16x256xf32>
    %32 = vector.broadcast %29 : vector<1x256xf32> to vector<16x256xf32>
    %33 = arith.addf %31, %32 : vector<16x256xf32>
    %c16 = arith.constant 16 : index
    %c0_21 = arith.constant 0 : index
    %34 = vector.load %arg9[%c16, %c0_21] : memref<32x256xf32, #tpu.memory_space<vmem>>, vector<16x256xf32>
    tpu.vector_store %arg9[%c16, %c0_21], %33 {strides = array<i32>} : memref<32x256xf32, #tpu.memory_space<vmem>>, vector<16x256xf32>,
    %c5 = arith.constant 5 : index
    %c0_22 = arith.constant 0 : index
    %35 = vector.load %arg6[%c5, %c0_22] : memref<16x256xf32, #tpu.memory_space<vmem>>, vector<1x32xf32>
    %c7 = arith.constant 7 : index
    %c0_23 = arith.constant 0 : index
    %36 = vector.load %arg6[%c7, %c0_23] : memref<16x256xf32, #tpu.memory_space<vmem>>, vector<1x32xf32>
    %c9 = arith.constant 9 : index
    %c0_24 = arith.constant 0 : index
    %37 = vector.load %arg6[%c9, %c0_24] : memref<16x256xf32, #tpu.memory_space<vmem>>, vector<1x32xf32>
    %38 = vector.broadcast %35 : vector<1x32xf32> to vector<16x32xf32>
    %39 = arith.mulf %1, %38 : vector<16x32xf32>
    %40 = vector.broadcast %36 : vector<1x32xf32> to vector<16x32xf32>
    %41 = arith.addf %39, %40 : vector<16x32xf32>
    %c16_25 = arith.constant 16 : index
    %c0_26 = arith.constant 0 : index
    %42 = vector.load %arg10[%c16_25, %c0_26] : memref<32x32xf32, #tpu.memory_space<vmem>>, vector<16x32xf32>
    tpu.vector_store %arg10[%c16_25, %c0_26], %41 {strides = array<i32>} : memref<32x32xf32, #tpu.memory_space<vmem>>, vector<16x32xf32>,
    %43 = vector.broadcast %37 : vector<1x32xf32> to vector<16x32xf32>
    %44 = arith.mulf %1, %43 : vector<16x32xf32>
    %45 = math.tanh %44 : vector<16x32xf32>
    %c16_27 = arith.constant 16 : index
    %c0_28 = arith.constant 0 : index
    %46 = vector.load %arg11[%c16_27, %c0_28] : memref<32x32xf32, #tpu.memory_space<vmem>>, vector<16x32xf32>
    tpu.vector_store %arg11[%c16_27, %c0_28], %45 {strides = array<i32>} : memref<32x32xf32, #tpu.memory_space<vmem>>, vector<16x32xf32>,
    %c0_29 = arith.constant 0 : index
    %c0_30 = arith.constant 0 : index
    %c0_31 = arith.constant 0 : index
    %47 = vector.load %arg3[%c0_29, %c0_30, %c0_31] : memref<2x32x256xbf16, #tpu.memory_space<vmem>>, vector<1x32x256xbf16>
    %48 = vector.shape_cast %47 : vector<1x32x256xbf16> to vector<32x256xbf16>
    %c1_32 = arith.constant 1 : index
    %c0_33 = arith.constant 0 : index
    %c0_34 = arith.constant 0 : index
    %49 = vector.load %arg3[%c1_32, %c0_33, %c0_34] : memref<2x32x256xbf16, #tpu.memory_space<vmem>>, vector<1x32x256xbf16>
    %50 = vector.shape_cast %49 : vector<1x32x256xbf16> to vector<32x256xbf16>
    %c0_35 = arith.constant 0 : index
    %c0_36 = arith.constant 0 : index
    %c0_37 = arith.constant 0 : index
    %51 = vector.load %arg4[%c0_35, %c0_36, %c0_37] : memref<2x32x32xbf16, #tpu.memory_space<vmem>>, vector<1x32x32xbf16>
    %52 = vector.shape_cast %51 : vector<1x32x32xbf16> to vector<32x32xbf16>
    %c1_38 = arith.constant 1 : index
    %c0_39 = arith.constant 0 : index
    %c0_40 = arith.constant 0 : index
    %53 = vector.load %arg4[%c1_38, %c0_39, %c0_40] : memref<2x32x32xbf16, #tpu.memory_space<vmem>>, vector<1x32x32xbf16>
    %54 = vector.shape_cast %53 : vector<1x32x32xbf16> to vector<32x32xbf16>
    %c0_41 = arith.constant 0 : index
    %c0_42 = arith.constant 0 : index
    %55 = vector.load %arg5[%c0_41, %c0_42] : memref<32x96xbf16, #tpu.memory_space<vmem>>, vector<32x96xbf16>
    %c11 = arith.constant 11 : index
    %c0_43 = arith.constant 0 : index
    %56 = vector.load %arg6[%c11, %c0_43] : memref<16x256xf32, #tpu.memory_space<vmem>>, vector<1x96xf32>
    %cst_44 = arith.constant 0.000000e+00 : f32
    %57 = vector.broadcast %cst_44 : f32 to vector<2x32xf32>
    %58 = arith.truncf %57 : vector<2x32xf32> to vector<2x32xbf16>
    %cst_45 = arith.constant dense<0.000000e+00> : vector<2x256xf32>
    %59 = tpu.matmul %58, %48, %cst_45 {dimension_numbers = #tpu.dot_dimension_numbers<[1], [0], [0], [1], [0, 0, 1, 1], [], []>} : vector<2x32xbf16>, vector<32x256xbf16>, vector<2x256xf32> -> vector<2x256xf32>
    %c0_46 = arith.constant 0 : index
    %c0_47 = arith.constant 0 : index
    %60 = vector.load %arg9[%c0_46, %c0_47] : memref<32x256xf32, #tpu.memory_space<vmem>>, vector<2x256xf32>
    %61 = arith.addf %59, %60 : vector<2x256xf32>
    %62 = vector.extract_strided_slice %61 {offsets = [0, 0], sizes = [2, 32], strides = [1, 1]} : vector<2x256xf32> to vector<2x32xf32>
    %63 = arith.negf %62 : vector<2x32xf32>
    %64 = math.exp %63 : vector<2x32xf32>
    %cst_48 = arith.constant 1.000000e+00 : f32
    %65 = vector.broadcast %cst_48 : f32 to vector<2x32xf32>
    %66 = arith.addf %65, %64 : vector<2x32xf32>
    %67 = arith.divf %65, %66 : vector<2x32xf32>
    %cst_49 = arith.constant 8.000000e-01 : f32
    %68 = vector.broadcast %cst_49 : f32 to vector<2x32xf32>
    %69 = arith.mulf %68, %67 : vector<2x32xf32>
    %70 = vector.extract_strided_slice %61 {offsets = [0, 128], sizes = [2, 32], strides = [1, 1]} : vector<2x256xf32> to vector<2x32xf32>
    %71 = arith.negf %70 : vector<2x32xf32>
    %72 = math.exp %71 : vector<2x32xf32>
    %cst_50 = arith.constant 1.000000e+00 : f32
    %73 = vector.broadcast %cst_50 : f32 to vector<2x32xf32>
    %74 = arith.addf %73, %72 : vector<2x32xf32>
    %75 = arith.divf %73, %74 : vector<2x32xf32>
    %cst_51 = arith.constant 4.000000e-01 : f32
    %76 = vector.broadcast %cst_51 : f32 to vector<2x32xf32>
    %77 = arith.mulf %76, %75 : vector<2x32xf32>
    %78 = arith.mulf %69, %57 : vector<2x32xf32>
    %79 = arith.truncf %78 : vector<2x32xf32> to vector<2x32xbf16>
    %cst_52 = arith.constant dense<0.000000e+00> : vector<2x32xf32>
    %80 = tpu.matmul %79, %52, %cst_52 {dimension_numbers = #tpu.dot_dimension_numbers<[1], [0], [0], [1], [0, 0, 1, 1], [], []>} : vector<2x32xbf16>, vector<32x32xbf16>, vector<2x32xf32> -> vector<2x32xf32>
    %c0_53 = arith.constant 0 : index
    %c0_54 = arith.constant 0 : index
    %81 = vector.load %arg10[%c0_53, %c0_54] : memref<32x32xf32, #tpu.memory_space<vmem>>, vector<2x32xf32>
    %82 = arith.addf %80, %81 : vector<2x32xf32>
    %83 = math.tanh %82 : vector<2x32xf32>
    %c0_55 = arith.constant 0 : index
    %c0_56 = arith.constant 0 : index
    %84 = vector.load %arg11[%c0_55, %c0_56] : memref<32x32xf32, #tpu.memory_space<vmem>>, vector<2x32xf32>
    %85 = arith.subf %83, %57 : vector<2x32xf32>
    %86 = arith.mulf %77, %85 : vector<2x32xf32>
    %87 = arith.mulf %84, %86 : vector<2x32xf32>
    %88 = arith.addf %57, %87 : vector<2x32xf32>
    %89 = arith.truncf %88 : vector<2x32xf32> to vector<2x32xbf16>
    %cst_57 = arith.constant dense<0.000000e+00> : vector<2x256xf32>
    %90 = tpu.matmul %89, %50, %cst_57 {dimension_numbers = #tpu.dot_dimension_numbers<[1], [0], [0], [1], [0, 0, 1, 1], [], []>} : vector<2x32xbf16>, vector<32x256xbf16>, vector<2x256xf32> -> vector<2x256xf32>
    %c16_58 = arith.constant 16 : index
    %c0_59 = arith.constant 0 : index
    %91 = vector.load %arg9[%c16_58, %c0_59] : memref<32x256xf32, #tpu.memory_space<vmem>>, vector<2x256xf32>
    %92 = arith.addf %90, %91 : vector<2x256xf32>
    %93 = vector.extract_strided_slice %92 {offsets = [0, 0], sizes = [2, 32], strides = [1, 1]} : vector<2x256xf32> to vector<2x32xf32>
    %94 = arith.negf %93 : vector<2x32xf32>
    %95 = math.exp %94 : vector<2x32xf32>
    %cst_60 = arith.constant 1.000000e+00 : f32
    %96 = vector.broadcast %cst_60 : f32 to vector<2x32xf32>
    %97 = arith.addf %96, %95 : vector<2x32xf32>
    %98 = arith.divf %96, %97 : vector<2x32xf32>
    %cst_61 = arith.constant 8.000000e-01 : f32
    %99 = vector.broadcast %cst_61 : f32 to vector<2x32xf32>
    %100 = arith.mulf %99, %98 : vector<2x32xf32>
    %101 = vector.extract_strided_slice %92 {offsets = [0, 128], sizes = [2, 32], strides = [1, 1]} : vector<2x256xf32> to vector<2x32xf32>
    %102 = arith.negf %101 : vector<2x32xf32>
    %103 = math.exp %102 : vector<2x32xf32>
    %cst_62 = arith.constant 1.000000e+00 : f32
    %104 = vector.broadcast %cst_62 : f32 to vector<2x32xf32>
    %105 = arith.addf %104, %103 : vector<2x32xf32>
    %106 = arith.divf %104, %105 : vector<2x32xf32>
    %cst_63 = arith.constant 4.000000e-01 : f32
    %107 = vector.broadcast %cst_63 : f32 to vector<2x32xf32>
    %108 = arith.mulf %107, %106 : vector<2x32xf32>
    %109 = arith.mulf %100, %88 : vector<2x32xf32>
    %110 = arith.truncf %109 : vector<2x32xf32> to vector<2x32xbf16>
    %cst_64 = arith.constant dense<0.000000e+00> : vector<2x32xf32>
    %111 = tpu.matmul %110, %54, %cst_64 {dimension_numbers = #tpu.dot_dimension_numbers<[1], [0], [0], [1], [0, 0, 1, 1], [], []>} : vector<2x32xbf16>, vector<32x32xbf16>, vector<2x32xf32> -> vector<2x32xf32>
    %c16_65 = arith.constant 16 : index
    %c0_66 = arith.constant 0 : index
    %112 = vector.load %arg10[%c16_65, %c0_66] : memref<32x32xf32, #tpu.memory_space<vmem>>, vector<2x32xf32>
    %113 = arith.addf %111, %112 : vector<2x32xf32>
    %114 = math.tanh %113 : vector<2x32xf32>
    %c16_67 = arith.constant 16 : index
    %c0_68 = arith.constant 0 : index
    %115 = vector.load %arg11[%c16_67, %c0_68] : memref<32x32xf32, #tpu.memory_space<vmem>>, vector<2x32xf32>
    %116 = arith.subf %114, %88 : vector<2x32xf32>
    %117 = arith.mulf %108, %116 : vector<2x32xf32>
    %118 = arith.mulf %115, %117 : vector<2x32xf32>
    %119 = arith.addf %88, %118 : vector<2x32xf32>
    %c0_69 = arith.constant 0 : index
    %c0_70 = arith.constant 0 : index
    %120 = vector.load %arg7[%c0_69, %c0_70] : memref<16x32xf32, #tpu.memory_space<vmem>>, vector<2x32xf32>
    tpu.vector_store %arg7[%c0_69, %c0_70], %119 {strides = array<i32>} : memref<16x32xf32, #tpu.memory_space<vmem>>, vector<2x32xf32>,
    %c0_71 = arith.constant 0 : index
    %c0_72 = arith.constant 0 : index
    %121 = vector.load %arg8[%c0_71, %c0_72] : memref<16x96xf32, #tpu.memory_space<vmem>>, vector<2x96xf32>
    %122 = arith.truncf %119 : vector<2x32xf32> to vector<2x32xbf16>
    %cst_73 = arith.constant dense<0.000000e+00> : vector<2x96xf32>
    %123 = tpu.matmul %122, %55, %cst_73 {dimension_numbers = #tpu.dot_dimension_numbers<[1], [0], [0], [1], [0, 0, 1, 1], [], []>} : vector<2x32xbf16>, vector<32x96xbf16>, vector<2x96xf32> -> vector<2x96xf32>
    %124 = vector.broadcast %56 : vector<1x96xf32> to vector<2x96xf32>
    %125 = arith.addf %123, %124 : vector<2x96xf32>
    %126 = vector.extract_strided_slice %121 {offsets = [0, 0], sizes = [2, 32], strides = [1, 1]} : vector<2x96xf32> to vector<2x32xf32>
    %127 = vector.extract_strided_slice %125 {offsets = [0, 0], sizes = [2, 32], strides = [1, 1]} : vector<2x96xf32> to vector<2x32xf32>
    %128 = arith.addf %126, %127 : vector<2x32xf32>
    %129 = arith.negf %128 : vector<2x32xf32>
    %130 = math.exp %129 : vector<2x32xf32>
    %cst_74 = arith.constant 1.000000e+00 : f32
    %131 = vector.broadcast %cst_74 : f32 to vector<2x32xf32>
    %132 = arith.addf %131, %130 : vector<2x32xf32>
    %133 = arith.divf %131, %132 : vector<2x32xf32>
    %134 = vector.extract_strided_slice %121 {offsets = [0, 32], sizes = [2, 32], strides = [1, 1]} : vector<2x96xf32> to vector<2x32xf32>
    %135 = vector.extract_strided_slice %125 {offsets = [0, 32], sizes = [2, 32], strides = [1, 1]} : vector<2x96xf32> to vector<2x32xf32>
    %136 = arith.addf %134, %135 : vector<2x32xf32>
    %137 = arith.negf %136 : vector<2x32xf32>
    %138 = math.exp %137 : vector<2x32xf32>
    %cst_75 = arith.constant 1.000000e+00 : f32
    %139 = vector.broadcast %cst_75 : f32 to vector<2x32xf32>
    %140 = arith.addf %139, %138 : vector<2x32xf32>
    %141 = arith.divf %139, %140 : vector<2x32xf32>
    %142 = vector.extract_strided_slice %121 {offsets = [0, 64], sizes = [2, 32], strides = [1, 1]} : vector<2x96xf32> to vector<2x32xf32>
    %143 = vector.extract_strided_slice %125 {offsets = [0, 64], sizes = [2, 32], strides = [1, 1]} : vector<2x96xf32> to vector<2x32xf32>
    %144 = arith.mulf %133, %143 : vector<2x32xf32>
    %145 = arith.addf %142, %144 : vector<2x32xf32>
    %146 = math.tanh %145 : vector<2x32xf32>
    %cst_76 = arith.constant 1.000000e+00 : f32
    %147 = vector.broadcast %cst_76 : f32 to vector<2x32xf32>
    %148 = arith.subf %147, %141 : vector<2x32xf32>
    %149 = arith.mulf %148, %146 : vector<2x32xf32>
    %150 = arith.mulf %141, %119 : vector<2x32xf32>
    %151 = arith.addf %149, %150 : vector<2x32xf32>
    %152 = arith.truncf %151 : vector<2x32xf32> to vector<2x32xbf16>
    %cst_77 = arith.constant dense<0.000000e+00> : vector<2x256xf32>
    %153 = tpu.matmul %152, %48, %cst_77 {dimension_numbers = #tpu.dot_dimension_numbers<[1], [0], [0], [1], [0, 0, 1, 1], [], []>} : vector<2x32xbf16>, vector<32x256xbf16>, vector<2x256xf32> -> vector<2x256xf32>
    %c2_78 = arith.constant 2 : index
    %c0_79 = arith.constant 0 : index
    %154 = vector.load %arg9[%c2_78, %c0_79] : memref<32x256xf32, #tpu.memory_space<vmem>>, vector<2x256xf32>
    %155 = arith.addf %153, %154 : vector<2x256xf32>
    %156 = vector.extract_strided_slice %155 {offsets = [0, 0], sizes = [2, 32], strides = [1, 1]} : vector<2x256xf32> to vector<2x32xf32>
    %157 = arith.negf %156 : vector<2x32xf32>
    %158 = math.exp %157 : vector<2x32xf32>
    %cst_80 = arith.constant 1.000000e+00 : f32
    %159 = vector.broadcast %cst_80 : f32 to vector<2x32xf32>
    %160 = arith.addf %159, %158 : vector<2x32xf32>
    %161 = arith.divf %159, %160 : vector<2x32xf32>
    %cst_81 = arith.constant 8.000000e-01 : f32
    %162 = vector.broadcast %cst_81 : f32 to vector<2x32xf32>
    %163 = arith.mulf %162, %161 : vector<2x32xf32>
    %164 = vector.extract_strided_slice %155 {offsets = [0, 128], sizes = [2, 32], strides = [1, 1]} : vector<2x256xf32> to vector<2x32xf32>
    %165 = arith.negf %164 : vector<2x32xf32>
    %166 = math.exp %165 : vector<2x32xf32>
    %cst_82 = arith.constant 1.000000e+00 : f32
    %167 = vector.broadcast %cst_82 : f32 to vector<2x32xf32>
    %168 = arith.addf %167, %166 : vector<2x32xf32>
    %169 = arith.divf %167, %168 : vector<2x32xf32>
    %cst_83 = arith.constant 4.000000e-01 : f32
    %170 = vector.broadcast %cst_83 : f32 to vector<2x32xf32>
    %171 = arith.mulf %170, %169 : vector<2x32xf32>
    %172 = arith.mulf %163, %151 : vector<2x32xf32>
    %173 = arith.truncf %172 : vector<2x32xf32> to vector<2x32xbf16>
    %cst_84 = arith.constant dense<0.000000e+00> : vector<2x32xf32>
    %174 = tpu.matmul %173, %52, %cst_84 {dimension_numbers = #tpu.dot_dimension_numbers<[1], [0], [0], [1], [0, 0, 1, 1], [], []>} : vector<2x32xbf16>, vector<32x32xbf16>, vector<2x32xf32> -> vector<2x32xf32>
    %c2_85 = arith.constant 2 : index
    %c0_86 = arith.constant 0 : index
    %175 = vector.load %arg10[%c2_85, %c0_86] : memref<32x32xf32, #tpu.memory_space<vmem>>, vector<2x32xf32>
    %176 = arith.addf %174, %175 : vector<2x32xf32>
    %177 = math.tanh %176 : vector<2x32xf32>
    %c2_87 = arith.constant 2 : index
    %c0_88 = arith.constant 0 : index
    %178 = vector.load %arg11[%c2_87, %c0_88] : memref<32x32xf32, #tpu.memory_space<vmem>>, vector<2x32xf32>
    %179 = arith.subf %177, %151 : vector<2x32xf32>
    %180 = arith.mulf %171, %179 : vector<2x32xf32>
    %181 = arith.mulf %178, %180 : vector<2x32xf32>
    %182 = arith.addf %151, %181 : vector<2x32xf32>
    %183 = arith.truncf %182 : vector<2x32xf32> to vector<2x32xbf16>
    %cst_89 = arith.constant dense<0.000000e+00> : vector<2x256xf32>
    %184 = tpu.matmul %183, %50, %cst_89 {dimension_numbers = #tpu.dot_dimension_numbers<[1], [0], [0], [1], [0, 0, 1, 1], [], []>} : vector<2x32xbf16>, vector<32x256xbf16>, vector<2x256xf32> -> vector<2x256xf32>
    %c18 = arith.constant 18 : index
    %c0_90 = arith.constant 0 : index
    %185 = vector.load %arg9[%c18, %c0_90] : memref<32x256xf32, #tpu.memory_space<vmem>>, vector<2x256xf32>
    %186 = arith.addf %184, %185 : vector<2x256xf32>
    %187 = vector.extract_strided_slice %186 {offsets = [0, 0], sizes = [2, 32], strides = [1, 1]} : vector<2x256xf32> to vector<2x32xf32>
    %188 = arith.negf %187 : vector<2x32xf32>
    %189 = math.exp %188 : vector<2x32xf32>
    %cst_91 = arith.constant 1.000000e+00 : f32
    %190 = vector.broadcast %cst_91 : f32 to vector<2x32xf32>
    %191 = arith.addf %190, %189 : vector<2x32xf32>
    %192 = arith.divf %190, %191 : vector<2x32xf32>
    %cst_92 = arith.constant 8.000000e-01 : f32
    %193 = vector.broadcast %cst_92 : f32 to vector<2x32xf32>
    %194 = arith.mulf %193, %192 : vector<2x32xf32>
    %195 = vector.extract_strided_slice %186 {offsets = [0, 128], sizes = [2, 32], strides = [1, 1]} : vector<2x256xf32> to vector<2x32xf32>
    %196 = arith.negf %195 : vector<2x32xf32>
    %197 = math.exp %196 : vector<2x32xf32>
    %cst_93 = arith.constant 1.000000e+00 : f32
    %198 = vector.broadcast %cst_93 : f32 to vector<2x32xf32>
    %199 = arith.addf %198, %197 : vector<2x32xf32>
    %200 = arith.divf %198, %199 : vector<2x32xf32>
    %cst_94 = arith.constant 4.000000e-01 : f32
    %201 = vector.broadcast %cst_94 : f32 to vector<2x32xf32>
    %202 = arith.mulf %201, %200 : vector<2x32xf32>
    %203 = arith.mulf %194, %182 : vector<2x32xf32>
    %204 = arith.truncf %203 : vector<2x32xf32> to vector<2x32xbf16>
    %cst_95 = arith.constant dense<0.000000e+00> : vector<2x32xf32>
    %205 = tpu.matmul %204, %54, %cst_95 {dimension_numbers = #tpu.dot_dimension_numbers<[1], [0], [0], [1], [0, 0, 1, 1], [], []>} : vector<2x32xbf16>, vector<32x32xbf16>, vector<2x32xf32> -> vector<2x32xf32>
    %c18_96 = arith.constant 18 : index
    %c0_97 = arith.constant 0 : index
    %206 = vector.load %arg10[%c18_96, %c0_97] : memref<32x32xf32, #tpu.memory_space<vmem>>, vector<2x32xf32>
    %207 = arith.addf %205, %206 : vector<2x32xf32>
    %208 = math.tanh %207 : vector<2x32xf32>
    %c18_98 = arith.constant 18 : index
    %c0_99 = arith.constant 0 : index
    %209 = vector.load %arg11[%c18_98, %c0_99] : memref<32x32xf32, #tpu.memory_space<vmem>>, vector<2x32xf32>
    %210 = arith.subf %208, %182 : vector<2x32xf32>
    %211 = arith.mulf %202, %210 : vector<2x32xf32>
    %212 = arith.mulf %209, %211 : vector<2x32xf32>
    %213 = arith.addf %182, %212 : vector<2x32xf32>
    %c2_100 = arith.constant 2 : index
    %c0_101 = arith.constant 0 : index
    %214 = vector.load %arg7[%c2_100, %c0_101] : memref<16x32xf32, #tpu.memory_space<vmem>>, vector<2x32xf32>
    tpu.vector_store %arg7[%c2_100, %c0_101], %213 {strides = array<i32>} : memref<16x32xf32, #tpu.memory_space<vmem>>, vector<2x32xf32>,
    %c2_102 = arith.constant 2 : index
    %c0_103 = arith.constant 0 : index
    %215 = vector.load %arg8[%c2_102, %c0_103] : memref<16x96xf32, #tpu.memory_space<vmem>>, vector<2x96xf32>
    %216 = arith.truncf %213 : vector<2x32xf32> to vector<2x32xbf16>
    %cst_104 = arith.constant dense<0.000000e+00> : vector<2x96xf32>
    %217 = tpu.matmul %216, %55, %cst_104 {dimension_numbers = #tpu.dot_dimension_numbers<[1], [0], [0], [1], [0, 0, 1, 1], [], []>} : vector<2x32xbf16>, vector<32x96xbf16>, vector<2x96xf32> -> vector<2x96xf32>
    %218 = vector.broadcast %56 : vector<1x96xf32> to vector<2x96xf32>
    %219 = arith.addf %217, %218 : vector<2x96xf32>
    %220 = vector.extract_strided_slice %215 {offsets = [0, 0], sizes = [2, 32], strides = [1, 1]} : vector<2x96xf32> to vector<2x32xf32>
    %221 = vector.extract_strided_slice %219 {offsets = [0, 0], sizes = [2, 32], strides = [1, 1]} : vector<2x96xf32> to vector<2x32xf32>
    %222 = arith.addf %220, %221 : vector<2x32xf32>
    %223 = arith.negf %222 : vector<2x32xf32>
    %224 = math.exp %223 : vector<2x32xf32>
    %cst_105 = arith.constant 1.000000e+00 : f32
    %225 = vector.broadcast %cst_105 : f32 to vector<2x32xf32>
    %226 = arith.addf %225, %224 : vector<2x32xf32>
    %227 = arith.divf %225, %226 : vector<2x32xf32>
    %228 = vector.extract_strided_slice %215 {offsets = [0, 32], sizes = [2, 32], strides = [1, 1]} : vector<2x96xf32> to vector<2x32xf32>
    %229 = vector.extract_strided_slice %219 {offsets = [0, 32], sizes = [2, 32], strides = [1, 1]} : vector<2x96xf32> to vector<2x32xf32>
    %230 = arith.addf %228, %229 : vector<2x32xf32>
    %231 = arith.negf %230 : vector<2x32xf32>
    %232 = math.exp %231 : vector<2x32xf32>
    %cst_106 = arith.constant 1.000000e+00 : f32
    %233 = vector.broadcast %cst_106 : f32 to vector<2x32xf32>
    %234 = arith.addf %233, %232 : vector<2x32xf32>
    %235 = arith.divf %233, %234 : vector<2x32xf32>
    %236 = vector.extract_strided_slice %215 {offsets = [0, 64], sizes = [2, 32], strides = [1, 1]} : vector<2x96xf32> to vector<2x32xf32>
    %237 = vector.extract_strided_slice %219 {offsets = [0, 64], sizes = [2, 32], strides = [1, 1]} : vector<2x96xf32> to vector<2x32xf32>
    %238 = arith.mulf %227, %237 : vector<2x32xf32>
    %239 = arith.addf %236, %238 : vector<2x32xf32>
    %240 = math.tanh %239 : vector<2x32xf32>
    %cst_107 = arith.constant 1.000000e+00 : f32
    %241 = vector.broadcast %cst_107 : f32 to vector<2x32xf32>
    %242 = arith.subf %241, %235 : vector<2x32xf32>
    %243 = arith.mulf %242, %240 : vector<2x32xf32>
    %244 = arith.mulf %235, %213 : vector<2x32xf32>
    %245 = arith.addf %243, %244 : vector<2x32xf32>
    %246 = arith.truncf %245 : vector<2x32xf32> to vector<2x32xbf16>
    %cst_108 = arith.constant dense<0.000000e+00> : vector<2x256xf32>
    %247 = tpu.matmul %246, %48, %cst_108 {dimension_numbers = #tpu.dot_dimension_numbers<[1], [0], [0], [1], [0, 0, 1, 1], [], []>} : vector<2x32xbf16>, vector<32x256xbf16>, vector<2x256xf32> -> vector<2x256xf32>
    %c4_109 = arith.constant 4 : index
    %c0_110 = arith.constant 0 : index
    %248 = vector.load %arg9[%c4_109, %c0_110] : memref<32x256xf32, #tpu.memory_space<vmem>>, vector<2x256xf32>
    %249 = arith.addf %247, %248 : vector<2x256xf32>
    %250 = vector.extract_strided_slice %249 {offsets = [0, 0], sizes = [2, 32], strides = [1, 1]} : vector<2x256xf32> to vector<2x32xf32>
    %251 = arith.negf %250 : vector<2x32xf32>
    %252 = math.exp %251 : vector<2x32xf32>
    %cst_111 = arith.constant 1.000000e+00 : f32
    %253 = vector.broadcast %cst_111 : f32 to vector<2x32xf32>
    %254 = arith.addf %253, %252 : vector<2x32xf32>
    %255 = arith.divf %253, %254 : vector<2x32xf32>
    %cst_112 = arith.constant 8.000000e-01 : f32
    %256 = vector.broadcast %cst_112 : f32 to vector<2x32xf32>
    %257 = arith.mulf %256, %255 : vector<2x32xf32>
    %258 = vector.extract_strided_slice %249 {offsets = [0, 128], sizes = [2, 32], strides = [1, 1]} : vector<2x256xf32> to vector<2x32xf32>
    %259 = arith.negf %258 : vector<2x32xf32>
    %260 = math.exp %259 : vector<2x32xf32>
    %cst_113 = arith.constant 1.000000e+00 : f32
    %261 = vector.broadcast %cst_113 : f32 to vector<2x32xf32>
    %262 = arith.addf %261, %260 : vector<2x32xf32>
    %263 = arith.divf %261, %262 : vector<2x32xf32>
    %cst_114 = arith.constant 4.000000e-01 : f32
    %264 = vector.broadcast %cst_114 : f32 to vector<2x32xf32>
    %265 = arith.mulf %264, %263 : vector<2x32xf32>
    %266 = arith.mulf %257, %245 : vector<2x32xf32>
    %267 = arith.truncf %266 : vector<2x32xf32> to vector<2x32xbf16>
    %cst_115 = arith.constant dense<0.000000e+00> : vector<2x32xf32>
    %268 = tpu.matmul %267, %52, %cst_115 {dimension_numbers = #tpu.dot_dimension_numbers<[1], [0], [0], [1], [0, 0, 1, 1], [], []>} : vector<2x32xbf16>, vector<32x32xbf16>, vector<2x32xf32> -> vector<2x32xf32>
    %c4_116 = arith.constant 4 : index
    %c0_117 = arith.constant 0 : index
    %269 = vector.load %arg10[%c4_116, %c0_117] : memref<32x32xf32, #tpu.memory_space<vmem>>, vector<2x32xf32>
    %270 = arith.addf %268, %269 : vector<2x32xf32>
    %271 = math.tanh %270 : vector<2x32xf32>
    %c4_118 = arith.constant 4 : index
    %c0_119 = arith.constant 0 : index
    %272 = vector.load %arg11[%c4_118, %c0_119] : memref<32x32xf32, #tpu.memory_space<vmem>>, vector<2x32xf32>
    %273 = arith.subf %271, %245 : vector<2x32xf32>
    %274 = arith.mulf %265, %273 : vector<2x32xf32>
    %275 = arith.mulf %272, %274 : vector<2x32xf32>
    %276 = arith.addf %245, %275 : vector<2x32xf32>
    %277 = arith.truncf %276 : vector<2x32xf32> to vector<2x32xbf16>
    %cst_120 = arith.constant dense<0.000000e+00> : vector<2x256xf32>
    %278 = tpu.matmul %277, %50, %cst_120 {dimension_numbers = #tpu.dot_dimension_numbers<[1], [0], [0], [1], [0, 0, 1, 1], [], []>} : vector<2x32xbf16>, vector<32x256xbf16>, vector<2x256xf32> -> vector<2x256xf32>
    %c20 = arith.constant 20 : index
    %c0_121 = arith.constant 0 : index
    %279 = vector.load %arg9[%c20, %c0_121] : memref<32x256xf32, #tpu.memory_space<vmem>>, vector<2x256xf32>
    %280 = arith.addf %278, %279 : vector<2x256xf32>
    %281 = vector.extract_strided_slice %280 {offsets = [0, 0], sizes = [2, 32], strides = [1, 1]} : vector<2x256xf32> to vector<2x32xf32>
    %282 = arith.negf %281 : vector<2x32xf32>
    %283 = math.exp %282 : vector<2x32xf32>
    %cst_122 = arith.constant 1.000000e+00 : f32
    %284 = vector.broadcast %cst_122 : f32 to vector<2x32xf32>
    %285 = arith.addf %284, %283 : vector<2x32xf32>
    %286 = arith.divf %284, %285 : vector<2x32xf32>
    %cst_123 = arith.constant 8.000000e-01 : f32
    %287 = vector.broadcast %cst_123 : f32 to vector<2x32xf32>
    %288 = arith.mulf %287, %286 : vector<2x32xf32>
    %289 = vector.extract_strided_slice %280 {offsets = [0, 128], sizes = [2, 32], strides = [1, 1]} : vector<2x256xf32> to vector<2x32xf32>
    %290 = arith.negf %289 : vector<2x32xf32>
    %291 = math.exp %290 : vector<2x32xf32>
    %cst_124 = arith.constant 1.000000e+00 : f32
    %292 = vector.broadcast %cst_124 : f32 to vector<2x32xf32>
    %293 = arith.addf %292, %291 : vector<2x32xf32>
    %294 = arith.divf %292, %293 : vector<2x32xf32>
    %cst_125 = arith.constant 4.000000e-01 : f32
    %295 = vector.broadcast %cst_125 : f32 to vector<2x32xf32>
    %296 = arith.mulf %295, %294 : vector<2x32xf32>
    %297 = arith.mulf %288, %276 : vector<2x32xf32>
    %298 = arith.truncf %297 : vector<2x32xf32> to vector<2x32xbf16>
    %cst_126 = arith.constant dense<0.000000e+00> : vector<2x32xf32>
    %299 = tpu.matmul %298, %54, %cst_126 {dimension_numbers = #tpu.dot_dimension_numbers<[1], [0], [0], [1], [0, 0, 1, 1], [], []>} : vector<2x32xbf16>, vector<32x32xbf16>, vector<2x32xf32> -> vector<2x32xf32>
    %c20_127 = arith.constant 20 : index
    %c0_128 = arith.constant 0 : index
    %300 = vector.load %arg10[%c20_127, %c0_128] : memref<32x32xf32, #tpu.memory_space<vmem>>, vector<2x32xf32>
    %301 = arith.addf %299, %300 : vector<2x32xf32>
    %302 = math.tanh %301 : vector<2x32xf32>
    %c20_129 = arith.constant 20 : index
    %c0_130 = arith.constant 0 : index
    %303 = vector.load %arg11[%c20_129, %c0_130] : memref<32x32xf32, #tpu.memory_space<vmem>>, vector<2x32xf32>
    %304 = arith.subf %302, %276 : vector<2x32xf32>
    %305 = arith.mulf %296, %304 : vector<2x32xf32>
    %306 = arith.mulf %303, %305 : vector<2x32xf32>
    %307 = arith.addf %276, %306 : vector<2x32xf32>
    %c4_131 = arith.constant 4 : index
    %c0_132 = arith.constant 0 : index
    %308 = vector.load %arg7[%c4_131, %c0_132] : memref<16x32xf32, #tpu.memory_space<vmem>>, vector<2x32xf32>
    tpu.vector_store %arg7[%c4_131, %c0_132], %307 {strides = array<i32>} : memref<16x32xf32, #tpu.memory_space<vmem>>, vector<2x32xf32>,
    %c4_133 = arith.constant 4 : index
    %c0_134 = arith.constant 0 : index
    %309 = vector.load %arg8[%c4_133, %c0_134] : memref<16x96xf32, #tpu.memory_space<vmem>>, vector<2x96xf32>
    %310 = arith.truncf %307 : vector<2x32xf32> to vector<2x32xbf16>
    %cst_135 = arith.constant dense<0.000000e+00> : vector<2x96xf32>
    %311 = tpu.matmul %310, %55, %cst_135 {dimension_numbers = #tpu.dot_dimension_numbers<[1], [0], [0], [1], [0, 0, 1, 1], [], []>} : vector<2x32xbf16>, vector<32x96xbf16>, vector<2x96xf32> -> vector<2x96xf32>
    %312 = vector.broadcast %56 : vector<1x96xf32> to vector<2x96xf32>
    %313 = arith.addf %311, %312 : vector<2x96xf32>
    %314 = vector.extract_strided_slice %309 {offsets = [0, 0], sizes = [2, 32], strides = [1, 1]} : vector<2x96xf32> to vector<2x32xf32>
    %315 = vector.extract_strided_slice %313 {offsets = [0, 0], sizes = [2, 32], strides = [1, 1]} : vector<2x96xf32> to vector<2x32xf32>
    %316 = arith.addf %314, %315 : vector<2x32xf32>
    %317 = arith.negf %316 : vector<2x32xf32>
    %318 = math.exp %317 : vector<2x32xf32>
    %cst_136 = arith.constant 1.000000e+00 : f32
    %319 = vector.broadcast %cst_136 : f32 to vector<2x32xf32>
    %320 = arith.addf %319, %318 : vector<2x32xf32>
    %321 = arith.divf %319, %320 : vector<2x32xf32>
    %322 = vector.extract_strided_slice %309 {offsets = [0, 32], sizes = [2, 32], strides = [1, 1]} : vector<2x96xf32> to vector<2x32xf32>
    %323 = vector.extract_strided_slice %313 {offsets = [0, 32], sizes = [2, 32], strides = [1, 1]} : vector<2x96xf32> to vector<2x32xf32>
    %324 = arith.addf %322, %323 : vector<2x32xf32>
    %325 = arith.negf %324 : vector<2x32xf32>
    %326 = math.exp %325 : vector<2x32xf32>
    %cst_137 = arith.constant 1.000000e+00 : f32
    %327 = vector.broadcast %cst_137 : f32 to vector<2x32xf32>
    %328 = arith.addf %327, %326 : vector<2x32xf32>
    %329 = arith.divf %327, %328 : vector<2x32xf32>
    %330 = vector.extract_strided_slice %309 {offsets = [0, 64], sizes = [2, 32], strides = [1, 1]} : vector<2x96xf32> to vector<2x32xf32>
    %331 = vector.extract_strided_slice %313 {offsets = [0, 64], sizes = [2, 32], strides = [1, 1]} : vector<2x96xf32> to vector<2x32xf32>
    %332 = arith.mulf %321, %331 : vector<2x32xf32>
    %333 = arith.addf %330, %332 : vector<2x32xf32>
    %334 = math.tanh %333 : vector<2x32xf32>
    %cst_138 = arith.constant 1.000000e+00 : f32
    %335 = vector.broadcast %cst_138 : f32 to vector<2x32xf32>
    %336 = arith.subf %335, %329 : vector<2x32xf32>
    %337 = arith.mulf %336, %334 : vector<2x32xf32>
    %338 = arith.mulf %329, %307 : vector<2x32xf32>
    %339 = arith.addf %337, %338 : vector<2x32xf32>
    %340 = arith.truncf %339 : vector<2x32xf32> to vector<2x32xbf16>
    %cst_139 = arith.constant dense<0.000000e+00> : vector<2x256xf32>
    %341 = tpu.matmul %340, %48, %cst_139 {dimension_numbers = #tpu.dot_dimension_numbers<[1], [0], [0], [1], [0, 0, 1, 1], [], []>} : vector<2x32xbf16>, vector<32x256xbf16>, vector<2x256xf32> -> vector<2x256xf32>
    %c6_140 = arith.constant 6 : index
    %c0_141 = arith.constant 0 : index
    %342 = vector.load %arg9[%c6_140, %c0_141] : memref<32x256xf32, #tpu.memory_space<vmem>>, vector<2x256xf32>
    %343 = arith.addf %341, %342 : vector<2x256xf32>
    %344 = vector.extract_strided_slice %343 {offsets = [0, 0], sizes = [2, 32], strides = [1, 1]} : vector<2x256xf32> to vector<2x32xf32>
    %345 = arith.negf %344 : vector<2x32xf32>
    %346 = math.exp %345 : vector<2x32xf32>
    %cst_142 = arith.constant 1.000000e+00 : f32
    %347 = vector.broadcast %cst_142 : f32 to vector<2x32xf32>
    %348 = arith.addf %347, %346 : vector<2x32xf32>
    %349 = arith.divf %347, %348 : vector<2x32xf32>
    %cst_143 = arith.constant 8.000000e-01 : f32
    %350 = vector.broadcast %cst_143 : f32 to vector<2x32xf32>
    %351 = arith.mulf %350, %349 : vector<2x32xf32>
    %352 = vector.extract_strided_slice %343 {offsets = [0, 128], sizes = [2, 32], strides = [1, 1]} : vector<2x256xf32> to vector<2x32xf32>
    %353 = arith.negf %352 : vector<2x32xf32>
    %354 = math.exp %353 : vector<2x32xf32>
    %cst_144 = arith.constant 1.000000e+00 : f32
    %355 = vector.broadcast %cst_144 : f32 to vector<2x32xf32>
    %356 = arith.addf %355, %354 : vector<2x32xf32>
    %357 = arith.divf %355, %356 : vector<2x32xf32>
    %cst_145 = arith.constant 4.000000e-01 : f32
    %358 = vector.broadcast %cst_145 : f32 to vector<2x32xf32>
    %359 = arith.mulf %358, %357 : vector<2x32xf32>
    %360 = arith.mulf %351, %339 : vector<2x32xf32>
    %361 = arith.truncf %360 : vector<2x32xf32> to vector<2x32xbf16>
    %cst_146 = arith.constant dense<0.000000e+00> : vector<2x32xf32>
    %362 = tpu.matmul %361, %52, %cst_146 {dimension_numbers = #tpu.dot_dimension_numbers<[1], [0], [0], [1], [0, 0, 1, 1], [], []>} : vector<2x32xbf16>, vector<32x32xbf16>, vector<2x32xf32> -> vector<2x32xf32>
    %c6_147 = arith.constant 6 : index
    %c0_148 = arith.constant 0 : index
    %363 = vector.load %arg10[%c6_147, %c0_148] : memref<32x32xf32, #tpu.memory_space<vmem>>, vector<2x32xf32>
    %364 = arith.addf %362, %363 : vector<2x32xf32>
    %365 = math.tanh %364 : vector<2x32xf32>
    %c6_149 = arith.constant 6 : index
    %c0_150 = arith.constant 0 : index
    %366 = vector.load %arg11[%c6_149, %c0_150] : memref<32x32xf32, #tpu.memory_space<vmem>>, vector<2x32xf32>
    %367 = arith.subf %365, %339 : vector<2x32xf32>
    %368 = arith.mulf %359, %367 : vector<2x32xf32>
    %369 = arith.mulf %366, %368 : vector<2x32xf32>
    %370 = arith.addf %339, %369 : vector<2x32xf32>
    %371 = arith.truncf %370 : vector<2x32xf32> to vector<2x32xbf16>
    %cst_151 = arith.constant dense<0.000000e+00> : vector<2x256xf32>
    %372 = tpu.matmul %371, %50, %cst_151 {dimension_numbers = #tpu.dot_dimension_numbers<[1], [0], [0], [1], [0, 0, 1, 1], [], []>} : vector<2x32xbf16>, vector<32x256xbf16>, vector<2x256xf32> -> vector<2x256xf32>
    %c22 = arith.constant 22 : index
    %c0_152 = arith.constant 0 : index
    %373 = vector.load %arg9[%c22, %c0_152] : memref<32x256xf32, #tpu.memory_space<vmem>>, vector<2x256xf32>
    %374 = arith.addf %372, %373 : vector<2x256xf32>
    %375 = vector.extract_strided_slice %374 {offsets = [0, 0], sizes = [2, 32], strides = [1, 1]} : vector<2x256xf32> to vector<2x32xf32>
    %376 = arith.negf %375 : vector<2x32xf32>
    %377 = math.exp %376 : vector<2x32xf32>
    %cst_153 = arith.constant 1.000000e+00 : f32
    %378 = vector.broadcast %cst_153 : f32 to vector<2x32xf32>
    %379 = arith.addf %378, %377 : vector<2x32xf32>
    %380 = arith.divf %378, %379 : vector<2x32xf32>
    %cst_154 = arith.constant 8.000000e-01 : f32
    %381 = vector.broadcast %cst_154 : f32 to vector<2x32xf32>
    %382 = arith.mulf %381, %380 : vector<2x32xf32>
    %383 = vector.extract_strided_slice %374 {offsets = [0, 128], sizes = [2, 32], strides = [1, 1]} : vector<2x256xf32> to vector<2x32xf32>
    %384 = arith.negf %383 : vector<2x32xf32>
    %385 = math.exp %384 : vector<2x32xf32>
    %cst_155 = arith.constant 1.000000e+00 : f32
    %386 = vector.broadcast %cst_155 : f32 to vector<2x32xf32>
    %387 = arith.addf %386, %385 : vector<2x32xf32>
    %388 = arith.divf %386, %387 : vector<2x32xf32>
    %cst_156 = arith.constant 4.000000e-01 : f32
    %389 = vector.broadcast %cst_156 : f32 to vector<2x32xf32>
    %390 = arith.mulf %389, %388 : vector<2x32xf32>
    %391 = arith.mulf %382, %370 : vector<2x32xf32>
    %392 = arith.truncf %391 : vector<2x32xf32> to vector<2x32xbf16>
    %cst_157 = arith.constant dense<0.000000e+00> : vector<2x32xf32>
    %393 = tpu.matmul %392, %54, %cst_157 {dimension_numbers = #tpu.dot_dimension_numbers<[1], [0], [0], [1], [0, 0, 1, 1], [], []>} : vector<2x32xbf16>, vector<32x32xbf16>, vector<2x32xf32> -> vector<2x32xf32>
    %c22_158 = arith.constant 22 : index
    %c0_159 = arith.constant 0 : index
    %394 = vector.load %arg10[%c22_158, %c0_159] : memref<32x32xf32, #tpu.memory_space<vmem>>, vector<2x32xf32>
    %395 = arith.addf %393, %394 : vector<2x32xf32>
    %396 = math.tanh %395 : vector<2x32xf32>
    %c22_160 = arith.constant 22 : index
    %c0_161 = arith.constant 0 : index
    %397 = vector.load %arg11[%c22_160, %c0_161] : memref<32x32xf32, #tpu.memory_space<vmem>>, vector<2x32xf32>
    %398 = arith.subf %396, %370 : vector<2x32xf32>
    %399 = arith.mulf %390, %398 : vector<2x32xf32>
    %400 = arith.mulf %397, %399 : vector<2x32xf32>
    %401 = arith.addf %370, %400 : vector<2x32xf32>
    %c6_162 = arith.constant 6 : index
    %c0_163 = arith.constant 0 : index
    %402 = vector.load %arg7[%c6_162, %c0_163] : memref<16x32xf32, #tpu.memory_space<vmem>>, vector<2x32xf32>
    tpu.vector_store %arg7[%c6_162, %c0_163], %401 {strides = array<i32>} : memref<16x32xf32, #tpu.memory_space<vmem>>, vector<2x32xf32>,
    %c6_164 = arith.constant 6 : index
    %c0_165 = arith.constant 0 : index
    %403 = vector.load %arg8[%c6_164, %c0_165] : memref<16x96xf32, #tpu.memory_space<vmem>>, vector<2x96xf32>
    %404 = arith.truncf %401 : vector<2x32xf32> to vector<2x32xbf16>
    %cst_166 = arith.constant dense<0.000000e+00> : vector<2x96xf32>
    %405 = tpu.matmul %404, %55, %cst_166 {dimension_numbers = #tpu.dot_dimension_numbers<[1], [0], [0], [1], [0, 0, 1, 1], [], []>} : vector<2x32xbf16>, vector<32x96xbf16>, vector<2x96xf32> -> vector<2x96xf32>
    %406 = vector.broadcast %56 : vector<1x96xf32> to vector<2x96xf32>
    %407 = arith.addf %405, %406 : vector<2x96xf32>
    %408 = vector.extract_strided_slice %403 {offsets = [0, 0], sizes = [2, 32], strides = [1, 1]} : vector<2x96xf32> to vector<2x32xf32>
    %409 = vector.extract_strided_slice %407 {offsets = [0, 0], sizes = [2, 32], strides = [1, 1]} : vector<2x96xf32> to vector<2x32xf32>
    %410 = arith.addf %408, %409 : vector<2x32xf32>
    %411 = arith.negf %410 : vector<2x32xf32>
    %412 = math.exp %411 : vector<2x32xf32>
    %cst_167 = arith.constant 1.000000e+00 : f32
    %413 = vector.broadcast %cst_167 : f32 to vector<2x32xf32>
    %414 = arith.addf %413, %412 : vector<2x32xf32>
    %415 = arith.divf %413, %414 : vector<2x32xf32>
    %416 = vector.extract_strided_slice %403 {offsets = [0, 32], sizes = [2, 32], strides = [1, 1]} : vector<2x96xf32> to vector<2x32xf32>
    %417 = vector.extract_strided_slice %407 {offsets = [0, 32], sizes = [2, 32], strides = [1, 1]} : vector<2x96xf32> to vector<2x32xf32>
    %418 = arith.addf %416, %417 : vector<2x32xf32>
    %419 = arith.negf %418 : vector<2x32xf32>
    %420 = math.exp %419 : vector<2x32xf32>
    %cst_168 = arith.constant 1.000000e+00 : f32
    %421 = vector.broadcast %cst_168 : f32 to vector<2x32xf32>
    %422 = arith.addf %421, %420 : vector<2x32xf32>
    %423 = arith.divf %421, %422 : vector<2x32xf32>
    %424 = vector.extract_strided_slice %403 {offsets = [0, 64], sizes = [2, 32], strides = [1, 1]} : vector<2x96xf32> to vector<2x32xf32>
    %425 = vector.extract_strided_slice %407 {offsets = [0, 64], sizes = [2, 32], strides = [1, 1]} : vector<2x96xf32> to vector<2x32xf32>
    %426 = arith.mulf %415, %425 : vector<2x32xf32>
    %427 = arith.addf %424, %426 : vector<2x32xf32>
    %428 = math.tanh %427 : vector<2x32xf32>
    %cst_169 = arith.constant 1.000000e+00 : f32
    %429 = vector.broadcast %cst_169 : f32 to vector<2x32xf32>
    %430 = arith.subf %429, %423 : vector<2x32xf32>
    %431 = arith.mulf %430, %428 : vector<2x32xf32>
    %432 = arith.mulf %423, %401 : vector<2x32xf32>
    %433 = arith.addf %431, %432 : vector<2x32xf32>
    %434 = arith.truncf %433 : vector<2x32xf32> to vector<2x32xbf16>
    %cst_170 = arith.constant dense<0.000000e+00> : vector<2x256xf32>
    %435 = tpu.matmul %434, %48, %cst_170 {dimension_numbers = #tpu.dot_dimension_numbers<[1], [0], [0], [1], [0, 0, 1, 1], [], []>} : vector<2x32xbf16>, vector<32x256xbf16>, vector<2x256xf32> -> vector<2x256xf32>
    %c8_171 = arith.constant 8 : index
    %c0_172 = arith.constant 0 : index
    %436 = vector.load %arg9[%c8_171, %c0_172] : memref<32x256xf32, #tpu.memory_space<vmem>>, vector<2x256xf32>
    %437 = arith.addf %435, %436 : vector<2x256xf32>
    %438 = vector.extract_strided_slice %437 {offsets = [0, 0], sizes = [2, 32], strides = [1, 1]} : vector<2x256xf32> to vector<2x32xf32>
    %439 = arith.negf %438 : vector<2x32xf32>
    %440 = math.exp %439 : vector<2x32xf32>
    %cst_173 = arith.constant 1.000000e+00 : f32
    %441 = vector.broadcast %cst_173 : f32 to vector<2x32xf32>
    %442 = arith.addf %441, %440 : vector<2x32xf32>
    %443 = arith.divf %441, %442 : vector<2x32xf32>
    %cst_174 = arith.constant 8.000000e-01 : f32
    %444 = vector.broadcast %cst_174 : f32 to vector<2x32xf32>
    %445 = arith.mulf %444, %443 : vector<2x32xf32>
    %446 = vector.extract_strided_slice %437 {offsets = [0, 128], sizes = [2, 32], strides = [1, 1]} : vector<2x256xf32> to vector<2x32xf32>
    %447 = arith.negf %446 : vector<2x32xf32>
    %448 = math.exp %447 : vector<2x32xf32>
    %cst_175 = arith.constant 1.000000e+00 : f32
    %449 = vector.broadcast %cst_175 : f32 to vector<2x32xf32>
    %450 = arith.addf %449, %448 : vector<2x32xf32>
    %451 = arith.divf %449, %450 : vector<2x32xf32>
    %cst_176 = arith.constant 4.000000e-01 : f32
    %452 = vector.broadcast %cst_176 : f32 to vector<2x32xf32>
    %453 = arith.mulf %452, %451 : vector<2x32xf32>
    %454 = arith.mulf %445, %433 : vector<2x32xf32>
    %455 = arith.truncf %454 : vector<2x32xf32> to vector<2x32xbf16>
    %cst_177 = arith.constant dense<0.000000e+00> : vector<2x32xf32>
    %456 = tpu.matmul %455, %52, %cst_177 {dimension_numbers = #tpu.dot_dimension_numbers<[1], [0], [0], [1], [0, 0, 1, 1], [], []>} : vector<2x32xbf16>, vector<32x32xbf16>, vector<2x32xf32> -> vector<2x32xf32>
    %c8_178 = arith.constant 8 : index
    %c0_179 = arith.constant 0 : index
    %457 = vector.load %arg10[%c8_178, %c0_179] : memref<32x32xf32, #tpu.memory_space<vmem>>, vector<2x32xf32>
    %458 = arith.addf %456, %457 : vector<2x32xf32>
    %459 = math.tanh %458 : vector<2x32xf32>
    %c8_180 = arith.constant 8 : index
    %c0_181 = arith.constant 0 : index
    %460 = vector.load %arg11[%c8_180, %c0_181] : memref<32x32xf32, #tpu.memory_space<vmem>>, vector<2x32xf32>
    %461 = arith.subf %459, %433 : vector<2x32xf32>
    %462 = arith.mulf %453, %461 : vector<2x32xf32>
    %463 = arith.mulf %460, %462 : vector<2x32xf32>
    %464 = arith.addf %433, %463 : vector<2x32xf32>
    %465 = arith.truncf %464 : vector<2x32xf32> to vector<2x32xbf16>
    %cst_182 = arith.constant dense<0.000000e+00> : vector<2x256xf32>
    %466 = tpu.matmul %465, %50, %cst_182 {dimension_numbers = #tpu.dot_dimension_numbers<[1], [0], [0], [1], [0, 0, 1, 1], [], []>} : vector<2x32xbf16>, vector<32x256xbf16>, vector<2x256xf32> -> vector<2x256xf32>
    %c24 = arith.constant 24 : index
    %c0_183 = arith.constant 0 : index
    %467 = vector.load %arg9[%c24, %c0_183] : memref<32x256xf32, #tpu.memory_space<vmem>>, vector<2x256xf32>
    %468 = arith.addf %466, %467 : vector<2x256xf32>
    %469 = vector.extract_strided_slice %468 {offsets = [0, 0], sizes = [2, 32], strides = [1, 1]} : vector<2x256xf32> to vector<2x32xf32>
    %470 = arith.negf %469 : vector<2x32xf32>
    %471 = math.exp %470 : vector<2x32xf32>
    %cst_184 = arith.constant 1.000000e+00 : f32
    %472 = vector.broadcast %cst_184 : f32 to vector<2x32xf32>
    %473 = arith.addf %472, %471 : vector<2x32xf32>
    %474 = arith.divf %472, %473 : vector<2x32xf32>
    %cst_185 = arith.constant 8.000000e-01 : f32
    %475 = vector.broadcast %cst_185 : f32 to vector<2x32xf32>
    %476 = arith.mulf %475, %474 : vector<2x32xf32>
    %477 = vector.extract_strided_slice %468 {offsets = [0, 128], sizes = [2, 32], strides = [1, 1]} : vector<2x256xf32> to vector<2x32xf32>
    %478 = arith.negf %477 : vector<2x32xf32>
    %479 = math.exp %478 : vector<2x32xf32>
    %cst_186 = arith.constant 1.000000e+00 : f32
    %480 = vector.broadcast %cst_186 : f32 to vector<2x32xf32>
    %481 = arith.addf %480, %479 : vector<2x32xf32>
    %482 = arith.divf %480, %481 : vector<2x32xf32>
    %cst_187 = arith.constant 4.000000e-01 : f32
    %483 = vector.broadcast %cst_187 : f32 to vector<2x32xf32>
    %484 = arith.mulf %483, %482 : vector<2x32xf32>
    %485 = arith.mulf %476, %464 : vector<2x32xf32>
    %486 = arith.truncf %485 : vector<2x32xf32> to vector<2x32xbf16>
    %cst_188 = arith.constant dense<0.000000e+00> : vector<2x32xf32>
    %487 = tpu.matmul %486, %54, %cst_188 {dimension_numbers = #tpu.dot_dimension_numbers<[1], [0], [0], [1], [0, 0, 1, 1], [], []>} : vector<2x32xbf16>, vector<32x32xbf16>, vector<2x32xf32> -> vector<2x32xf32>
    %c24_189 = arith.constant 24 : index
    %c0_190 = arith.constant 0 : index
    %488 = vector.load %arg10[%c24_189, %c0_190] : memref<32x32xf32, #tpu.memory_space<vmem>>, vector<2x32xf32>
    %489 = arith.addf %487, %488 : vector<2x32xf32>
    %490 = math.tanh %489 : vector<2x32xf32>
    %c24_191 = arith.constant 24 : index
    %c0_192 = arith.constant 0 : index
    %491 = vector.load %arg11[%c24_191, %c0_192] : memref<32x32xf32, #tpu.memory_space<vmem>>, vector<2x32xf32>
    %492 = arith.subf %490, %464 : vector<2x32xf32>
    %493 = arith.mulf %484, %492 : vector<2x32xf32>
    %494 = arith.mulf %491, %493 : vector<2x32xf32>
    %495 = arith.addf %464, %494 : vector<2x32xf32>
    %c8_193 = arith.constant 8 : index
    %c0_194 = arith.constant 0 : index
    %496 = vector.load %arg7[%c8_193, %c0_194] : memref<16x32xf32, #tpu.memory_space<vmem>>, vector<2x32xf32>
    tpu.vector_store %arg7[%c8_193, %c0_194], %495 {strides = array<i32>} : memref<16x32xf32, #tpu.memory_space<vmem>>, vector<2x32xf32>,
    %c8_195 = arith.constant 8 : index
    %c0_196 = arith.constant 0 : index
    %497 = vector.load %arg8[%c8_195, %c0_196] : memref<16x96xf32, #tpu.memory_space<vmem>>, vector<2x96xf32>
    %498 = arith.truncf %495 : vector<2x32xf32> to vector<2x32xbf16>
    %cst_197 = arith.constant dense<0.000000e+00> : vector<2x96xf32>
    %499 = tpu.matmul %498, %55, %cst_197 {dimension_numbers = #tpu.dot_dimension_numbers<[1], [0], [0], [1], [0, 0, 1, 1], [], []>} : vector<2x32xbf16>, vector<32x96xbf16>, vector<2x96xf32> -> vector<2x96xf32>
    %500 = vector.broadcast %56 : vector<1x96xf32> to vector<2x96xf32>
    %501 = arith.addf %499, %500 : vector<2x96xf32>
    %502 = vector.extract_strided_slice %497 {offsets = [0, 0], sizes = [2, 32], strides = [1, 1]} : vector<2x96xf32> to vector<2x32xf32>
    %503 = vector.extract_strided_slice %501 {offsets = [0, 0], sizes = [2, 32], strides = [1, 1]} : vector<2x96xf32> to vector<2x32xf32>
    %504 = arith.addf %502, %503 : vector<2x32xf32>
    %505 = arith.negf %504 : vector<2x32xf32>
    %506 = math.exp %505 : vector<2x32xf32>
    %cst_198 = arith.constant 1.000000e+00 : f32
    %507 = vector.broadcast %cst_198 : f32 to vector<2x32xf32>
    %508 = arith.addf %507, %506 : vector<2x32xf32>
    %509 = arith.divf %507, %508 : vector<2x32xf32>
    %510 = vector.extract_strided_slice %497 {offsets = [0, 32], sizes = [2, 32], strides = [1, 1]} : vector<2x96xf32> to vector<2x32xf32>
    %511 = vector.extract_strided_slice %501 {offsets = [0, 32], sizes = [2, 32], strides = [1, 1]} : vector<2x96xf32> to vector<2x32xf32>
    %512 = arith.addf %510, %511 : vector<2x32xf32>
    %513 = arith.negf %512 : vector<2x32xf32>
    %514 = math.exp %513 : vector<2x32xf32>
    %cst_199 = arith.constant 1.000000e+00 : f32
    %515 = vector.broadcast %cst_199 : f32 to vector<2x32xf32>
    %516 = arith.addf %515, %514 : vector<2x32xf32>
    %517 = arith.divf %515, %516 : vector<2x32xf32>
    %518 = vector.extract_strided_slice %497 {offsets = [0, 64], sizes = [2, 32], strides = [1, 1]} : vector<2x96xf32> to vector<2x32xf32>
    %519 = vector.extract_strided_slice %501 {offsets = [0, 64], sizes = [2, 32], strides = [1, 1]} : vector<2x96xf32> to vector<2x32xf32>
    %520 = arith.mulf %509, %519 : vector<2x32xf32>
    %521 = arith.addf %518, %520 : vector<2x32xf32>
    %522 = math.tanh %521 : vector<2x32xf32>
    %cst_200 = arith.constant 1.000000e+00 : f32
    %523 = vector.broadcast %cst_200 : f32 to vector<2x32xf32>
    %524 = arith.subf %523, %517 : vector<2x32xf32>
    %525 = arith.mulf %524, %522 : vector<2x32xf32>
    %526 = arith.mulf %517, %495 : vector<2x32xf32>
    %527 = arith.addf %525, %526 : vector<2x32xf32>
    %528 = arith.truncf %527 : vector<2x32xf32> to vector<2x32xbf16>
    %cst_201 = arith.constant dense<0.000000e+00> : vector<2x256xf32>
    %529 = tpu.matmul %528, %48, %cst_201 {dimension_numbers = #tpu.dot_dimension_numbers<[1], [0], [0], [1], [0, 0, 1, 1], [], []>} : vector<2x32xbf16>, vector<32x256xbf16>, vector<2x256xf32> -> vector<2x256xf32>
    %c10_202 = arith.constant 10 : index
    %c0_203 = arith.constant 0 : index
    %530 = vector.load %arg9[%c10_202, %c0_203] : memref<32x256xf32, #tpu.memory_space<vmem>>, vector<2x256xf32>
    %531 = arith.addf %529, %530 : vector<2x256xf32>
    %532 = vector.extract_strided_slice %531 {offsets = [0, 0], sizes = [2, 32], strides = [1, 1]} : vector<2x256xf32> to vector<2x32xf32>
    %533 = arith.negf %532 : vector<2x32xf32>
    %534 = math.exp %533 : vector<2x32xf32>
    %cst_204 = arith.constant 1.000000e+00 : f32
    %535 = vector.broadcast %cst_204 : f32 to vector<2x32xf32>
    %536 = arith.addf %535, %534 : vector<2x32xf32>
    %537 = arith.divf %535, %536 : vector<2x32xf32>
    %cst_205 = arith.constant 8.000000e-01 : f32
    %538 = vector.broadcast %cst_205 : f32 to vector<2x32xf32>
    %539 = arith.mulf %538, %537 : vector<2x32xf32>
    %540 = vector.extract_strided_slice %531 {offsets = [0, 128], sizes = [2, 32], strides = [1, 1]} : vector<2x256xf32> to vector<2x32xf32>
    %541 = arith.negf %540 : vector<2x32xf32>
    %542 = math.exp %541 : vector<2x32xf32>
    %cst_206 = arith.constant 1.000000e+00 : f32
    %543 = vector.broadcast %cst_206 : f32 to vector<2x32xf32>
    %544 = arith.addf %543, %542 : vector<2x32xf32>
    %545 = arith.divf %543, %544 : vector<2x32xf32>
    %cst_207 = arith.constant 4.000000e-01 : f32
    %546 = vector.broadcast %cst_207 : f32 to vector<2x32xf32>
    %547 = arith.mulf %546, %545 : vector<2x32xf32>
    %548 = arith.mulf %539, %527 : vector<2x32xf32>
    %549 = arith.truncf %548 : vector<2x32xf32> to vector<2x32xbf16>
    %cst_208 = arith.constant dense<0.000000e+00> : vector<2x32xf32>
    %550 = tpu.matmul %549, %52, %cst_208 {dimension_numbers = #tpu.dot_dimension_numbers<[1], [0], [0], [1], [0, 0, 1, 1], [], []>} : vector<2x32xbf16>, vector<32x32xbf16>, vector<2x32xf32> -> vector<2x32xf32>
    %c10_209 = arith.constant 10 : index
    %c0_210 = arith.constant 0 : index
    %551 = vector.load %arg10[%c10_209, %c0_210] : memref<32x32xf32, #tpu.memory_space<vmem>>, vector<2x32xf32>
    %552 = arith.addf %550, %551 : vector<2x32xf32>
    %553 = math.tanh %552 : vector<2x32xf32>
    %c10_211 = arith.constant 10 : index
    %c0_212 = arith.constant 0 : index
    %554 = vector.load %arg11[%c10_211, %c0_212] : memref<32x32xf32, #tpu.memory_space<vmem>>, vector<2x32xf32>
    %555 = arith.subf %553, %527 : vector<2x32xf32>
    %556 = arith.mulf %547, %555 : vector<2x32xf32>
    %557 = arith.mulf %554, %556 : vector<2x32xf32>
    %558 = arith.addf %527, %557 : vector<2x32xf32>
    %559 = arith.truncf %558 : vector<2x32xf32> to vector<2x32xbf16>
    %cst_213 = arith.constant dense<0.000000e+00> : vector<2x256xf32>
    %560 = tpu.matmul %559, %50, %cst_213 {dimension_numbers = #tpu.dot_dimension_numbers<[1], [0], [0], [1], [0, 0, 1, 1], [], []>} : vector<2x32xbf16>, vector<32x256xbf16>, vector<2x256xf32> -> vector<2x256xf32>
    %c26 = arith.constant 26 : index
    %c0_214 = arith.constant 0 : index
    %561 = vector.load %arg9[%c26, %c0_214] : memref<32x256xf32, #tpu.memory_space<vmem>>, vector<2x256xf32>
    %562 = arith.addf %560, %561 : vector<2x256xf32>
    %563 = vector.extract_strided_slice %562 {offsets = [0, 0], sizes = [2, 32], strides = [1, 1]} : vector<2x256xf32> to vector<2x32xf32>
    %564 = arith.negf %563 : vector<2x32xf32>
    %565 = math.exp %564 : vector<2x32xf32>
    %cst_215 = arith.constant 1.000000e+00 : f32
    %566 = vector.broadcast %cst_215 : f32 to vector<2x32xf32>
    %567 = arith.addf %566, %565 : vector<2x32xf32>
    %568 = arith.divf %566, %567 : vector<2x32xf32>
    %cst_216 = arith.constant 8.000000e-01 : f32
    %569 = vector.broadcast %cst_216 : f32 to vector<2x32xf32>
    %570 = arith.mulf %569, %568 : vector<2x32xf32>
    %571 = vector.extract_strided_slice %562 {offsets = [0, 128], sizes = [2, 32], strides = [1, 1]} : vector<2x256xf32> to vector<2x32xf32>
    %572 = arith.negf %571 : vector<2x32xf32>
    %573 = math.exp %572 : vector<2x32xf32>
    %cst_217 = arith.constant 1.000000e+00 : f32
    %574 = vector.broadcast %cst_217 : f32 to vector<2x32xf32>
    %575 = arith.addf %574, %573 : vector<2x32xf32>
    %576 = arith.divf %574, %575 : vector<2x32xf32>
    %cst_218 = arith.constant 4.000000e-01 : f32
    %577 = vector.broadcast %cst_218 : f32 to vector<2x32xf32>
    %578 = arith.mulf %577, %576 : vector<2x32xf32>
    %579 = arith.mulf %570, %558 : vector<2x32xf32>
    %580 = arith.truncf %579 : vector<2x32xf32> to vector<2x32xbf16>
    %cst_219 = arith.constant dense<0.000000e+00> : vector<2x32xf32>
    %581 = tpu.matmul %580, %54, %cst_219 {dimension_numbers = #tpu.dot_dimension_numbers<[1], [0], [0], [1], [0, 0, 1, 1], [], []>} : vector<2x32xbf16>, vector<32x32xbf16>, vector<2x32xf32> -> vector<2x32xf32>
    %c26_220 = arith.constant 26 : index
    %c0_221 = arith.constant 0 : index
    %582 = vector.load %arg10[%c26_220, %c0_221] : memref<32x32xf32, #tpu.memory_space<vmem>>, vector<2x32xf32>
    %583 = arith.addf %581, %582 : vector<2x32xf32>
    %584 = math.tanh %583 : vector<2x32xf32>
    %c26_222 = arith.constant 26 : index
    %c0_223 = arith.constant 0 : index
    %585 = vector.load %arg11[%c26_222, %c0_223] : memref<32x32xf32, #tpu.memory_space<vmem>>, vector<2x32xf32>
    %586 = arith.subf %584, %558 : vector<2x32xf32>
    %587 = arith.mulf %578, %586 : vector<2x32xf32>
    %588 = arith.mulf %585, %587 : vector<2x32xf32>
    %589 = arith.addf %558, %588 : vector<2x32xf32>
    %c10_224 = arith.constant 10 : index
    %c0_225 = arith.constant 0 : index
    %590 = vector.load %arg7[%c10_224, %c0_225] : memref<16x32xf32, #tpu.memory_space<vmem>>, vector<2x32xf32>
    tpu.vector_store %arg7[%c10_224, %c0_225], %589 {strides = array<i32>} : memref<16x32xf32, #tpu.memory_space<vmem>>, vector<2x32xf32>,
    %c10_226 = arith.constant 10 : index
    %c0_227 = arith.constant 0 : index
    %591 = vector.load %arg8[%c10_226, %c0_227] : memref<16x96xf32, #tpu.memory_space<vmem>>, vector<2x96xf32>
    %592 = arith.truncf %589 : vector<2x32xf32> to vector<2x32xbf16>
    %cst_228 = arith.constant dense<0.000000e+00> : vector<2x96xf32>
    %593 = tpu.matmul %592, %55, %cst_228 {dimension_numbers = #tpu.dot_dimension_numbers<[1], [0], [0], [1], [0, 0, 1, 1], [], []>} : vector<2x32xbf16>, vector<32x96xbf16>, vector<2x96xf32> -> vector<2x96xf32>
    %594 = vector.broadcast %56 : vector<1x96xf32> to vector<2x96xf32>
    %595 = arith.addf %593, %594 : vector<2x96xf32>
    %596 = vector.extract_strided_slice %591 {offsets = [0, 0], sizes = [2, 32], strides = [1, 1]} : vector<2x96xf32> to vector<2x32xf32>
    %597 = vector.extract_strided_slice %595 {offsets = [0, 0], sizes = [2, 32], strides = [1, 1]} : vector<2x96xf32> to vector<2x32xf32>
    %598 = arith.addf %596, %597 : vector<2x32xf32>
    %599 = arith.negf %598 : vector<2x32xf32>
    %600 = math.exp %599 : vector<2x32xf32>
    %cst_229 = arith.constant 1.000000e+00 : f32
    %601 = vector.broadcast %cst_229 : f32 to vector<2x32xf32>
    %602 = arith.addf %601, %600 : vector<2x32xf32>
    %603 = arith.divf %601, %602 : vector<2x32xf32>
    %604 = vector.extract_strided_slice %591 {offsets = [0, 32], sizes = [2, 32], strides = [1, 1]} : vector<2x96xf32> to vector<2x32xf32>
    %605 = vector.extract_strided_slice %595 {offsets = [0, 32], sizes = [2, 32], strides = [1, 1]} : vector<2x96xf32> to vector<2x32xf32>
    %606 = arith.addf %604, %605 : vector<2x32xf32>
    %607 = arith.negf %606 : vector<2x32xf32>
    %608 = math.exp %607 : vector<2x32xf32>
    %cst_230 = arith.constant 1.000000e+00 : f32
    %609 = vector.broadcast %cst_230 : f32 to vector<2x32xf32>
    %610 = arith.addf %609, %608 : vector<2x32xf32>
    %611 = arith.divf %609, %610 : vector<2x32xf32>
    %612 = vector.extract_strided_slice %591 {offsets = [0, 64], sizes = [2, 32], strides = [1, 1]} : vector<2x96xf32> to vector<2x32xf32>
    %613 = vector.extract_strided_slice %595 {offsets = [0, 64], sizes = [2, 32], strides = [1, 1]} : vector<2x96xf32> to vector<2x32xf32>
    %614 = arith.mulf %603, %613 : vector<2x32xf32>
    %615 = arith.addf %612, %614 : vector<2x32xf32>
    %616 = math.tanh %615 : vector<2x32xf32>
    %cst_231 = arith.constant 1.000000e+00 : f32
    %617 = vector.broadcast %cst_231 : f32 to vector<2x32xf32>
    %618 = arith.subf %617, %611 : vector<2x32xf32>
    %619 = arith.mulf %618, %616 : vector<2x32xf32>
    %620 = arith.mulf %611, %589 : vector<2x32xf32>
    %621 = arith.addf %619, %620 : vector<2x32xf32>
    %622 = arith.truncf %621 : vector<2x32xf32> to vector<2x32xbf16>
    %cst_232 = arith.constant dense<0.000000e+00> : vector<2x256xf32>
    %623 = tpu.matmul %622, %48, %cst_232 {dimension_numbers = #tpu.dot_dimension_numbers<[1], [0], [0], [1], [0, 0, 1, 1], [], []>} : vector<2x32xbf16>, vector<32x256xbf16>, vector<2x256xf32> -> vector<2x256xf32>
    %c12_233 = arith.constant 12 : index
    %c0_234 = arith.constant 0 : index
    %624 = vector.load %arg9[%c12_233, %c0_234] : memref<32x256xf32, #tpu.memory_space<vmem>>, vector<2x256xf32>
    %625 = arith.addf %623, %624 : vector<2x256xf32>
    %626 = vector.extract_strided_slice %625 {offsets = [0, 0], sizes = [2, 32], strides = [1, 1]} : vector<2x256xf32> to vector<2x32xf32>
    %627 = arith.negf %626 : vector<2x32xf32>
    %628 = math.exp %627 : vector<2x32xf32>
    %cst_235 = arith.constant 1.000000e+00 : f32
    %629 = vector.broadcast %cst_235 : f32 to vector<2x32xf32>
    %630 = arith.addf %629, %628 : vector<2x32xf32>
    %631 = arith.divf %629, %630 : vector<2x32xf32>
    %cst_236 = arith.constant 8.000000e-01 : f32
    %632 = vector.broadcast %cst_236 : f32 to vector<2x32xf32>
    %633 = arith.mulf %632, %631 : vector<2x32xf32>
    %634 = vector.extract_strided_slice %625 {offsets = [0, 128], sizes = [2, 32], strides = [1, 1]} : vector<2x256xf32> to vector<2x32xf32>
    %635 = arith.negf %634 : vector<2x32xf32>
    %636 = math.exp %635 : vector<2x32xf32>
    %cst_237 = arith.constant 1.000000e+00 : f32
    %637 = vector.broadcast %cst_237 : f32 to vector<2x32xf32>
    %638 = arith.addf %637, %636 : vector<2x32xf32>
    %639 = arith.divf %637, %638 : vector<2x32xf32>
    %cst_238 = arith.constant 4.000000e-01 : f32
    %640 = vector.broadcast %cst_238 : f32 to vector<2x32xf32>
    %641 = arith.mulf %640, %639 : vector<2x32xf32>
    %642 = arith.mulf %633, %621 : vector<2x32xf32>
    %643 = arith.truncf %642 : vector<2x32xf32> to vector<2x32xbf16>
    %cst_239 = arith.constant dense<0.000000e+00> : vector<2x32xf32>
    %644 = tpu.matmul %643, %52, %cst_239 {dimension_numbers = #tpu.dot_dimension_numbers<[1], [0], [0], [1], [0, 0, 1, 1], [], []>} : vector<2x32xbf16>, vector<32x32xbf16>, vector<2x32xf32> -> vector<2x32xf32>
    %c12_240 = arith.constant 12 : index
    %c0_241 = arith.constant 0 : index
    %645 = vector.load %arg10[%c12_240, %c0_241] : memref<32x32xf32, #tpu.memory_space<vmem>>, vector<2x32xf32>
    %646 = arith.addf %644, %645 : vector<2x32xf32>
    %647 = math.tanh %646 : vector<2x32xf32>
    %c12_242 = arith.constant 12 : index
    %c0_243 = arith.constant 0 : index
    %648 = vector.load %arg11[%c12_242, %c0_243] : memref<32x32xf32, #tpu.memory_space<vmem>>, vector<2x32xf32>
    %649 = arith.subf %647, %621 : vector<2x32xf32>
    %650 = arith.mulf %641, %649 : vector<2x32xf32>
    %651 = arith.mulf %648, %650 : vector<2x32xf32>
    %652 = arith.addf %621, %651 : vector<2x32xf32>
    %653 = arith.truncf %652 : vector<2x32xf32> to vector<2x32xbf16>
    %cst_244 = arith.constant dense<0.000000e+00> : vector<2x256xf32>
    %654 = tpu.matmul %653, %50, %cst_244 {dimension_numbers = #tpu.dot_dimension_numbers<[1], [0], [0], [1], [0, 0, 1, 1], [], []>} : vector<2x32xbf16>, vector<32x256xbf16>, vector<2x256xf32> -> vector<2x256xf32>
    %c28 = arith.constant 28 : index
    %c0_245 = arith.constant 0 : index
    %655 = vector.load %arg9[%c28, %c0_245] : memref<32x256xf32, #tpu.memory_space<vmem>>, vector<2x256xf32>
    %656 = arith.addf %654, %655 : vector<2x256xf32>
    %657 = vector.extract_strided_slice %656 {offsets = [0, 0], sizes = [2, 32], strides = [1, 1]} : vector<2x256xf32> to vector<2x32xf32>
    %658 = arith.negf %657 : vector<2x32xf32>
    %659 = math.exp %658 : vector<2x32xf32>
    %cst_246 = arith.constant 1.000000e+00 : f32
    %660 = vector.broadcast %cst_246 : f32 to vector<2x32xf32>
    %661 = arith.addf %660, %659 : vector<2x32xf32>
    %662 = arith.divf %660, %661 : vector<2x32xf32>
    %cst_247 = arith.constant 8.000000e-01 : f32
    %663 = vector.broadcast %cst_247 : f32 to vector<2x32xf32>
    %664 = arith.mulf %663, %662 : vector<2x32xf32>
    %665 = vector.extract_strided_slice %656 {offsets = [0, 128], sizes = [2, 32], strides = [1, 1]} : vector<2x256xf32> to vector<2x32xf32>
    %666 = arith.negf %665 : vector<2x32xf32>
    %667 = math.exp %666 : vector<2x32xf32>
    %cst_248 = arith.constant 1.000000e+00 : f32
    %668 = vector.broadcast %cst_248 : f32 to vector<2x32xf32>
    %669 = arith.addf %668, %667 : vector<2x32xf32>
    %670 = arith.divf %668, %669 : vector<2x32xf32>
    %cst_249 = arith.constant 4.000000e-01 : f32
    %671 = vector.broadcast %cst_249 : f32 to vector<2x32xf32>
    %672 = arith.mulf %671, %670 : vector<2x32xf32>
    %673 = arith.mulf %664, %652 : vector<2x32xf32>
    %674 = arith.truncf %673 : vector<2x32xf32> to vector<2x32xbf16>
    %cst_250 = arith.constant dense<0.000000e+00> : vector<2x32xf32>
    %675 = tpu.matmul %674, %54, %cst_250 {dimension_numbers = #tpu.dot_dimension_numbers<[1], [0], [0], [1], [0, 0, 1, 1], [], []>} : vector<2x32xbf16>, vector<32x32xbf16>, vector<2x32xf32> -> vector<2x32xf32>
    %c28_251 = arith.constant 28 : index
    %c0_252 = arith.constant 0 : index
    %676 = vector.load %arg10[%c28_251, %c0_252] : memref<32x32xf32, #tpu.memory_space<vmem>>, vector<2x32xf32>
    %677 = arith.addf %675, %676 : vector<2x32xf32>
    %678 = math.tanh %677 : vector<2x32xf32>
    %c28_253 = arith.constant 28 : index
    %c0_254 = arith.constant 0 : index
    %679 = vector.load %arg11[%c28_253, %c0_254] : memref<32x32xf32, #tpu.memory_space<vmem>>, vector<2x32xf32>
    %680 = arith.subf %678, %652 : vector<2x32xf32>
    %681 = arith.mulf %672, %680 : vector<2x32xf32>
    %682 = arith.mulf %679, %681 : vector<2x32xf32>
    %683 = arith.addf %652, %682 : vector<2x32xf32>
    %c12_255 = arith.constant 12 : index
    %c0_256 = arith.constant 0 : index
    %684 = vector.load %arg7[%c12_255, %c0_256] : memref<16x32xf32, #tpu.memory_space<vmem>>, vector<2x32xf32>
    tpu.vector_store %arg7[%c12_255, %c0_256], %683 {strides = array<i32>} : memref<16x32xf32, #tpu.memory_space<vmem>>, vector<2x32xf32>,
    %c12_257 = arith.constant 12 : index
    %c0_258 = arith.constant 0 : index
    %685 = vector.load %arg8[%c12_257, %c0_258] : memref<16x96xf32, #tpu.memory_space<vmem>>, vector<2x96xf32>
    %686 = arith.truncf %683 : vector<2x32xf32> to vector<2x32xbf16>
    %cst_259 = arith.constant dense<0.000000e+00> : vector<2x96xf32>
    %687 = tpu.matmul %686, %55, %cst_259 {dimension_numbers = #tpu.dot_dimension_numbers<[1], [0], [0], [1], [0, 0, 1, 1], [], []>} : vector<2x32xbf16>, vector<32x96xbf16>, vector<2x96xf32> -> vector<2x96xf32>
    %688 = vector.broadcast %56 : vector<1x96xf32> to vector<2x96xf32>
    %689 = arith.addf %687, %688 : vector<2x96xf32>
    %690 = vector.extract_strided_slice %685 {offsets = [0, 0], sizes = [2, 32], strides = [1, 1]} : vector<2x96xf32> to vector<2x32xf32>
    %691 = vector.extract_strided_slice %689 {offsets = [0, 0], sizes = [2, 32], strides = [1, 1]} : vector<2x96xf32> to vector<2x32xf32>
    %692 = arith.addf %690, %691 : vector<2x32xf32>
    %693 = arith.negf %692 : vector<2x32xf32>
    %694 = math.exp %693 : vector<2x32xf32>
    %cst_260 = arith.constant 1.000000e+00 : f32
    %695 = vector.broadcast %cst_260 : f32 to vector<2x32xf32>
    %696 = arith.addf %695, %694 : vector<2x32xf32>
    %697 = arith.divf %695, %696 : vector<2x32xf32>
    %698 = vector.extract_strided_slice %685 {offsets = [0, 32], sizes = [2, 32], strides = [1, 1]} : vector<2x96xf32> to vector<2x32xf32>
    %699 = vector.extract_strided_slice %689 {offsets = [0, 32], sizes = [2, 32], strides = [1, 1]} : vector<2x96xf32> to vector<2x32xf32>
    %700 = arith.addf %698, %699 : vector<2x32xf32>
    %701 = arith.negf %700 : vector<2x32xf32>
    %702 = math.exp %701 : vector<2x32xf32>
    %cst_261 = arith.constant 1.000000e+00 : f32
    %703 = vector.broadcast %cst_261 : f32 to vector<2x32xf32>
    %704 = arith.addf %703, %702 : vector<2x32xf32>
    %705 = arith.divf %703, %704 : vector<2x32xf32>
    %706 = vector.extract_strided_slice %685 {offsets = [0, 64], sizes = [2, 32], strides = [1, 1]} : vector<2x96xf32> to vector<2x32xf32>
    %707 = vector.extract_strided_slice %689 {offsets = [0, 64], sizes = [2, 32], strides = [1, 1]} : vector<2x96xf32> to vector<2x32xf32>
    %708 = arith.mulf %697, %707 : vector<2x32xf32>
    %709 = arith.addf %706, %708 : vector<2x32xf32>
    %710 = math.tanh %709 : vector<2x32xf32>
    %cst_262 = arith.constant 1.000000e+00 : f32
    %711 = vector.broadcast %cst_262 : f32 to vector<2x32xf32>
    %712 = arith.subf %711, %705 : vector<2x32xf32>
    %713 = arith.mulf %712, %710 : vector<2x32xf32>
    %714 = arith.mulf %705, %683 : vector<2x32xf32>
    %715 = arith.addf %713, %714 : vector<2x32xf32>
    %716 = arith.truncf %715 : vector<2x32xf32> to vector<2x32xbf16>
    %cst_263 = arith.constant dense<0.000000e+00> : vector<2x256xf32>
    %717 = tpu.matmul %716, %48, %cst_263 {dimension_numbers = #tpu.dot_dimension_numbers<[1], [0], [0], [1], [0, 0, 1, 1], [], []>} : vector<2x32xbf16>, vector<32x256xbf16>, vector<2x256xf32> -> vector<2x256xf32>
    %c14 = arith.constant 14 : index
    %c0_264 = arith.constant 0 : index
    %718 = vector.load %arg9[%c14, %c0_264] : memref<32x256xf32, #tpu.memory_space<vmem>>, vector<2x256xf32>
    %719 = arith.addf %717, %718 : vector<2x256xf32>
    %720 = vector.extract_strided_slice %719 {offsets = [0, 0], sizes = [2, 32], strides = [1, 1]} : vector<2x256xf32> to vector<2x32xf32>
    %721 = arith.negf %720 : vector<2x32xf32>
    %722 = math.exp %721 : vector<2x32xf32>
    %cst_265 = arith.constant 1.000000e+00 : f32
    %723 = vector.broadcast %cst_265 : f32 to vector<2x32xf32>
    %724 = arith.addf %723, %722 : vector<2x32xf32>
    %725 = arith.divf %723, %724 : vector<2x32xf32>
    %cst_266 = arith.constant 8.000000e-01 : f32
    %726 = vector.broadcast %cst_266 : f32 to vector<2x32xf32>
    %727 = arith.mulf %726, %725 : vector<2x32xf32>
    %728 = vector.extract_strided_slice %719 {offsets = [0, 128], sizes = [2, 32], strides = [1, 1]} : vector<2x256xf32> to vector<2x32xf32>
    %729 = arith.negf %728 : vector<2x32xf32>
    %730 = math.exp %729 : vector<2x32xf32>
    %cst_267 = arith.constant 1.000000e+00 : f32
    %731 = vector.broadcast %cst_267 : f32 to vector<2x32xf32>
    %732 = arith.addf %731, %730 : vector<2x32xf32>
    %733 = arith.divf %731, %732 : vector<2x32xf32>
    %cst_268 = arith.constant 4.000000e-01 : f32
    %734 = vector.broadcast %cst_268 : f32 to vector<2x32xf32>
    %735 = arith.mulf %734, %733 : vector<2x32xf32>
    %736 = arith.mulf %727, %715 : vector<2x32xf32>
    %737 = arith.truncf %736 : vector<2x32xf32> to vector<2x32xbf16>
    %cst_269 = arith.constant dense<0.000000e+00> : vector<2x32xf32>
    %738 = tpu.matmul %737, %52, %cst_269 {dimension_numbers = #tpu.dot_dimension_numbers<[1], [0], [0], [1], [0, 0, 1, 1], [], []>} : vector<2x32xbf16>, vector<32x32xbf16>, vector<2x32xf32> -> vector<2x32xf32>
    %c14_270 = arith.constant 14 : index
    %c0_271 = arith.constant 0 : index
    %739 = vector.load %arg10[%c14_270, %c0_271] : memref<32x32xf32, #tpu.memory_space<vmem>>, vector<2x32xf32>
    %740 = arith.addf %738, %739 : vector<2x32xf32>
    %741 = math.tanh %740 : vector<2x32xf32>
    %c14_272 = arith.constant 14 : index
    %c0_273 = arith.constant 0 : index
    %742 = vector.load %arg11[%c14_272, %c0_273] : memref<32x32xf32, #tpu.memory_space<vmem>>, vector<2x32xf32>
    %743 = arith.subf %741, %715 : vector<2x32xf32>
    %744 = arith.mulf %735, %743 : vector<2x32xf32>
    %745 = arith.mulf %742, %744 : vector<2x32xf32>
    %746 = arith.addf %715, %745 : vector<2x32xf32>
    %747 = arith.truncf %746 : vector<2x32xf32> to vector<2x32xbf16>
    %cst_274 = arith.constant dense<0.000000e+00> : vector<2x256xf32>
    %748 = tpu.matmul %747, %50, %cst_274 {dimension_numbers = #tpu.dot_dimension_numbers<[1], [0], [0], [1], [0, 0, 1, 1], [], []>} : vector<2x32xbf16>, vector<32x256xbf16>, vector<2x256xf32> -> vector<2x256xf32>
    %c30 = arith.constant 30 : index
    %c0_275 = arith.constant 0 : index
    %749 = vector.load %arg9[%c30, %c0_275] : memref<32x256xf32, #tpu.memory_space<vmem>>, vector<2x256xf32>
    %750 = arith.addf %748, %749 : vector<2x256xf32>
    %751 = vector.extract_strided_slice %750 {offsets = [0, 0], sizes = [2, 32], strides = [1, 1]} : vector<2x256xf32> to vector<2x32xf32>
    %752 = arith.negf %751 : vector<2x32xf32>
    %753 = math.exp %752 : vector<2x32xf32>
    %cst_276 = arith.constant 1.000000e+00 : f32
    %754 = vector.broadcast %cst_276 : f32 to vector<2x32xf32>
    %755 = arith.addf %754, %753 : vector<2x32xf32>
    %756 = arith.divf %754, %755 : vector<2x32xf32>
    %cst_277 = arith.constant 8.000000e-01 : f32
    %757 = vector.broadcast %cst_277 : f32 to vector<2x32xf32>
    %758 = arith.mulf %757, %756 : vector<2x32xf32>
    %759 = vector.extract_strided_slice %750 {offsets = [0, 128], sizes = [2, 32], strides = [1, 1]} : vector<2x256xf32> to vector<2x32xf32>
    %760 = arith.negf %759 : vector<2x32xf32>
    %761 = math.exp %760 : vector<2x32xf32>
    %cst_278 = arith.constant 1.000000e+00 : f32
    %762 = vector.broadcast %cst_278 : f32 to vector<2x32xf32>
    %763 = arith.addf %762, %761 : vector<2x32xf32>
    %764 = arith.divf %762, %763 : vector<2x32xf32>
    %cst_279 = arith.constant 4.000000e-01 : f32
    %765 = vector.broadcast %cst_279 : f32 to vector<2x32xf32>
    %766 = arith.mulf %765, %764 : vector<2x32xf32>
    %767 = arith.mulf %758, %746 : vector<2x32xf32>
    %768 = arith.truncf %767 : vector<2x32xf32> to vector<2x32xbf16>
    %cst_280 = arith.constant dense<0.000000e+00> : vector<2x32xf32>
    %769 = tpu.matmul %768, %54, %cst_280 {dimension_numbers = #tpu.dot_dimension_numbers<[1], [0], [0], [1], [0, 0, 1, 1], [], []>} : vector<2x32xbf16>, vector<32x32xbf16>, vector<2x32xf32> -> vector<2x32xf32>
    %c30_281 = arith.constant 30 : index
    %c0_282 = arith.constant 0 : index
    %770 = vector.load %arg10[%c30_281, %c0_282] : memref<32x32xf32, #tpu.memory_space<vmem>>, vector<2x32xf32>
    %771 = arith.addf %769, %770 : vector<2x32xf32>
    %772 = math.tanh %771 : vector<2x32xf32>
    %c30_283 = arith.constant 30 : index
    %c0_284 = arith.constant 0 : index
    %773 = vector.load %arg11[%c30_283, %c0_284] : memref<32x32xf32, #tpu.memory_space<vmem>>, vector<2x32xf32>
    %774 = arith.subf %772, %746 : vector<2x32xf32>
    %775 = arith.mulf %766, %774 : vector<2x32xf32>
    %776 = arith.mulf %773, %775 : vector<2x32xf32>
    %777 = arith.addf %746, %776 : vector<2x32xf32>
    %c14_285 = arith.constant 14 : index
    %c0_286 = arith.constant 0 : index
    %778 = vector.load %arg7[%c14_285, %c0_286] : memref<16x32xf32, #tpu.memory_space<vmem>>, vector<2x32xf32>
    tpu.vector_store %arg7[%c14_285, %c0_286], %777 {strides = array<i32>} : memref<16x32xf32, #tpu.memory_space<vmem>>, vector<2x32xf32>,
    return
  }
  func.func @transform_0(%arg0: i32) -> (i32, i32) {
    %c0_i32 = arith.constant 0 : i32
    %c0_i32_0 = arith.constant 0 : i32
    %c0_i32_1 = arith.constant 0 : i32
    return %c0_i32, %c0_i32_0 : i32, i32
  }
  func.func @transform_1(%arg0: i32) -> (i32, i32) {
    %c0_i32 = arith.constant 0 : i32
    %c0_i32_0 = arith.constant 0 : i32
    %c0_i32_1 = arith.constant 0 : i32
    return %c0_i32, %c0_i32_0 : i32, i32
  }
  func.func @transform_2(%arg0: i32) -> (i32, i32, i32) {
    %c0_i32 = arith.constant 0 : i32
    %c0_i32_0 = arith.constant 0 : i32
    %c0_i32_1 = arith.constant 0 : i32
    %c0_i32_2 = arith.constant 0 : i32
    return %c0_i32, %c0_i32_0, %c0_i32_1 : i32, i32, i32
  }
  func.func @transform_3(%arg0: i32) -> (i32, i32, i32) {
    %c0_i32 = arith.constant 0 : i32
    %c0_i32_0 = arith.constant 0 : i32
    %c0_i32_1 = arith.constant 0 : i32
    %c0_i32_2 = arith.constant 0 : i32
    return %c0_i32, %c0_i32_0, %c0_i32_1 : i32, i32, i32
  }
  func.func @transform_4(%arg0: i32) -> (i32, i32) {
    %c0_i32 = arith.constant 0 : i32
    %c0_i32_0 = arith.constant 0 : i32
    %c0_i32_1 = arith.constant 0 : i32
    return %c0_i32, %c0_i32_0 : i32, i32
  }
  func.func @transform_5(%arg0: i32) -> (i32, i32) {
    %c0_i32 = arith.constant 0 : i32
    %c0_i32_0 = arith.constant 0 : i32
    %c0_i32_1 = arith.constant 0 : i32
    return %c0_i32, %c0_i32_0 : i32, i32
  }
  func.func @transform_6(%arg0: i32) -> (i32, i32) {
    %c0_i32 = arith.constant 0 : i32
    %c0_i32_0 = arith.constant 0 : i32
    %c0_i32_1 = arith.constant 0 : i32
    return %c0_i32, %c0_i32_0 : i32, i32
  }
}

</mosaic_0001>

<bundles_post_ra>
// kernel: continuous_gru_forward.1
= control target key start
LH: loop header
LB: loop body
LE: loop exit
PB: predicated region body
PF: predicated region fallthrough
CT: control target
= control target key end

     0   :  { %v126_v0 = vlaneseq  ;;  %v3540_v2 = vmov 0   ;;  %vm41_vm0 = vcmask 1043456   ;;  %vm34_vm1 = vcmask 31744   ;;  %s3543_s11 = smov 64   ;;  %s3544_s12 = smov 96   ;;  %s4307_s2 = inlined_call_operand.vmem [shape: bf16[2,32,256], index: 2, kind: input, shape index: {}]   ;;  %s4308_s5 = inlined_call_operand.vmem [shape: f32[16,256], index: 5, kind: input, shape index: {}]   ;;  %s4309_s0 = inlined_call_operand.vmem [shape: f32[16,256], index: 0, kind: input, shape index: {}]   ;;  %s4310_s1 = inlined_call_operand.vmem [shape: f32[16,4], index: 1, kind: input, shape index: {}]   ;;  %s4311_s3 = inlined_call_operand.vmem [shape: bf16[2,32,32], index: 3, kind: input, shape index: {}]   ;;  %s4312_s4 = inlined_call_operand.vmem [shape: bf16[32,96], index: 4, kind: input, shape index: {}]   ;;  %s4313_s6 = inlined_call_operand.vmem [shape: f32[16,32], index: 6, kind: output, shape index: {}]  }
   0x1   :  { %v3584_v1 = vld [vmem:[%s4307_s2 + $0x4] ss:$8 sps:$4 sm:$0xff]   ;;  %308 = vmatprep.mubr.bf16.mxu1 %v3540_v2  ;;  %v3590_v3 = vld [vmem:[%s4307_s2] ss:$8 sps:$4 sm:$0xff]   ;;  %v3596_v5 = vld [vmem:[%s4307_s2 + $0x14] ss:$8 sps:$4 sm:$0xff]  }
   0x2   :  { %v127_v4 = vshrl.u32 %v126_v0, 7  ;;  %276 = vmatprep.subr.bf16.mxu1 %v3584_v1  ;;  %v3601_v6 = vld [vmem:[%s4307_s2 + $0x10] ss:$8 sps:$4 sm:$0xff]   ;;  %v122_v7 = vld [vmem:[%s4308_s5] ss:$8 sm:$0x3] }
   0x3   :  { %277 = vmatpush1.bf16.msra.mxu1 %v3590_v3  ;;  %v2922_v8 = vld [vmem:[%s4308_s5 + $0x2] ss:$8 sm:$0x3]  ;;  %v161_v21 = vld [vmem:[%s4308_s5 + $0x10] ss:$0 sm:$0xff]  ;;  %v3541_v29 = vmov 0.0  }
   0x4   :  { %278 = vmatprep.subr.bf16.mxu1 %v3596_v5  ;;  %v3614_v9 = vld [vmem:[%s4309_s0] sm:$0xff]  ;;  %v3616_v10 = vsub.s32 0, %v127_v4  ;;  %v3630_v15 = vsub.s32 1, %v127_v4  ;;  %v3638_v17 = vld [vmem:[%s4309_s0 + $0x8] sm:$0xff]  ;;  %v215_v22 = vld [vmem:[%s4308_s5 + $0x11] ss:$0 sm:$0xff] }
   0x5   :  { %v169_v23 = vmul.f32 %v161_v21, %v3614_v9  ;;  %v222_v24 = vmul.f32 %v215_v22, %v3614_v9  ;;  %v28_v25 = vld [vmem:[%s4308_s5 + $0x10] sm:$0xf0]  ;;  %v30_v27 = vld [vmem:[%s4310_s1] sm:$0xff]  ;;  %v31_v28 = vld [vmem:[%s4310_s1 + $0x8] sm:$0xff]  ;;  %vm166_vm2 = vcmask 261120   ;;  %vm3542_vm3 = vmmov 0  }
   0x6   :  { %v3619_v11 = vrot.slane %v122_v7, %v3616_v10  ;;  %v3622_v12 = vrot.slane %v2922_v8, %v3616_v10  ;;  %v3633_v16 = vrot.slane %v122_v7, %v3630_v15  ;;  %v3643_v19 = vrot.slane %v2922_v8, %v3630_v15  ;;  %3098 = vmatprep.mubr.msk.f32.mxu0 %vm34_vm1, %v30_v27  ;;  %v3667_v30 = vld [vmem:[%s4311_s3] sm:$0xff]   ;;  %v3674_v32 = vld [vmem:[%s4311_s3 + $0x8] sm:$0xff]   ;;  %v29_v51 = vld [vmem:[%s4308_s5 + $0x12] ss:$0 sm:$0xff]  ;;  %s3545_s13 = smov 32  }
   0x7   :  { %279 = vmatpush1.bf16.msra.mxu1 %v3601_v6  ;;  %3309 = vtanh.f32 %v169_v23  ;;  %v33_v26 = vrot.slane %v28_v25, 4  ;;  %v159_v34 = vld [vmem:[%s4308_s5 + $0x4] ss:$0 sm:$0xff]  ;;  %v160_v35 = vld [vmem:[%s4308_s5 + $0x6] ss:$0 sm:$0xff]  ;;  %vm119_vm4 = vcmask 785408  }
   0x8   :  { %v136_v13 = vmul.f32 %v3619_v11, %v3614_v9  ;;  %v137_v18 = vmul.f32 %v3633_v16, %v3638_v17  ;;  %3311 = vtanh.f32 %v222_v24  ;;  %v162_v36 = vmul.f32 %v159_v34, %v3614_v9  ;;  %v3699_v56 = vld [vmem:[%s4307_s2 + $0x24] ss:$8 sps:$4 sm:$0xff]   ;;  %v3704_v57 = vld [vmem:[%s4307_s2 + $0x20] ss:$8 sps:$4 sm:$0xff]   ;;  %v3711_v58 = vld [vmem:[%s4307_s2 + $0x34] ss:$8 sps:$4 sm:$0xff]  }
   0x9   :  { %3096 = vmatprep.subr.msk.mxu0 %vm41_vm0, %v33_v26  ;;  %420 = vmatprep.subr.bf16.mxu1 %v3699_v56  ;;  %v3716_v59 = vld [vmem:[%s4307_s2 + $0x30] ss:$8 sps:$4 sm:$0xff]   ;;  %v2923_v60 = vld [vmem:[%s4308_s5 + $0x1] ss:$8 sm:$0x3]  ;;  %vm539_vm5 = vcmask 254976  }
   0xa   :  { %309 = vmatmul.mubr.bf16.vlgmr.msra.gmra.mrb[0].mxu1 %v3540_v2  ;;  %v151_v14 = vadd.f32 %v3622_v12, %v136_v13  ;;  %v152_v20 = vadd.f32 %v3643_v19, %v137_v18  ;;  %3097 = vmatpush3.msk.msra.mxu0 %vm41_vm0, %v33_v26  ;;  %v164_v37 = vadd.f32 %v162_v36, %v160_v35  ;;  %v2924_v61 = vld [vmem:[%s4308_s5 + $0x3] ss:$8 sm:$0x3] }
   0xb   :  { %452 = vmatprep.mubr.bf16.mxu1 %v3540_v2  ;;  %3099 = vmatmul.mubr.msk.f32.vlgmr.msra.gmra.mrb[0].mxu0 %vm34_vm1, %v31_v28  ;;  %v3728_v62 = vrot.slane %v2923_v60, %v3616_v10  ;;  %v3731_v63 = vrot.slane %v2924_v61, %v3616_v10  ;;  %v3744_v35 = vrot.slane %v2923_v60, %v3630_v15  ;;  %v3791_v60 = vld [vmem:[%s4312_s4 + $0x8] sm:$0xff]  }
   0xc   :  { %155 = vst [vmem:[#allocation3] sm:$0xff] %v151_v14  ;;  %156 = vst [vmem:[#allocation3 + $0x8] sm:$0xff] %v152_v20  ;;  %3101 = vmatprep.subr.bf16.mxu0 %v3541_v29  ;;  %3105 = vmatprep.mubr.msk.bf16.mxu0 %vm3542_vm3, %v3541_v29 }
   0xd   :  { %3102 = vmatpush3.bf16.msra.mxu0 %v3667_v30  ;;  %167 = vst.msk [vmem:[#allocation4] sm:$0xff] %vm166_vm2, %v164_v37  ;;  %421 = vmatpush1.bf16.msra.mxu1 %v3704_v57  ;;  %v190_v0 = vmul.f32 %v3728_v62, %v3614_v9  ;;  %v191_v36 = vmul.f32 %v3744_v35, %v3638_v17  ;;  %v214_v17 = vld [vmem:[%s4308_s5 + $0x7] ss:$0 sm:$0xff] }
   0xe   :  { %3103 = vmatprep.subr.bf16.mxu0 %v3541_v29  ;;  %422 = vmatprep.subr.bf16.mxu1 %v3711_v58  ;;  %v3749_v37 = vrot.slane %v2924_v61, %v3630_v15  ;;  %v213_v15 = vld [vmem:[%s4308_s5 + $0x5] ss:$0 sm:$0xff] }
   0xf   :  { %v205_v4 = vadd.f32 %v3731_v63, %v190_v0 }
  0x11   :  { %v3310_v31 = vpop.eup %3309  ;;  %3104 = vmatpush3.bf16.msra.mxu0 %v3674_v32  ;;  %423 = vmatpush1.bf16.msra.mxu1 %v3716_v59  ;;  %209 = vst [vmem:[#allocation3 + $0x20] sm:$0xff] %v205_v4 }
  0x12   :  { %v3312_v33 = vpop.eup %3311  ;;  %173 = vst.msk [vmem:[#allocation5] sm:$0xff] %vm166_vm2, %v3310_v31  ;;  %3109 = vmatprep.subr.bf16.mxu0 %v3541_v29  ;;  %3117 = vmatprep.subr.bf16.mxu1 %v3541_v29 }
  0x13   :  { %226 = vst.msk [vmem:[#allocation5 + $0x10] sm:$0xff] %vm166_vm2, %v3312_v33  ;;  %v251_v38 = vld [vmem:[#allocation3] sm:$0x3]  ;;  %v252_v7 = vld [vmem:[#allocation3 + $0x8] sm:$0x3] }
  0x14   :  { %v333_v20 = vld [vmem:[#allocation4] sm:$0x3] }
  0x19   :  { %v390_v28 = vld [vmem:[#allocation5] sm:$0x3] }
  0xdd   :  { %v310_v39 = vpop.f32.mrb[0].mxu1 }
  0xde   :  { %v311_v40 = vadd.f32 %v310_v39, %v251_v38  ;;  %v312_v41 = vpop.f32.mrb[1].mxu1  ;;  %v3100_v52 = vpop.f32.mrb[0].mxu0  ;;  %v206_v38 = vadd.f32 %v3749_v37, %v191_v36  ;;  %v3755_v39 = vld [vmem:[%s4311_s3 + $0x10] sm:$0xff]  }
  0xdf   :  { %v314_v42 = vpop.f32.mrb[2].mxu1  ;;  %v116_v53 = vadd.f32 %v3100_v52, %v29_v51  ;;  %v110_v54 = vpop.f32.mrb[1].mxu0  ;;  %v313_v8 = vadd.f32 %v312_v41, %v252_v7  ;;  %v216_v41 = vmul.f32 %v213_v15, %v3614_v9  ;;  %v3784_v9 = vld [vmem:[%s4312_s4] sm:$0xff]  }
  0xe0   :  { %v2937_v43 = vmul.f32 -1.442695, %v311_v40  ;;  %v315_v44 = vpop.f32.mrb[3].mxu1  ;;  %v111_v55 = vadd.f32 %v110_v54, %v29_v51  ;;  %210 = vst [vmem:[#allocation3 + $0x28] sm:$0xff] %v206_v38  ;;  %v3762_v40 = vld [vmem:[%s4311_s3 + $0x18] sm:$0xff]  }
  0xe1   :  { %121 = vst.msk [vmem:[#allocation2 + $0x8] sm:$0xff] %vm119_vm4, %v116_v53  ;;  %v2938_v13 = vmul.f32 -1.442695, %v313_v8  ;;  %v218_v42 = vadd.f32 %v216_v41, %v214_v17 }
  0xe2   :  { %3313 = vpow2.f32 %v2937_v43  ;;  %120 = vst.msk [vmem:[#allocation2] sm:$0xff] %vm119_vm4, %v111_v55  ;;  %v395_v43 = vld [vmem:[#allocation3 + $0x20] sm:$0x3] }
  0xe3   :  { %220 = vst.msk [vmem:[#allocation4 + $0x10] sm:$0xff] %vm166_vm2, %v218_v42 }
  0xe7   :  { %v396_v61 = vld [vmem:[#allocation3 + $0x28] sm:$0x3] }
  0xe9   :  { %v541_v42 = vld [vmem:[#allocation2] sm:$0x3] }
  0xec   :  { %v3314_v45 = vpop.eup %3313 }
  0xed   :  { %v320_v46 = vadd.f32 1.0, %v3314_v45 }
  0xef   :  { %3315 = vrcp.f32 %v320_v46 }
  0xf0   :  { %3317 = vpow2.f32 %v2938_v13  ;;  %v477_v13 = vld [vmem:[#allocation4 + $0x10] sm:$0x3] }
  0xf9   :  { %v3316_v47 = vpop.eup %3315 }
  0xfa   :  { %v323_v48 = vmul.f32 0.8, %v3316_v47  ;;  %v3318_v14 = vpop.eup %3317 }
  0xfb   :  { %v327_v18 = vadd.f32 1.0, %v3318_v14 }
  0xfc   :  { %v331_v49 = vmul.f32 0.0, %v323_v48 }
  0xfd   :  { %3319 = vrcp.f32 %v327_v18 }
  0xfe   :  { %v332_v50 = vpack.c.bf16 %v331_v49, %v331_v49 }
 0x100   :  { %3106 = vmatmul.mubr.msk.bf16.vlgmr.msra.gmra.mrb[4].mxu0 %vm166_vm2, %v332_v50 }
 0x101   :  { %3113 = vmatprep.mubr.msk.bf16.mxu0 %vm3542_vm3, %v3541_v29  ;;  %3110 = vmatpush3.bf16.msra.mxu0 %v3755_v39 }
 0x102   :  { %3111 = vmatprep.subr.bf16.mxu0 %v3541_v29 }
 0x105   :  { %3112 = vmatpush3.bf16.msra.mxu0 %v3762_v40 }
 0x106   :  { %643 = vmatprep.subr.bf16.mxu0 %v3584_v1 }
 0x107   :  { %v3320_v25 = vpop.eup %3319 }
 0x108   :  { %v330_v26 = vmul.f32 0.4, %v3320_v25 }
 0x1d3   :  { %v383_v21 = vpop.f32.mrb[4].mxu0 }
 0x1d4   :  { %v384_v22 = vadd.f32 %v383_v21, %v333_v20  ;;  %v3107_v23 = vpop.f32.mrb[5].mxu0 }
 0x1d5   :  { %v386_v24 = vpop.f32.mrb[6].mxu0 }
 0x1d6   :  { %3321 = vtanh.f32 %v384_v22  ;;  %v3108_v10 = vpop.f32.mrb[7].mxu0 }
 0x1e0   :  { %v3322_v27 = vpop.eup %3321 }
 0x1e1   :  { %v391_v31 = vmul.f32 %v3322_v27, %v330_v26  ;;  %v534_v26 = vld [vmem:[#allocation5 + $0x10] sm:$0x3] }
 0x1e3   :  { %v3736_v33 = vmul.f32 %v391_v31, %v390_v28 }
 0x1e5   :  { %v394_v34 = vpack.c.bf16 %v3736_v33, %v3736_v33 }
 0x1e7   :  { %2946 = vmatmul.mubr.msk.bf16.vlgmr.msra.gmra.mrb[4].mxu1 %vm166_vm2, %v394_v34 }
 0x1e8   :  { %3121 = vmatprep.mubr.msk.bf16.mxu1 %vm3542_vm3, %v3541_v29  ;;  %3118 = vmatpush3.bf16.msra.mxu1 %v3784_v9 }
 0x1e9   :  { %3119 = vmatprep.subr.bf16.mxu1 %v3541_v29 }
 0x1ec   :  { %3120 = vmatpush3.bf16.msra.mxu1 %v3791_v60 }
 0x1ed   :  { %3125 = vmatprep.subr.bf16.mxu1 %v3541_v29 }
 0x2ba   :  { %v454_v44 = vpop.f32.mrb[4].mxu1 }
 0x2bb   :  { %v455_v45 = vadd.f32 %v454_v44, %v395_v43  ;;  %v456_v46 = vpop.f32.mrb[5].mxu1 }
 0x2bc   :  { %v458_v47 = vpop.f32.mrb[6].mxu1  ;;  %v457_v0 = vadd.f32 %v456_v46, %v396_v61 }
 0x2bd   :  { %v2947_v48 = vmul.f32 -1.442695, %v455_v45  ;;  %v459_v49 = vpop.f32.mrb[7].mxu1 }
 0x2be   :  { %v2948_v4 = vmul.f32 -1.442695, %v457_v0 }
 0x2bf   :  { %3323 = vpow2.f32 %v2947_v48 }
 0x2c9   :  { %v3324_v50 = vpop.eup %3323 }
 0x2ca   :  { %v464_v51 = vadd.f32 1.0, %v3324_v50 }
 0x2cc   :  { %3325 = vrcp.f32 %v464_v51 }
 0x2cd   :  { %3327 = vpow2.f32 %v2948_v4 }
 0x2d6   :  { %v3326_v52 = vpop.eup %3325 }
 0x2d7   :  { %v467_v53 = vmul.f32 0.8, %v3326_v52  ;;  %v3328_v7 = vpop.eup %3327 }
 0x2d8   :  { %v471_v8 = vadd.f32 1.0, %v3328_v7 }
 0x2d9   :  { %v475_v54 = vmul.f32 %v467_v53, %v3736_v33 }
 0x2da   :  { %3329 = vrcp.f32 %v471_v8 }
 0x2db   :  { %v476_v55 = vpack.c.bf16 %v475_v54, %v475_v54 }
 0x2dd   :  { %3114 = vmatmul.mubr.msk.bf16.vlgmr.msra.gmra.mrb[8].mxu0 %vm166_vm2, %v476_v55 }
 0x2de   :  { %644 = vmatpush1.bf16.msra.mxu0 %v3590_v3  ;;  %675 = vmatprep.mubr.bf16.mxu0 %v3540_v2 }
 0x2df   :  { %645 = vmatprep.subr.bf16.mxu0 %v3596_v5 }
 0x2e2   :  { %646 = vmatpush1.bf16.msra.mxu0 %v3601_v6 }
 0x2e3   :  { %773 = vmatprep.subr.bf16.mxu0 %v3699_v56 }
 0x2e4   :  { %v3330_v23 = vpop.eup %3329 }
 0x2e5   :  { %v474_v10 = vmul.f32 0.4, %v3330_v23 }
 0x3b0   :  { %v527_v14 = vpop.f32.mrb[8].mxu0 }
 0x3b1   :  { %v528_v18 = vadd.f32 %v527_v14, %v477_v13  ;;  %v3115_v20 = vpop.f32.mrb[9].mxu0  ;;  %v629_v13 = vld [vmem:[#allocation3] sm:$0xc] }
 0x3b2   :  { %v530_v21 = vpop.f32.mrb[10].mxu0  ;;  %v636_v14 = vrot.slane %v629_v13, 2 }
 0x3b3   :  { %3331 = vtanh.f32 %v528_v18  ;;  %v3116_v22 = vpop.f32.mrb[11].mxu0 }
 0x3bd   :  { %v3332_v24 = vpop.eup %3331 }
 0x3be   :  { %v535_v25 = vsub.f32 %v3332_v24, %v3736_v33 }
 0x3c0   :  { %v536_v27 = vmul.f32 %v535_v25, %v474_v10 }
 0x3c2   :  { %v537_v28 = vmul.f32 %v536_v27, %v534_v26 }
 0x3c4   :  { %v538_v31 = vadd.f32 %v537_v28, %v3736_v33  ;;  %v3811_v33 = vld [vmem:[%s4308_s5 + $0x13] ss:$0 sm:$0xff] }
 0x3c6   :  { %v542_v34 = vpack.c.bf16 %v538_v31, %v538_v31  ;;  %540 = vst.msk [vmem:[%s4313_s6] sm:$0x3] %vm539_vm5, %v538_v31 }
 0x3c8   :  { %3122 = vmatmul.mubr.msk.bf16.vlgmr.msra.gmra.mrb[8].mxu1 %vm166_vm2, %v542_v34 }
 0x3c9   :  { %3126 = vmatpush3.bf16.msra.mxu1 %v3667_v30  ;;  %3129 = vmatprep.mubr.msk.bf16.mxu1 %vm3542_vm3, %v3541_v29 }
 0x3ca   :  { %3127 = vmatprep.subr.bf16.mxu1 %v3541_v29 }
 0x3cd   :  { %3128 = vmatpush3.bf16.msra.mxu1 %v3674_v32 }
 0x3ce   :  { %3133 = vmatprep.subr.bf16.mxu1 %v3541_v29 }
 0x49b   :  { %v592_v36 = vpop.f32.mrb[8].mxu1 }
 0x49c   :  { %v593_v38 = vadd.f32 %v592_v36, %v3811_v33  ;;  %v3123_v15 = vpop.f32.mrb[9].mxu1  ;;  %v630_v36 = vld [vmem:[#allocation3 + $0x8] sm:$0xc] }
 0x49d   :  { %v595_v17 = vpop.f32.mrb[10].mxu1 }
 0x49e   :  { %606 = vrot.lane.b32.xlu0 %v593_v38, %s3543_s11  ;;  %v3124_v41 = vpop.f32.mrb[11].mxu1  ;;  %v598_v43 = vadd.f32 %v593_v38, %v541_v42  ;;  %v637_v38 = vrot.slane %v630_v36, 2 }
 0x4a0   :  { %v2955_v44 = vmul.f32 -1.442695, %v598_v43  ;;  %v704_v43 = vld [vmem:[#allocation4 + $0x2] sm:$0x3] }
 0x4a2   :  { %3333 = vpow2.f32 %v2955_v44 }
 0x4ac   :  { %v3334_v45 = vpop.eup %3333 }
 0x4ad   :  { %v602_v46 = vadd.f32 1.0, %v3334_v45 }
 0x4af   :  { %3335 = vrcp.f32 %v602_v46 }
 0x4b9   :  { %v3336_v47 = vpop.eup %3335 }
 0x4ba   :  { %v616_v54 = vsub.f32 1.0, %v3336_v47 }
 0x510   :  { %v607_v48 = vpop.permute.xlu0 %606 }
 0x511   :  { %v609_v49 = vmul.f32 %v3336_v47, %v607_v48 }
 0x513   :  { %611 = vrot.lane.b32.xlu0 %v609_v49, %s3543_s11 }
 0x585   :  { %v612_v50 = vpop.permute.xlu0 %611 }
 0x586   :  { %v614_v51 = vadd.f32 %v612_v50, %v541_v42 }
 0x588   :  { %3337 = vtanh.f32 %v614_v51 }
 0x592   :  { %v3338_v52 = vpop.eup %3337 }
 0x593   :  { %618 = vrot.lane.b32.xlu1 %v3338_v52, %s3544_s12 }
 0x597   :  { %623 = vrot.lane.b32.xlu1 %v538_v31, %s3545_s13 }
 0x605   :  { %v619_v53 = vpop.permute.xlu1 %618 }
 0x606   :  { %v621_v61 = vmul.f32 %v619_v53, %v616_v54  ;;  %v749_v53 = vld [vmem:[#allocation5 + $0x2] sm:$0x3] }
 0x609   :  { %v624_v55 = vpop.permute.xlu1 %623 }
 0x60a   :  { %v626_v0 = vmul.f32 %v3336_v47, %v624_v55 }
 0x60c   :  { %v627_v4 = vadd.f32 %v626_v0, %v621_v61 }
 0x60e   :  { %699 = vrot.lane.b32.xlu1 %v627_v4, %s3544_s12  ;;  %v628_v7 = vpack.c.bf16 %v627_v4, %v627_v4 }
 0x610   :  { %632 = vrot.lane.b32.xlu0 %v628_v7, %s3544_s12 }
 0x680   :  { %v700_v28 = vpop.permute.xlu1 %699 }
 0x682   :  { %v633_v8 = vpop.permute.xlu0 %632 }
 0x683   :  { %2956 = vmatmul.mubr.msk.bf16.vlgmr.msra.gmra.mrb[12].mxu0 %vm166_vm2, %v633_v8 }
 0x684   :  { %774 = vmatpush1.bf16.msra.mxu0 %v3704_v57  ;;  %805 = vmatprep.mubr.bf16.mxu0 %v3540_v2 }
 0x685   :  { %775 = vmatprep.subr.bf16.mxu0 %v3711_v58 }
 0x688   :  { %776 = vmatpush1.bf16.msra.mxu0 %v3716_v59 }
 0x689   :  { %3141 = vmatprep.subr.bf16.mxu0 %v3541_v29 }
 0x756   :  { %v677_v18 = vpop.f32.mrb[12].mxu0 }
 0x757   :  { %v678_v20 = vadd.f32 %v677_v18, %v636_v14  ;;  %v679_v21 = vpop.f32.mrb[13].mxu0 }
 0x758   :  { %v681_v22 = vpop.f32.mrb[14].mxu0  ;;  %v680_v15 = vadd.f32 %v679_v21, %v637_v38 }
 0x759   :  { %v2957_v23 = vmul.f32 -1.442695, %v678_v20  ;;  %v682_v24 = vpop.f32.mrb[15].mxu0 }
 0x75a   :  { %v2958_v17 = vmul.f32 -1.442695, %v680_v15 }
 0x75b   :  { %3339 = vpow2.f32 %v2957_v23 }
 0x765   :  { %v3340_v10 = vpop.eup %3339 }
 0x766   :  { %v687_v25 = vadd.f32 1.0, %v3340_v10 }
 0x768   :  { %3341 = vrcp.f32 %v687_v25 }
 0x769   :  { %3343 = vpow2.f32 %v2958_v17 }
 0x772   :  { %v3342_v26 = vpop.eup %3341 }
 0x773   :  { %v690_v27 = vmul.f32 0.8, %v3342_v26  ;;  %v3344_v41 = vpop.eup %3343 }
 0x774   :  { %v694_v42 = vadd.f32 1.0, %v3344_v41 }
 0x775   :  { %v702_v31 = vmul.f32 %v700_v28, %v690_v27 }
 0x776   :  { %3345 = vrcp.f32 %v694_v42  ;;  %v834_v42 = vld [vmem:[#allocation4 + $0x12] sm:$0x3] }
 0x777   :  { %v703_v34 = vpack.c.bf16 %v702_v31, %v702_v31 }
 0x779   :  { %3130 = vmatmul.mubr.msk.bf16.vlgmr.msra.gmra.mrb[12].mxu1 %vm166_vm2, %v703_v34  ;;  %v760_v34 = vld [vmem:[#allocation3 + $0x28] sm:$0xc] }
 0x77a   :  { %3134 = vmatpush3.bf16.msra.mxu1 %v3755_v39  ;;  %3137 = vmatprep.mubr.msk.bf16.mxu1 %vm3542_vm3, %v3541_v29  ;;  %v767_v36 = vrot.slane %v760_v34, 2 }
 0x77b   :  { %3135 = vmatprep.subr.bf16.mxu1 %v3541_v29 }
 0x77e   :  { %3136 = vmatpush3.bf16.msra.mxu1 %v3762_v40 }
 0x77f   :  { %982 = vmatprep.subr.bf16.mxu1 %v3584_v1 }
 0x780   :  { %v3346_v49 = vpop.eup %3345 }
 0x781   :  { %v697_v51 = vmul.f32 0.4, %v3346_v49 }
 0x84c   :  { %v742_v44 = vpop.f32.mrb[12].mxu1 }
 0x84d   :  { %v743_v45 = vadd.f32 %v742_v44, %v704_v43  ;;  %v3131_v46 = vpop.f32.mrb[13].mxu1 }
 0x84e   :  { %v745_v47 = vpop.f32.mrb[14].mxu1 }
 0x84f   :  { %3347 = vtanh.f32 %v743_v45  ;;  %v3132_v48 = vpop.f32.mrb[15].mxu1 }
 0x859   :  { %v3348_v50 = vpop.eup %3347 }
 0x85a   :  { %v750_v52 = vsub.f32 %v3348_v50, %v700_v28 }
 0x85c   :  { %v751_v54 = vmul.f32 %v750_v52, %v697_v51  ;;  %v879_v52 = vld [vmem:[#allocation5 + $0x12] sm:$0x3] }
 0x85e   :  { %v752_v55 = vmul.f32 %v751_v54, %v749_v53 }
 0x860   :  { %754 = vrot.lane.b32.xlu0 %v752_v55, %s3545_s13 }
 0x8d2   :  { %v755_v61 = vpop.permute.xlu0 %754 }
 0x8d3   :  { %v757_v0 = vadd.f32 %v755_v61, %v627_v4  ;;  %v759_v4 = vld [vmem:[#allocation3 + $0x20] sm:$0xc] }
 0x8d4   :  { %v766_v13 = vrot.slane %v759_v4, 2 }
 0x8d5   :  { %829 = vrot.lane.b32.xlu0 %v757_v0, %s3544_s12  ;;  %v758_v7 = vpack.c.bf16 %v757_v0, %v757_v0 }
 0x8d7   :  { %762 = vrot.lane.b32.xlu1 %v758_v7, %s3544_s12 }
 0x947   :  { %v830_v27 = vpop.permute.xlu0 %829 }
 0x949   :  { %v763_v8 = vpop.permute.xlu1 %762 }
 0x94a   :  { %2960 = vmatmul.mubr.msk.bf16.vlgmr.msra.gmra.mrb[16].mxu0 %vm166_vm2, %v763_v8 }
 0x94b   :  { %3142 = vmatpush3.bf16.msra.mxu0 %v3784_v9  ;;  %3145 = vmatprep.mubr.msk.bf16.mxu0 %vm3542_vm3, %v3541_v29 }
 0x94c   :  { %3143 = vmatprep.subr.bf16.mxu0 %v3541_v29 }
 0x94f   :  { %3144 = vmatpush3.bf16.msra.mxu0 %v3791_v60 }
 0x950   :  { %3149 = vmatprep.subr.bf16.mxu0 %v3541_v29 }
 0xa1d   :  { %v807_v14 = vpop.f32.mrb[16].mxu0 }
 0xa1e   :  { %v808_v18 = vadd.f32 %v807_v14, %v766_v13  ;;  %v809_v20 = vpop.f32.mrb[17].mxu0 }
 0xa1f   :  { %v811_v21 = vpop.f32.mrb[18].mxu0  ;;  %v810_v38 = vadd.f32 %v809_v20, %v767_v36  ;;  %v893_v20 = vld [vmem:[#allocation2 + $0x2] sm:$0x3] }
 0xa20   :  { %v2961_v22 = vmul.f32 -1.442695, %v808_v18  ;;  %v812_v23 = vpop.f32.mrb[19].mxu0 }
 0xa21   :  { %v2962_v15 = vmul.f32 -1.442695, %v810_v38 }
 0xa22   :  { %3349 = vpow2.f32 %v2961_v22 }
 0xa2c   :  { %v3350_v24 = vpop.eup %3349 }
 0xa2d   :  { %v817_v10 = vadd.f32 1.0, %v3350_v24 }
 0xa2f   :  { %3351 = vrcp.f32 %v817_v10 }
 0xa30   :  { %3353 = vpow2.f32 %v2962_v15 }
 0xa39   :  { %v3352_v25 = vpop.eup %3351 }
 0xa3a   :  { %v820_v26 = vmul.f32 0.8, %v3352_v25  ;;  %v3354_v17 = vpop.eup %3353 }
 0xa3b   :  { %v824_v41 = vadd.f32 1.0, %v3354_v17 }
 0xa3c   :  { %v832_v28 = vmul.f32 %v830_v27, %v820_v26 }
 0xa3d   :  { %3355 = vrcp.f32 %v824_v41 }
 0xa3e   :  { %v833_v31 = vpack.c.bf16 %v832_v28, %v832_v28 }
 0xa40   :  { %3138 = vmatmul.mubr.msk.bf16.vlgmr.msra.gmra.mrb[16].mxu1 %vm166_vm2, %v833_v31 }
 0xa41   :  { %983 = vmatpush1.bf16.msra.mxu1 %v3590_v3  ;;  %1014 = vmatprep.mubr.bf16.mxu1 %v3540_v2 }
 0xa42   :  { %984 = vmatprep.subr.bf16.mxu1 %v3596_v5 }
 0xa45   :  { %985 = vmatpush1.bf16.msra.mxu1 %v3601_v6 }
 0xa46   :  { %1112 = vmatprep.subr.bf16.mxu1 %v3699_v56 }
 0xa47   :  { %v3356_v48 = vpop.eup %3355 }
 0xa48   :  { %v827_v50 = vmul.f32 0.4, %v3356_v48 }
 0xb13   :  { %v872_v43 = vpop.f32.mrb[16].mxu1 }
 0xb14   :  { %v873_v44 = vadd.f32 %v872_v43, %v834_v42  ;;  %v3139_v45 = vpop.f32.mrb[17].mxu1  ;;  %v968_v43 = vld [vmem:[#allocation3] sm:$0x30] }
 0xb15   :  { %v875_v46 = vpop.f32.mrb[18].mxu1 }
 0xb16   :  { %3357 = vtanh.f32 %v873_v44  ;;  %v3140_v47 = vpop.f32.mrb[19].mxu1  ;;  %v975_v44 = vrot.slane %v968_v43, 4 }
 0xb20   :  { %v3358_v49 = vpop.eup %3357 }
 0xb21   :  { %v880_v51 = vsub.f32 %v3358_v49, %v830_v27 }
 0xb23   :  { %v881_v53 = vmul.f32 %v880_v51, %v827_v50 }
 0xb25   :  { %v882_v54 = vmul.f32 %v881_v53, %v879_v52 }
 0xb27   :  { %884 = vrot.lane.b32.xlu1 %v882_v54, %s3545_s13 }
 0xb99   :  { %v885_v55 = vpop.permute.xlu1 %884 }
 0xb9a   :  { %v3850_v61 = vadd.f32 %v885_v55, %v757_v0 }
 0xb9c   :  { %v894_v7 = vpack.c.bf16 %v3850_v61, %v3850_v61 }
 0xb9e   :  { %896 = vrot.lane.b32.xlu0 %v894_v7, %s3544_s12 }
 0xc10   :  { %v897_v8 = vpop.permute.xlu0 %896 }
 0xc11   :  { %3146 = vmatmul.mubr.msk.bf16.vlgmr.msra.gmra.mrb[20].mxu0 %vm166_vm2, %v897_v8 }
 0xc12   :  { %3150 = vmatpush3.bf16.msra.mxu0 %v3667_v30  ;;  %3153 = vmatprep.mubr.msk.bf16.mxu0 %vm3542_vm3, %v3541_v29 }
 0xc13   :  { %3151 = vmatprep.subr.bf16.mxu0 %v3541_v29 }
 0xc16   :  { %3152 = vmatpush3.bf16.msra.mxu0 %v3674_v32 }
 0xc17   :  { %3157 = vmatprep.subr.bf16.mxu0 %v3541_v29 }
 0xce4   :  { %v935_v0 = vpop.f32.mrb[20].mxu0 }
 0xce5   :  { %v936_v4 = vadd.f32 %v935_v0, %v3811_v33  ;;  %v3147_v13 = vpop.f32.mrb[21].mxu0  ;;  %v969_v0 = vld [vmem:[#allocation3 + $0x8] sm:$0x30] }
 0xce6   :  { %v938_v14 = vpop.f32.mrb[22].mxu0 }
 0xce7   :  { %949 = vrot.lane.b32.xlu1 %v936_v4, %s3543_s11  ;;  %v3148_v18 = vpop.f32.mrb[23].mxu0  ;;  %v941_v21 = vadd.f32 %v936_v4, %v893_v20  ;;  %v976_v4 = vrot.slane %v969_v0, 4 }
 0xce9   :  { %v2965_v22 = vmul.f32 -1.442695, %v941_v21  ;;  %v1043_v21 = vld [vmem:[#allocation4 + $0x4] sm:$0x3] }
 0xceb   :  { %3359 = vpow2.f32 %v2965_v22 }
 0xcf5   :  { %v3360_v23 = vpop.eup %3359 }
 0xcf6   :  { %v945_v24 = vadd.f32 1.0, %v3360_v23 }
 0xcf8   :  { %3361 = vrcp.f32 %v945_v24 }
 0xd02   :  { %v3362_v10 = vpop.eup %3361 }
 0xd03   :  { %v959_v34 = vsub.f32 1.0, %v3362_v10  ;;  %v965_v38 = vmul.f32 %v3362_v10, %v3850_v61 }
 0xd59   :  { %v950_v25 = vpop.permute.xlu1 %949 }
 0xd5a   :  { %v952_v26 = vmul.f32 %v3362_v10, %v950_v25 }
 0xd5c   :  { %954 = vrot.lane.b32.xlu0 %v952_v26, %s3543_s11 }
 0xdce   :  { %v955_v27 = vpop.permute.xlu0 %954 }
 0xdcf   :  { %v957_v28 = vadd.f32 %v955_v27, %v893_v20 }
 0xdd1   :  { %3363 = vtanh.f32 %v957_v28 }
 0xddb   :  { %v3364_v31 = vpop.eup %3363 }
 0xddc   :  { %961 = vrot.lane.b32.xlu1 %v3364_v31, %s3544_s12 }
 0xe4e   :  { %v962_v36 = vpop.permute.xlu1 %961 }
 0xe4f   :  { %v964_v15 = vmul.f32 %v962_v36, %v959_v34 }
 0xe51   :  { %v966_v17 = vadd.f32 %v965_v38, %v964_v15 }
 0xe53   :  { %1038 = vrot.lane.b32.xlu1 %v966_v17, %s3544_s12  ;;  %v967_v41 = vpack.c.bf16 %v966_v17, %v966_v17 }
 0xe55   :  { %971 = vrot.lane.b32.xlu0 %v967_v41, %s3544_s12 }
 0xec5   :  { %v1039_v55 = vpop.permute.xlu1 %1038 }
 0xec7   :  { %v972_v42 = vpop.permute.xlu0 %971 }
 0xec8   :  { %2966 = vmatmul.mubr.msk.bf16.vlgmr.msra.gmra.mrb[20].mxu1 %vm166_vm2, %v972_v42 }
 0xec9   :  { %1113 = vmatpush1.bf16.msra.mxu1 %v3704_v57  ;;  %1144 = vmatprep.mubr.bf16.mxu1 %v3540_v2 }
 0xeca   :  { %1114 = vmatprep.subr.bf16.mxu1 %v3711_v58 }
 0xecd   :  { %1115 = vmatpush1.bf16.msra.mxu1 %v3716_v59 }
 0xece   :  { %3165 = vmatprep.subr.bf16.mxu1 %v3541_v29 }
 0xf9b   :  { %v1016_v45 = vpop.f32.mrb[20].mxu1 }
 0xf9c   :  { %v1017_v46 = vadd.f32 %v1016_v45, %v975_v44  ;;  %v1018_v47 = vpop.f32.mrb[21].mxu1 }
 0xf9d   :  { %v1020_v48 = vpop.f32.mrb[22].mxu1  ;;  %v1019_v13 = vadd.f32 %v1018_v47, %v976_v4 }
 0xf9e   :  { %v2967_v49 = vmul.f32 -1.442695, %v1017_v46  ;;  %v1021_v50 = vpop.f32.mrb[23].mxu1 }
 0xf9f   :  { %v2968_v14 = vmul.f32 -1.442695, %v1019_v13 }
 0xfa0   :  { %3365 = vpow2.f32 %v2967_v49 }
 0xfaa   :  { %v3366_v51 = vpop.eup %3365 }
 0xfab   :  { %v1026_v52 = vadd.f32 1.0, %v3366_v51 }
 0xfad   :  { %3367 = vrcp.f32 %v1026_v52 }
 0xfae   :  { %3369 = vpow2.f32 %v2968_v14 }
 0xfb7   :  { %v3368_v53 = vpop.eup %3367 }
 0xfb8   :  { %v1029_v54 = vmul.f32 0.8, %v3368_v53  ;;  %v3370_v18 = vpop.eup %3369 }
 0xfb9   :  { %v1033_v20 = vadd.f32 1.0, %v3370_v18 }
 0xfba   :  { %v1041_v7 = vmul.f32 %v1039_v55, %v1029_v54 }
 0xfbb   :  { %3371 = vrcp.f32 %v1033_v20  ;;  %v1173_v20 = vld [vmem:[#allocation4 + $0x14] sm:$0x3] }
 0xfbc   :  { %v1042_v8 = vpack.c.bf16 %v1041_v7, %v1041_v7 }
 0xfbe   :  { %3154 = vmatmul.mubr.msk.bf16.vlgmr.msra.gmra.mrb[24].mxu0 %vm166_vm2, %v1042_v8  ;;  %v1099_v8 = vld [vmem:[#allocation3 + $0x28] sm:$0x30] }
 0xfbf   :  { %3158 = vmatpush3.bf16.msra.mxu0 %v3755_v39  ;;  %3161 = vmatprep.mubr.msk.bf16.mxu0 %vm3542_vm3, %v3541_v29  ;;  %v1106_v0 = vrot.slane %v1099_v8, 4 }
 0xfc0   :  { %3159 = vmatprep.subr.bf16.mxu0 %v3541_v29 }
 0xfc3   :  { %3160 = vmatpush3.bf16.msra.mxu0 %v3762_v40 }
 0xfc4   :  { %1321 = vmatprep.subr.bf16.mxu0 %v3584_v1  ;;  %v1088_v1 = vld [vmem:[#allocation5 + $0x4] sm:$0x3] }
 0xfc5   :  { %v3372_v26 = vpop.eup %3371 }
 0xfc6   :  { %v1036_v28 = vmul.f32 0.4, %v3372_v26 }
0x1091   :  { %v1081_v22 = vpop.f32.mrb[24].mxu0 }
0x1092   :  { %v1082_v23 = vadd.f32 %v1081_v22, %v1043_v21  ;;  %v3155_v24 = vpop.f32.mrb[25].mxu0 }
0x1093   :  { %v1084_v10 = vpop.f32.mrb[26].mxu0 }
0x1094   :  { %3373 = vtanh.f32 %v1082_v23  ;;  %v3156_v25 = vpop.f32.mrb[27].mxu0 }
0x109e   :  { %v3374_v27 = vpop.eup %3373 }
0x109f   :  { %v1089_v31 = vsub.f32 %v3374_v27, %v1039_v55 }
0x10a1   :  { %v1090_v34 = vmul.f32 %v1089_v31, %v1036_v28 }
0x10a3   :  { %v1091_v36 = vmul.f32 %v1090_v34, %v1088_v1 }
0x10a5   :  { %1093 = vrot.lane.b32.xlu0 %v1091_v36, %s3545_s13 }
0x1117   :  { %v1094_v38 = vpop.permute.xlu0 %1093 }
0x1118   :  { %v1096_v15 = vadd.f32 %v1094_v38, %v966_v17  ;;  %v1098_v17 = vld [vmem:[#allocation3 + $0x20] sm:$0x30] }
0x1119   :  { %v1105_v43 = vrot.slane %v1098_v17, 4  ;;  %v1232_v17 = vld [vmem:[#allocation2 + $0x4] sm:$0x3] }
0x111a   :  { %1168 = vrot.lane.b32.xlu0 %v1096_v15, %s3544_s12  ;;  %v1097_v41 = vpack.c.bf16 %v1096_v15, %v1096_v15 }
0x111c   :  { %1101 = vrot.lane.b32.xlu1 %v1097_v41, %s3544_s12 }
0x118c   :  { %v1169_v54 = vpop.permute.xlu0 %1168 }
0x118e   :  { %v1102_v42 = vpop.permute.xlu1 %1101 }
0x118f   :  { %2970 = vmatmul.mubr.msk.bf16.vlgmr.msra.gmra.mrb[24].mxu1 %vm166_vm2, %v1102_v42 }
0x1190   :  { %3166 = vmatpush3.bf16.msra.mxu1 %v3784_v9  ;;  %3169 = vmatprep.mubr.msk.bf16.mxu1 %vm3542_vm3, %v3541_v29 }
0x1191   :  { %3167 = vmatprep.subr.bf16.mxu1 %v3541_v29 }
0x1194   :  { %3168 = vmatpush3.bf16.msra.mxu1 %v3791_v60 }
0x1195   :  { %3173 = vmatprep.subr.bf16.mxu1 %v3541_v29 }
0x1262   :  { %v1146_v44 = vpop.f32.mrb[24].mxu1 }
0x1263   :  { %v1147_v45 = vadd.f32 %v1146_v44, %v1105_v43  ;;  %v1148_v46 = vpop.f32.mrb[25].mxu1 }
0x1264   :  { %v1150_v47 = vpop.f32.mrb[26].mxu1  ;;  %v1149_v4 = vadd.f32 %v1148_v46, %v1106_v0  ;;  %v1307_v0 = vld [vmem:[#allocation3] sm:$0xc0] }
0x1265   :  { %v2971_v48 = vmul.f32 -1.442695, %v1147_v45  ;;  %v1151_v49 = vpop.f32.mrb[27].mxu1 }
0x1266   :  { %v2972_v13 = vmul.f32 -1.442695, %v1149_v4  ;;  %v1314_v4 = vrot.slane %v1307_v0, 6 }
0x1267   :  { %3375 = vpow2.f32 %v2971_v48 }
0x1271   :  { %v3376_v50 = vpop.eup %3375 }
0x1272   :  { %v1156_v51 = vadd.f32 1.0, %v3376_v50 }
0x1274   :  { %3377 = vrcp.f32 %v1156_v51 }
0x1275   :  { %3379 = vpow2.f32 %v2972_v13 }
0x127e   :  { %v3378_v52 = vpop.eup %3377 }
0x127f   :  { %v1159_v53 = vmul.f32 0.8, %v3378_v52  ;;  %v3380_v14 = vpop.eup %3379 }
0x1280   :  { %v1163_v18 = vadd.f32 1.0, %v3380_v14 }
0x1281   :  { %v1171_v55 = vmul.f32 %v1169_v54, %v1159_v53 }
0x1282   :  { %3381 = vrcp.f32 %v1163_v18 }
0x1283   :  { %v1172_v7 = vpack.c.bf16 %v1171_v55, %v1171_v55 }
0x1285   :  { %3162 = vmatmul.mubr.msk.bf16.vlgmr.msra.gmra.mrb[28].mxu0 %vm166_vm2, %v1172_v7 }
0x1286   :  { %1322 = vmatpush1.bf16.msra.mxu0 %v3590_v3  ;;  %1353 = vmatprep.mubr.bf16.mxu0 %v3540_v2 }
0x1287   :  { %1323 = vmatprep.subr.bf16.mxu0 %v3596_v5 }
0x128a   :  { %1324 = vmatpush1.bf16.msra.mxu0 %v3601_v6 }
0x128b   :  { %1451 = vmatprep.subr.bf16.mxu0 %v3699_v56  ;;  %v1218_v56 = vld [vmem:[#allocation5 + $0x14] sm:$0x3] }
0x128c   :  { %v3382_v5 = vpop.eup %3381 }
0x128d   :  { %v1166_v6 = vmul.f32 0.4, %v3382_v5 }
0x1358   :  { %v1211_v21 = vpop.f32.mrb[28].mxu0 }
0x1359   :  { %v1212_v22 = vadd.f32 %v1211_v21, %v1173_v20  ;;  %v3163_v3 = vpop.f32.mrb[29].mxu0 }
0x135a   :  { %v1214_v23 = vpop.f32.mrb[30].mxu0 }
0x135b   :  { %3383 = vtanh.f32 %v1212_v22  ;;  %v3164_v24 = vpop.f32.mrb[31].mxu0 }
0x1365   :  { %v3384_v10 = vpop.eup %3383 }
0x1366   :  { %v1219_v25 = vsub.f32 %v3384_v10, %v1169_v54 }
0x1368   :  { %v1220_v26 = vmul.f32 %v1219_v25, %v1166_v6  ;;  %v1308_v6 = vld [vmem:[#allocation3 + $0x8] sm:$0xc0] }
0x1369   :  { %v1315_v25 = vrot.slane %v1308_v6, 6 }
0x136a   :  { %v1221_v27 = vmul.f32 %v1220_v26, %v1218_v56 }
0x136c   :  { %1223 = vrot.lane.b32.xlu1 %v1221_v27, %s3545_s13 }
0x13de   :  { %v1224_v28 = vpop.permute.xlu1 %1223 }
0x13df   :  { %v3899_v31 = vadd.f32 %v1224_v28, %v1096_v15  ;;  %v1382_v28 = vld [vmem:[#allocation4 + $0x6] sm:$0x3] }
0x13e1   :  { %v1233_v1 = vpack.c.bf16 %v3899_v31, %v3899_v31 }
0x13e3   :  { %1235 = vrot.lane.b32.xlu0 %v1233_v1, %s3544_s12 }
0x1455   :  { %v1236_v34 = vpop.permute.xlu0 %1235 }
0x1456   :  { %3170 = vmatmul.mubr.msk.bf16.vlgmr.msra.gmra.mrb[28].mxu1 %vm166_vm2, %v1236_v34 }
0x1457   :  { %3174 = vmatpush3.bf16.msra.mxu1 %v3667_v30  ;;  %3177 = vmatprep.mubr.msk.bf16.mxu1 %vm3542_vm3, %v3541_v29 }
0x1458   :  { %3175 = vmatprep.subr.bf16.mxu1 %v3541_v29 }
0x145b   :  { %3176 = vmatpush3.bf16.msra.mxu1 %v3674_v32 }
0x145c   :  { %3181 = vmatprep.subr.bf16.mxu1 %v3541_v29 }
0x1529   :  { %v1274_v36 = vpop.f32.mrb[28].mxu1 }
0x152a   :  { %v1275_v38 = vadd.f32 %v1274_v36, %v3811_v33  ;;  %v3171_v15 = vpop.f32.mrb[29].mxu1 }
0x152b   :  { %v1277_v41 = vpop.f32.mrb[30].mxu1 }
0x152c   :  { %1288 = vrot.lane.b32.xlu1 %v1275_v38, %s3543_s11  ;;  %v3172_v42 = vpop.f32.mrb[31].mxu1  ;;  %v1280_v43 = vadd.f32 %v1275_v38, %v1232_v17 }
0x152e   :  { %v2975_v30 = vmul.f32 -1.442695, %v1280_v43  ;;  %v1427_v43 = vld [vmem:[#allocation5 + $0x6] sm:$0x3] }
0x1530   :  { %3385 = vpow2.f32 %v2975_v30 }
0x153a   :  { %v3386_v44 = vpop.eup %3385 }
0x153b   :  { %v1284_v45 = vadd.f32 1.0, %v3386_v44 }
0x153d   :  { %3387 = vrcp.f32 %v1284_v45 }
0x1547   :  { %v3388_v46 = vpop.eup %3387 }
0x1548   :  { %v1298_v51 = vsub.f32 1.0, %v3388_v46  ;;  %v1304_v53 = vmul.f32 %v3388_v46, %v3899_v31 }
0x159e   :  { %v1289_v47 = vpop.permute.xlu1 %1288 }
0x159f   :  { %v1291_v32 = vmul.f32 %v3388_v46, %v1289_v47 }
0x15a1   :  { %1293 = vrot.lane.b32.xlu0 %v1291_v32, %s3543_s11 }
0x1613   :  { %v1294_v48 = vpop.permute.xlu0 %1293 }
0x1614   :  { %v1296_v49 = vadd.f32 %v1294_v48, %v1232_v17  ;;  %v1437_v48 = vld [vmem:[#allocation3 + $0x20] sm:$0xc0] }
0x1616   :  { %3389 = vtanh.f32 %v1296_v49  ;;  %v1444_v49 = vrot.slane %v1437_v48, 6 }
0x1620   :  { %v3390_v50 = vpop.eup %3389 }
0x1621   :  { %1300 = vrot.lane.b32.xlu1 %v3390_v50, %s3544_s12 }
0x1693   :  { %v1301_v52 = vpop.permute.xlu1 %1300 }
0x1694   :  { %v1303_v54 = vmul.f32 %v1301_v52, %v1298_v51 }
0x1696   :  { %v1305_v55 = vadd.f32 %v1304_v53, %v1303_v54 }
0x1698   :  { %1377 = vrot.lane.b32.xlu1 %v1305_v55, %s3544_s12  ;;  %v1306_v7 = vpack.c.bf16 %v1305_v55, %v1305_v55 }
0x169a   :  { %1310 = vrot.lane.b32.xlu0 %v1306_v7, %s3544_s12 }
0x170a   :  { %v1378_v5 = vpop.permute.xlu1 %1377 }
0x170c   :  { %v1311_v8 = vpop.permute.xlu0 %1310 }
0x170d   :  { %2976 = vmatmul.mubr.msk.bf16.vlgmr.msra.gmra.mrb[32].mxu0 %vm166_vm2, %v1311_v8 }
0x170e   :  { %1452 = vmatpush1.bf16.msra.mxu0 %v3704_v57  ;;  %1483 = vmatprep.mubr.bf16.mxu0 %v3540_v2 }
0x170f   :  { %1453 = vmatprep.subr.bf16.mxu0 %v3711_v58 }
0x1712   :  { %1454 = vmatpush1.bf16.msra.mxu0 %v3716_v59  ;;  %v3933_v59 = vld [vmem:[%s4307_s2 + $0x4] ss:$8 sps:$4 sm:$0xff]  }
0x1713   :  { %3189 = vmatprep.subr.bf16.mxu0 %v3541_v29 }
0x17e0   :  { %v1355_v13 = vpop.f32.mrb[32].mxu0 }
0x17e1   :  { %v1356_v14 = vadd.f32 %v1355_v13, %v1314_v4  ;;  %v1357_v18 = vpop.f32.mrb[33].mxu0 }
0x17e2   :  { %v1359_v20 = vpop.f32.mrb[34].mxu0  ;;  %v1358_v56 = vadd.f32 %v1357_v18, %v1315_v25  ;;  %v3957_v18 = vld [vmem:[%s4307_s2 + $0x14] ss:$8 sps:$4 sm:$0xff]  }
0x17e3   :  { %v2977_v21 = vmul.f32 -1.442695, %v1356_v14  ;;  %v1360_v22 = vpop.f32.mrb[35].mxu0  ;;  %v3963_v20 = vld [vmem:[%s4307_s2 + $0x10] ss:$8 sps:$4 sm:$0xff]  }
0x17e4   :  { %v2978_v26 = vmul.f32 -1.442695, %v1358_v56  ;;  %v1438_v22 = vld [vmem:[#allocation3 + $0x28] sm:$0xc0] }
0x17e5   :  { %3391 = vpow2.f32 %v2977_v21  ;;  %v3969_v21 = vld [vmem:[%s4307_s2 + $0x24] ss:$8 sps:$4 sm:$0xff]  }
0x17ef   :  { %v3392_v3 = vpop.eup %3391 }
0x17f0   :  { %v1365_v23 = vadd.f32 1.0, %v3392_v3  ;;  %v1445_v3 = vrot.slane %v1438_v22, 6 }
0x17f2   :  { %3393 = vrcp.f32 %v1365_v23 }
0x17f3   :  { %3395 = vpow2.f32 %v2978_v26 }
0x17fc   :  { %v3394_v57 = vpop.eup %3393 }
0x17fd   :  { %v1368_v24 = vmul.f32 0.8, %v3394_v57 }
0x17ff   :  { %v1380_v58 = vmul.f32 %v1378_v5, %v1368_v24 }
0x1801   :  { %v1381_v10 = vpack.c.bf16 %v1380_v58, %v1380_v58  ;;  %v1512_v58 = vld [vmem:[#allocation4 + $0x16] sm:$0x3] }
0x1803   :  { %3178 = vmatmul.mubr.msk.bf16.vlgmr.msra.gmra.mrb[32].mxu1 %vm166_vm2, %v1381_v10 }
0x1804   :  { %3182 = vmatpush3.bf16.msra.mxu1 %v3755_v39  ;;  %3185 = vmatprep.mubr.msk.bf16.mxu1 %vm3542_vm3, %v3541_v29  ;;  %v3396_v39 = vpop.eup %3395 }
0x1805   :  { %3183 = vmatprep.subr.bf16.mxu1 %v3541_v29  ;;  %v1372_v27 = vadd.f32 1.0, %v3396_v39 }
0x1807   :  { %3397 = vrcp.f32 %v1372_v27 }
0x1808   :  { %3184 = vmatpush3.bf16.msra.mxu1 %v3762_v40 }
0x1809   :  { %1654 = vmatprep.subr.bf16.mxu1 %v3933_v59 }
0x1811   :  { %v3398_v15 = vpop.eup %3397 }
0x1812   :  { %v1375_v42 = vmul.f32 0.4, %v3398_v15 }
0x18d6   :  { %v1420_v1 = vpop.f32.mrb[32].mxu1 }
0x18d7   :  { %v1421_v34 = vadd.f32 %v1420_v1, %v1382_v28  ;;  %v3179_v36 = vpop.f32.mrb[33].mxu1 }
0x18d8   :  { %v1423_v40 = vpop.f32.mrb[34].mxu1 }
0x18d9   :  { %3399 = vtanh.f32 %v1421_v34  ;;  %v3180_v38 = vpop.f32.mrb[35].mxu1  ;;  %v1557_v34 = vld [vmem:[#allocation5 + $0x16] sm:$0x3] }
0x18e3   :  { %v3400_v41 = vpop.eup %3399 }
0x18e4   :  { %v1428_v17 = vsub.f32 %v3400_v41, %v1378_v5 }
0x18e6   :  { %v1429_v30 = vmul.f32 %v1428_v17, %v1375_v42  ;;  %v3982_v17 = vld [vmem:[%s4311_s3] sm:$0xff]  }
0x18e8   :  { %v1430_v44 = vmul.f32 %v1429_v30, %v1427_v43  ;;  %v3991_v43 = vld [vmem:[%s4311_s3 + $0x8] sm:$0xff]  }
0x18ea   :  { %1432 = vrot.lane.b32.xlu0 %v1430_v44, %s3545_s13 }
0x195c   :  { %v1433_v45 = vpop.permute.xlu0 %1432 }
0x195d   :  { %v1435_v46 = vadd.f32 %v1433_v45, %v1305_v55 }
0x195f   :  { %1507 = vrot.lane.b32.xlu0 %v1435_v46, %s3544_s12  ;;  %v1436_v47 = vpack.c.bf16 %v1435_v46, %v1435_v46 }
0x1961   :  { %1440 = vrot.lane.b32.xlu1 %v1436_v47, %s3544_s12 }
0x19d1   :  { %v1508_v4 = vpop.permute.xlu0 %1507 }
0x19d3   :  { %v1441_v32 = vpop.permute.xlu1 %1440 }
0x19d4   :  { %2980 = vmatmul.mubr.msk.bf16.vlgmr.msra.gmra.mrb[36].mxu0 %vm166_vm2, %v1441_v32  ;;  %v1571_v32 = vld [vmem:[#allocation2 + $0x6] sm:$0x3] }
0x19d5   :  { %3190 = vmatpush3.bf16.msra.mxu0 %v3784_v9  ;;  %3193 = vmatprep.mubr.msk.bf16.mxu0 %vm3542_vm3, %v3541_v29 }
0x19d6   :  { %3191 = vmatprep.subr.bf16.mxu0 %v3541_v29 }
0x19d9   :  { %3192 = vmatpush3.bf16.msra.mxu0 %v3791_v60  ;;  %v3950_v60 = vld [vmem:[%s4307_s2] ss:$8 sps:$4 sm:$0xff]  }
0x19da   :  { %3197 = vmatprep.subr.bf16.mxu0 %v3541_v29 }
0x1aa7   :  { %v1485_v50 = vpop.f32.mrb[36].mxu0 }
0x1aa8   :  { %v1486_v51 = vadd.f32 %v1485_v50, %v1444_v49  ;;  %v1487_v52 = vpop.f32.mrb[37].mxu0 }
0x1aa9   :  { %v1489_v53 = vpop.f32.mrb[38].mxu0  ;;  %v1488_v23 = vadd.f32 %v1487_v52, %v1445_v3 }
0x1aaa   :  { %v2981_v54 = vmul.f32 -1.442695, %v1486_v51  ;;  %v1490_v55 = vpop.f32.mrb[39].mxu0 }
0x1aab   :  { %v2982_v57 = vmul.f32 -1.442695, %v1488_v23 }
0x1aac   :  { %3401 = vpow2.f32 %v2981_v54 }
0x1ab6   :  { %v3402_v7 = vpop.eup %3401 }
0x1ab7   :  { %v1495_v9 = vadd.f32 1.0, %v3402_v7 }
0x1ab9   :  { %3403 = vrcp.f32 %v1495_v9  ;;  %v4002_v9 = vld [vmem:[%s4309_s0 + $0x10] sm:$0xff] }
0x1aba   :  { %3405 = vpow2.f32 %v2982_v57 }
0x1ac3   :  { %v3404_v8 = vpop.eup %3403 }
0x1ac4   :  { %v1498_v0 = vmul.f32 0.8, %v3404_v8  ;;  %v3406_v24 = vpop.eup %3405  ;;  %v138_v8 = vmul.f32 %v3619_v11, %v4002_v9  ;;  %v4019_v11 = vld [vmem:[%s4307_s2 + $0x20] ss:$8 sps:$4 sm:$0xff]  }
0x1ac5   :  { %v1502_v5 = vadd.f32 1.0, %v3406_v24  ;;  %v4032_v24 = vld [vmem:[%s4307_s2 + $0x30] ss:$8 sps:$4 sm:$0xff]  }
0x1ac6   :  { %v1510_v13 = vmul.f32 %v1508_v4, %v1498_v0  ;;  %v153_v0 = vadd.f32 %v3622_v12, %v138_v8  ;;  %v4026_v12 = vld [vmem:[%s4307_s2 + $0x34] ss:$8 sps:$4 sm:$0xff]  }
0x1ac7   :  { %3407 = vrcp.f32 %v1502_v5  ;;  %v4039_v5 = vld [vmem:[%s4309_s0 + $0x18] sm:$0xff] }
0x1ac8   :  { %v1511_v14 = vpack.c.bf16 %v1510_v13, %v1510_v13  ;;  %157 = vst [vmem:[#allocation3 + $0x10] sm:$0xff] %v153_v0 }
0x1aca   :  { %3186 = vmatmul.mubr.msk.bf16.vlgmr.msra.gmra.mrb[36].mxu1 %vm166_vm2, %v1511_v14 }
0x1acb   :  { %1655 = vmatpush1.bf16.msra.mxu1 %v3950_v60  ;;  %1686 = vmatprep.mubr.bf16.mxu1 %v3540_v2 }
0x1acc   :  { %1656 = vmatprep.subr.bf16.mxu1 %v3957_v18 }
0x1acf   :  { %1657 = vmatpush1.bf16.msra.mxu1 %v3963_v20 }
0x1ad0   :  { %1778 = vmatprep.subr.bf16.mxu1 %v3969_v21 }
0x1ad1   :  { %v3408_v39 = vpop.eup %3407 }
0x1ad2   :  { %v1505_v28 = vmul.f32 0.4, %v3408_v39  ;;  %v1646_v39 = vld [vmem:[#allocation3 + $0x10] sm:$0x3] }
0x1b9d   :  { %v1550_v10 = vpop.f32.mrb[36].mxu1 }
0x1b9e   :  { %v1551_v6 = vadd.f32 %v1550_v10, %v1512_v58  ;;  %v3187_v25 = vpop.f32.mrb[37].mxu1  ;;  %v139_v58 = vmul.f32 %v3633_v16, %v4039_v5 }
0x1b9f   :  { %v1553_v56 = vpop.f32.mrb[38].mxu1 }
0x1ba0   :  { %3409 = vtanh.f32 %v1551_v6  ;;  %v3188_v26 = vpop.f32.mrb[39].mxu1  ;;  %v154_v10 = vadd.f32 %v3643_v19, %v139_v58  ;;  %v3529_v6 = vld [vmem:[%s4308_s5 + $0x4] ss:$0 sm:$0xff]  ;;  %v3530_v56 = vld [vmem:[%s4308_s5 + $0x6] ss:$0 sm:$0xff] }
0x1ba1   :  { %v163_v25 = vmul.f32 %v3529_v6, %v4002_v9 }
0x1ba2   :  { %158 = vst [vmem:[#allocation3 + $0x18] sm:$0xff] %v154_v10  ;;  %v192_v10 = vmul.f32 %v3728_v62, %v4002_v9  ;;  %v4090_v62 = vld [vmem:[%s4312_s4] sm:$0xff]  }
0x1ba3   :  { %v165_v26 = vadd.f32 %v3530_v56, %v163_v25 }
0x1ba4   :  { %v207_v6 = vadd.f32 %v3731_v63, %v192_v10  ;;  %v4099_v63 = vld [vmem:[%s4312_s4 + $0x8] sm:$0xff]  }
0x1ba5   :  { %168 = vst.msk [vmem:[#allocation4 + $0x8] sm:$0xff] %vm166_vm2, %v165_v26 }
0x1ba6   :  { %211 = vst [vmem:[#allocation3 + $0x30] sm:$0xff] %v207_v6 }
0x1baa   :  { %v3410_v27 = vpop.eup %3409 }
0x1bab   :  { %v1558_v1 = vsub.f32 %v3410_v27, %v1508_v4 }
0x1bad   :  { %v1559_v36 = vmul.f32 %v1558_v1, %v1505_v28 }
0x1baf   :  { %v1560_v40 = vmul.f32 %v1559_v36, %v1557_v34 }
0x1bb1   :  { %1562 = vrot.lane.b32.xlu1 %v1560_v40, %s3545_s13 }
0x1c23   :  { %v1563_v38 = vpop.permute.xlu1 %1562 }
0x1c24   :  { %v3973_v15 = vadd.f32 %v1563_v38, %v1435_v46 }
0x1c26   :  { %v1572_v41 = vpack.c.bf16 %v3973_v15, %v3973_v15 }
0x1c28   :  { %1574 = vrot.lane.b32.xlu0 %v1572_v41, %s3544_s12 }
0x1c9a   :  { %v1575_v42 = vpop.permute.xlu0 %1574 }
0x1c9b   :  { %3194 = vmatmul.mubr.msk.bf16.vlgmr.msra.gmra.mrb[40].mxu0 %vm166_vm2, %v1575_v42 }
0x1c9c   :  { %3198 = vmatpush3.bf16.msra.mxu0 %v3982_v17  ;;  %3201 = vmatprep.mubr.msk.bf16.mxu0 %vm3542_vm3, %v3541_v29 }
0x1c9d   :  { %3199 = vmatprep.subr.bf16.mxu0 %v3541_v29 }
0x1ca0   :  { %3200 = vmatpush3.bf16.msra.mxu0 %v3991_v43 }
0x1ca1   :  { %3205 = vmatprep.subr.bf16.mxu0 %v3541_v29 }
0x1d6e   :  { %v1613_v30 = vpop.f32.mrb[40].mxu0 }
0x1d6f   :  { %v1614_v44 = vadd.f32 %v1613_v30, %v3811_v33  ;;  %v3195_v45 = vpop.f32.mrb[41].mxu0 }
0x1d70   :  { %v1616_v46 = vpop.f32.mrb[42].mxu0  ;;  %v4056_v45 = vld [vmem:[%s4311_s3 + $0x10] sm:$0xff]  }
0x1d71   :  { %1627 = vrot.lane.b32.xlu1 %v1614_v44, %s3543_s11  ;;  %v3196_v47 = vpop.f32.mrb[43].mxu0  ;;  %v1619_v48 = vadd.f32 %v1614_v44, %v1571_v32  ;;  %v4065_v46 = vld [vmem:[%s4311_s3 + $0x18] sm:$0xff]  }
0x1d72   :  { %v3533_v47 = vld [vmem:[%s4308_s5 + $0x10] ss:$0 sm:$0xff] }
0x1d73   :  { %v2985_v49 = vmul.f32 -1.442695, %v1619_v48 }
0x1d75   :  { %3411 = vpow2.f32 %v2985_v49  ;;  %v1647_v49 = vld [vmem:[#allocation3 + $0x18] sm:$0x3] }
0x1d7f   :  { %v3412_v50 = vpop.eup %3411 }
0x1d80   :  { %v1623_v51 = vadd.f32 1.0, %v3412_v50 }
0x1d82   :  { %3413 = vrcp.f32 %v1623_v51 }
0x1d8c   :  { %v3414_v52 = vpop.eup %3413 }
0x1d8d   :  { %v1637_v4 = vsub.f32 1.0, %v3414_v52  ;;  %v1643_v14 = vmul.f32 %v3414_v52, %v3973_v15 }
0x1de3   :  { %v1628_v53 = vpop.permute.xlu1 %1627 }
0x1de4   :  { %v1630_v54 = vmul.f32 %v3414_v52, %v1628_v53 }
0x1de6   :  { %1632 = vrot.lane.b32.xlu0 %v1630_v54, %s3543_s11  ;;  %v1715_v54 = vld [vmem:[#allocation4 + $0x8] sm:$0x3] }
0x1e58   :  { %v1633_v55 = vpop.permute.xlu0 %1632 }
0x1e59   :  { %v1635_v7 = vadd.f32 %v1633_v55, %v1571_v32  ;;  %v170_v32 = vmul.f32 %v3533_v47, %v4002_v9 }
0x1e5b   :  { %3415 = vtanh.f32 %v1635_v7 }
0x1e65   :  { %v3416_v33 = vpop.eup %3415 }
0x1e66   :  { %1639 = vrot.lane.b32.xlu1 %v3416_v33, %s3544_s12 }
0x1ed8   :  { %v1640_v13 = vpop.permute.xlu1 %1639 }
0x1ed9   :  { %v1642_v22 = vmul.f32 %v1640_v13, %v1637_v4 }
0x1edb   :  { %v4008_v3 = vadd.f32 %v1643_v14, %v1642_v22 }
0x1edd   :  { %1710 = vrot.lane.b32.xlu1 %v4008_v3, %s3544_s12  ;;  %v1645_v23 = vpack.c.bf16 %v4008_v3, %v4008_v3 }
0x1edf   :  { %1649 = vrot.lane.b32.xlu0 %v1645_v23, %s3544_s12 }
0x1f4f   :  { %v1711_v42 = vpop.permute.xlu1 %1710 }
0x1f51   :  { %v1650_v57 = vpop.permute.xlu0 %1649 }
0x1f52   :  { %2986 = vmatmul.mubr.msk.bf16.vlgmr.msra.gmra.mrb[40].mxu1 %vm166_vm2, %v1650_v57 }
0x1f53   :  { %1779 = vmatpush1.bf16.msra.mxu1 %v4019_v11  ;;  %1810 = vmatprep.mubr.bf16.mxu1 %v3540_v2 }
0x1f54   :  { %1780 = vmatprep.subr.bf16.mxu1 %v4026_v12 }
0x1f57   :  { %1781 = vmatpush1.bf16.msra.mxu1 %v4032_v24 }
0x1f58   :  { %3213 = vmatprep.subr.bf16.mxu1 %v3541_v29 }
0x2025   :  { %v1688_v27 = vpop.f32.mrb[40].mxu1 }
0x2026   :  { %v1689_v28 = vadd.f32 %v1688_v27, %v1646_v39  ;;  %v1690_v16 = vpop.f32.mrb[41].mxu1 }
0x2027   :  { %v1692_v1 = vpop.f32.mrb[42].mxu1  ;;  %v1691_v50 = vadd.f32 %v1690_v16, %v1647_v49  ;;  %v3538_v49 = vld [vmem:[%s4308_s5 + $0x11] ss:$0 sm:$0xff] }
0x2028   :  { %v2987_v19 = vmul.f32 -1.442695, %v1689_v28  ;;  %v1693_v34 = vpop.f32.mrb[43].mxu1  ;;  %v3536_v28 = vld [vmem:[%s4308_s5 + $0x5] ss:$0 sm:$0xff] }
0x2029   :  { %v2988_v51 = vmul.f32 -1.442695, %v1691_v50  ;;  %v217_v16 = vmul.f32 %v3536_v28, %v4002_v9  ;;  %v3537_v1 = vld [vmem:[%s4308_s5 + $0x7] ss:$0 sm:$0xff]  ;;  %v1770_v34 = vld [vmem:[#allocation3 + $0x30] sm:$0x3]  ;;  %v223_v50 = vmul.f32 %v3538_v49, %v4002_v9 }
0x202a   :  { %3417 = vpow2.f32 %v2987_v19 }
0x202b   :  { %v219_v19 = vadd.f32 %v3537_v1, %v217_v16 }
0x202d   :  { %221 = vst.msk [vmem:[#allocation4 + $0x18] sm:$0xff] %vm166_vm2, %v219_v19 }
0x2034   :  { %v3418_v36 = vpop.eup %3417 }
0x2035   :  { %v1698_v40 = vadd.f32 1.0, %v3418_v36 }
0x2037   :  { %3419 = vrcp.f32 %v1698_v40 }
0x2038   :  { %3421 = vtanh.f32 %v170_v32 }
0x2039   :  { %3423 = vpow2.f32 %v2988_v51 }
0x2041   :  { %v3420_v38 = vpop.eup %3419 }
0x2042   :  { %v1701_v41 = vmul.f32 0.8, %v3420_v38  ;;  %v3422_v48 = vpop.eup %3421 }
0x2043   :  { %174 = vst.msk [vmem:[#allocation5 + $0x8] sm:$0xff] %vm166_vm2, %v3422_v48  ;;  %v3424_v52 = vpop.eup %3423 }
0x2044   :  { %v1713_v30 = vmul.f32 %v1711_v42, %v1701_v41  ;;  %v1705_v53 = vadd.f32 1.0, %v3424_v52 }
0x2046   :  { %v1714_v44 = vpack.c.bf16 %v1713_v30, %v1713_v30  ;;  %3425 = vrcp.f32 %v1705_v53 }
0x2048   :  { %3202 = vmatmul.mubr.msk.bf16.vlgmr.msra.gmra.mrb[44].mxu0 %vm166_vm2, %v1714_v44 }
0x2049   :  { %3206 = vmatpush3.bf16.msra.mxu0 %v4056_v45  ;;  %3209 = vmatprep.mubr.msk.bf16.mxu0 %vm3542_vm3, %v3541_v29 }
0x204a   :  { %3207 = vmatprep.subr.bf16.mxu0 %v3541_v29  ;;  %v1760_v23 = vld [vmem:[#allocation5 + $0x8] sm:$0x3] }
0x204d   :  { %3208 = vmatpush3.bf16.msra.mxu0 %v4065_v46 }
0x204e   :  { %1987 = vmatprep.subr.bf16.mxu0 %v3933_v59 }
0x2050   :  { %v3426_v4 = vpop.eup %3425 }
0x2051   :  { %v1708_v14 = vmul.f32 0.4, %v3426_v4 }
0x211b   :  { %v1753_v55 = vpop.f32.mrb[44].mxu0 }
0x211c   :  { %v1754_v7 = vadd.f32 %v1753_v55, %v1715_v54  ;;  %v3203_v33 = vpop.f32.mrb[45].mxu0 }
0x211d   :  { %v1756_v8 = vpop.f32.mrb[46].mxu0  ;;  %v1839_v33 = vld [vmem:[#allocation4 + $0x18] sm:$0x3] }
0x211e   :  { %3427 = vtanh.f32 %v1754_v7  ;;  %v3204_v0 = vpop.f32.mrb[47].mxu0 }
0x2128   :  { %v3428_v13 = vpop.eup %3427 }
0x2129   :  { %v1761_v22 = vsub.f32 %v3428_v13, %v1711_v42 }
0x212b   :  { %v1762_v57 = vmul.f32 %v1761_v22, %v1708_v14 }
0x212d   :  { %v1763_v58 = vmul.f32 %v1762_v57, %v1760_v23 }
0x212f   :  { %1765 = vrot.lane.b32.xlu0 %v1763_v58, %s3545_s13 }
0x21a1   :  { %v1766_v25 = vpop.permute.xlu0 %1765 }
0x21a2   :  { %v4079_v56 = vadd.f32 %v1766_v25, %v4008_v3  ;;  %v193_v3 = vmul.f32 %v3744_v35, %v4039_v5 }
0x21a4   :  { %1834 = vrot.lane.b32.xlu0 %v4079_v56, %s3544_s12  ;;  %v1769_v26 = vpack.c.bf16 %v4079_v56, %v4079_v56  ;;  %v208_v27 = vadd.f32 %v3749_v37, %v193_v3 }
0x21a6   :  { %1773 = vrot.lane.b32.xlu1 %v1769_v26, %s3544_s12  ;;  %212 = vst [vmem:[#allocation3 + $0x38] sm:$0xff] %v208_v27  ;;  %v4142_v27 = vld [vmem:[%s4308_s5 + $0x13] ss:$0 sm:$0xff] }
0x21ad   :  { %v1771_v52 = vld [vmem:[#allocation3 + $0x38] sm:$0x3] }
0x2216   :  { %v1835_v47 = vpop.permute.xlu0 %1834 }
0x2218   :  { %v1774_v39 = vpop.permute.xlu1 %1773 }
0x2219   :  { %2990 = vmatmul.mubr.msk.bf16.vlgmr.msra.gmra.mrb[44].mxu1 %vm166_vm2, %v1774_v39 }
0x221a   :  { %3214 = vmatpush3.bf16.msra.mxu1 %v4090_v62  ;;  %3217 = vmatprep.mubr.msk.bf16.mxu1 %vm3542_vm3, %v3541_v29 }
0x221b   :  { %3215 = vmatprep.subr.bf16.mxu1 %v3541_v29 }
0x221e   :  { %3216 = vmatpush3.bf16.msra.mxu1 %v4099_v63 }
0x221f   :  { %3221 = vmatprep.subr.bf16.mxu1 %v3541_v29 }
0x22ec   :  { %v1812_v36 = vpop.f32.mrb[44].mxu1 }
0x22ed   :  { %v1813_v40 = vadd.f32 %v1812_v36, %v1770_v34  ;;  %v1814_v35 = vpop.f32.mrb[45].mxu1  ;;  %v1898_v34 = vld [vmem:[#allocation2 + $0x8] sm:$0x3] }
0x22ee   :  { %v1816_v5 = vpop.f32.mrb[46].mxu1  ;;  %v1815_v53 = vadd.f32 %v1814_v35, %v1771_v52 }
0x22ef   :  { %v2991_v37 = vmul.f32 -1.442695, %v1813_v40  ;;  %v1817_v38 = vpop.f32.mrb[47].mxu1 }
0x22f0   :  { %v2992_v54 = vmul.f32 -1.442695, %v1815_v53  ;;  %v1973_v53 = vld [vmem:[#allocation3 + $0x10] sm:$0xc] }
0x22f1   :  { %3429 = vpow2.f32 %v2991_v37 }
0x22fb   :  { %v3430_v41 = vpop.eup %3429 }
0x22fc   :  { %v1822_v42 = vadd.f32 1.0, %v3430_v41 }
0x22fe   :  { %3431 = vrcp.f32 %v1822_v42 }
0x22ff   :  { %3433 = vtanh.f32 %v223_v50 }
0x2300   :  { %3435 = vpow2.f32 %v2992_v54  ;;  %v1980_v54 = vrot.slane %v1973_v53, 2 }
0x2308   :  { %v3432_v30 = vpop.eup %3431 }
0x2309   :  { %v1825_v44 = vmul.f32 0.8, %v3432_v30  ;;  %v3434_v51 = vpop.eup %3433 }
0x230a   :  { %227 = vst.msk [vmem:[#allocation5 + $0x18] sm:$0xff] %vm166_vm2, %v3434_v51  ;;  %v3436_v55 = vpop.eup %3435 }
0x230b   :  { %v1837_v32 = vmul.f32 %v1835_v47, %v1825_v44  ;;  %v1829_v7 = vadd.f32 1.0, %v3436_v55 }
0x230d   :  { %v1838_v48 = vpack.c.bf16 %v1837_v32, %v1837_v32  ;;  %3437 = vrcp.f32 %v1829_v7 }
0x230f   :  { %3210 = vmatmul.mubr.msk.bf16.vlgmr.msra.gmra.mrb[48].mxu0 %vm166_vm2, %v1838_v48 }
0x2310   :  { %1988 = vmatpush1.bf16.msra.mxu0 %v3950_v60  ;;  %2019 = vmatprep.mubr.bf16.mxu0 %v3540_v2 }
0x2311   :  { %1989 = vmatprep.subr.bf16.mxu0 %v3957_v18  ;;  %v1884_v58 = vld [vmem:[#allocation5 + $0x18] sm:$0x3] }
0x2314   :  { %1990 = vmatpush1.bf16.msra.mxu0 %v3963_v20 }
0x2315   :  { %2117 = vmatprep.subr.bf16.mxu0 %v3969_v21 }
0x2317   :  { %v3438_v22 = vpop.eup %3437 }
0x2318   :  { %v1832_v23 = vmul.f32 0.4, %v3438_v22 }
0x23e2   :  { %v1877_v8 = vpop.f32.mrb[48].mxu0 }
0x23e3   :  { %v1878_v0 = vadd.f32 %v1877_v8, %v1839_v33  ;;  %v3211_v4 = vpop.f32.mrb[49].mxu0 }
0x23e4   :  { %v1880_v13 = vpop.f32.mrb[50].mxu0 }
0x23e5   :  { %3439 = vtanh.f32 %v1878_v0  ;;  %v3212_v14 = vpop.f32.mrb[51].mxu0 }
0x23ef   :  { %v3440_v9 = vpop.eup %3439 }
0x23f0   :  { %v1885_v57 = vsub.f32 %v3440_v9, %v1835_v47 }
0x23f2   :  { %v1886_v10 = vmul.f32 %v1885_v57, %v1832_v23 }
0x23f4   :  { %v1887_v6 = vmul.f32 %v1886_v10, %v1884_v58  ;;  %v1974_v10 = vld [vmem:[#allocation3 + $0x18] sm:$0xc] }
0x23f6   :  { %1889 = vrot.lane.b32.xlu1 %v1887_v6, %s3545_s13  ;;  %v1981_v6 = vrot.slane %v1974_v10, 2 }
0x2468   :  { %v1890_v25 = vpop.permute.xlu1 %1889 }
0x2469   :  { %v4127_v26 = vadd.f32 %v1890_v25, %v4079_v56 }
0x246b   :  { %v1899_v39 = vpack.c.bf16 %v4127_v26, %v4127_v26 }
0x246d   :  { %1901 = vrot.lane.b32.xlu0 %v1899_v39, %s3544_s12 }
0x24df   :  { %v1902_v3 = vpop.permute.xlu0 %1901 }
0x24e0   :  { %3218 = vmatmul.mubr.msk.bf16.vlgmr.msra.gmra.mrb[48].mxu1 %vm166_vm2, %v1902_v3 }
0x24e1   :  { %3222 = vmatpush3.bf16.msra.mxu1 %v3982_v17  ;;  %3225 = vmatprep.mubr.msk.bf16.mxu1 %vm3542_vm3, %v3541_v29 }
0x24e2   :  { %3223 = vmatprep.subr.bf16.mxu1 %v3541_v29 }
0x24e5   :  { %3224 = vmatpush3.bf16.msra.mxu1 %v3991_v43 }
0x24e6   :  { %3229 = vmatprep.subr.bf16.mxu1 %v3541_v29 }
0x25b3   :  { %v1940_v56 = vpop.f32.mrb[48].mxu1 }
0x25b4   :  { %v1941_v28 = vadd.f32 %v4142_v27, %v1940_v56  ;;  %v3219_v16 = vpop.f32.mrb[49].mxu1 }
0x25b5   :  { %v1943_v1 = vpop.f32.mrb[50].mxu1 }
0x25b6   :  { %1954 = vrot.lane.b32.xlu1 %v1941_v28, %s3543_s11  ;;  %v3220_v19 = vpop.f32.mrb[51].mxu1  ;;  %v1946_v36 = vadd.f32 %v1941_v28, %v1898_v34  ;;  %v2048_v28 = vld [vmem:[#allocation4 + $0xa] sm:$0x3] }
0x25b8   :  { %v2995_v40 = vmul.f32 -1.442695, %v1946_v36 }
0x25ba   :  { %3441 = vpow2.f32 %v2995_v40 }
0x25c4   :  { %v3442_v35 = vpop.eup %3441 }
0x25c5   :  { %v1950_v5 = vadd.f32 1.0, %v3442_v35 }
0x25c7   :  { %3443 = vrcp.f32 %v1950_v5 }
0x25d1   :  { %v3444_v37 = vpop.eup %3443 }
0x25d2   :  { %v1964_v47 = vsub.f32 1.0, %v3444_v37  ;;  %v1970_v48 = vmul.f32 %v3444_v37, %v4127_v26 }
0x2628   :  { %v1955_v38 = vpop.permute.xlu1 %1954 }
0x2629   :  { %v1957_v41 = vmul.f32 %v3444_v37, %v1955_v38  ;;  %v2093_v38 = vld [vmem:[#allocation5 + $0xa] sm:$0x3] }
0x262b   :  { %1959 = vrot.lane.b32.xlu0 %v1957_v41, %s3543_s11 }
0x269d   :  { %v1960_v42 = vpop.permute.xlu0 %1959 }
0x269e   :  { %v1962_v30 = vadd.f32 %v1960_v42, %v1898_v34 }
0x26a0   :  { %3445 = vtanh.f32 %v1962_v30 }
0x26aa   :  { %v3446_v44 = vpop.eup %3445 }
0x26ab   :  { %1966 = vrot.lane.b32.xlu1 %v3446_v44, %s3544_s12 }
0x271d   :  { %v1967_v32 = vpop.permute.xlu1 %1966 }
0x271e   :  { %v1969_v49 = vmul.f32 %v1967_v32, %v1964_v47 }
0x2720   :  { %v1971_v50 = vadd.f32 %v1970_v48, %v1969_v49  ;;  %v2103_v48 = vld [vmem:[#allocation3 + $0x30] sm:$0xc] }
0x2721   :  { %v2110_v49 = vrot.slane %v2103_v48, 2  ;;  %v2237_v48 = vld [vmem:[#allocation2 + $0xa] sm:$0x3] }
0x2722   :  { %2043 = vrot.lane.b32.xlu1 %v1971_v50, %s3544_s12  ;;  %v1972_v51 = vpack.c.bf16 %v1971_v50, %v1971_v50 }
0x2724   :  { %1976 = vrot.lane.b32.xlu0 %v1972_v51, %s3544_s12 }
0x2794   :  { %v2044_v23 = vpop.permute.xlu1 %2043 }
0x2796   :  { %v1977_v52 = vpop.permute.xlu0 %1976 }
0x2797   :  { %2996 = vmatmul.mubr.msk.bf16.vlgmr.msra.gmra.mrb[52].mxu0 %vm166_vm2, %v1977_v52 }
0x2798   :  { %2118 = vmatpush1.bf16.msra.mxu0 %v4019_v11  ;;  %2149 = vmatprep.mubr.bf16.mxu0 %v3540_v2 }
0x2799   :  { %2119 = vmatprep.subr.bf16.mxu0 %v4026_v12 }
0x279c   :  { %2120 = vmatpush1.bf16.msra.mxu0 %v4032_v24 }
0x279d   :  { %3237 = vmatprep.subr.bf16.mxu0 %v3541_v29 }
0x286a   :  { %v2021_v55 = vpop.f32.mrb[52].mxu0 }
0x286b   :  { %v2022_v7 = vadd.f32 %v2021_v55, %v1980_v54  ;;  %v2023_v33 = vpop.f32.mrb[53].mxu0 }
0x286c   :  { %v2025_v8 = vpop.f32.mrb[54].mxu0  ;;  %v2024_v25 = vadd.f32 %v2023_v33, %v1981_v6  ;;  %v2178_v6 = vld [vmem:[#allocation4 + $0x1a] sm:$0x3] }
0x286d   :  { %v2997_v0 = vmul.f32 -1.442695, %v2022_v7  ;;  %v2026_v4 = vpop.f32.mrb[55].mxu0 }
0x286e   :  { %v2998_v39 = vmul.f32 -1.442695, %v2024_v25 }
0x286f   :  { %3447 = vpow2.f32 %v2997_v0 }
0x2879   :  { %v3448_v13 = vpop.eup %3447 }
0x287a   :  { %v2031_v14 = vadd.f32 1.0, %v3448_v13 }
0x287c   :  { %3449 = vrcp.f32 %v2031_v14 }
0x287d   :  { %3451 = vpow2.f32 %v2998_v39 }
0x2886   :  { %v3450_v22 = vpop.eup %3449 }
0x2887   :  { %v2034_v9 = vmul.f32 0.8, %v3450_v22  ;;  %v3452_v3 = vpop.eup %3451  ;;  %v2104_v22 = vld [vmem:[#allocation3 + $0x38] sm:$0xc] }
0x2888   :  { %v2038_v56 = vadd.f32 1.0, %v3452_v3 }
0x2889   :  { %v2046_v57 = vmul.f32 %v2044_v23, %v2034_v9  ;;  %v2111_v9 = vrot.slane %v2104_v22, 2 }
0x288a   :  { %3453 = vrcp.f32 %v2038_v56 }
0x288b   :  { %v2047_v58 = vpack.c.bf16 %v2046_v57, %v2046_v57 }
0x288d   :  { %3226 = vmatmul.mubr.msk.bf16.vlgmr.msra.gmra.mrb[52].mxu1 %vm166_vm2, %v2047_v58 }
0x288e   :  { %3230 = vmatpush3.bf16.msra.mxu1 %v4056_v45  ;;  %3233 = vmatprep.mubr.msk.bf16.mxu1 %vm3542_vm3, %v3541_v29 }
0x288f   :  { %3231 = vmatprep.subr.bf16.mxu1 %v3541_v29 }
0x2892   :  { %3232 = vmatpush3.bf16.msra.mxu1 %v4065_v46 }
0x2893   :  { %2326 = vmatprep.subr.bf16.mxu1 %v3933_v59 }
0x2894   :  { %v3454_v40 = vpop.eup %3453 }
0x2895   :  { %v2041_v5 = vmul.f32 0.4, %v3454_v40 }
0x2960   :  { %v2086_v16 = vpop.f32.mrb[52].mxu1 }
0x2961   :  { %v2087_v1 = vadd.f32 %v2086_v16, %v2048_v28  ;;  %v3227_v19 = vpop.f32.mrb[53].mxu1 }
0x2962   :  { %v2089_v34 = vpop.f32.mrb[54].mxu1 }
0x2963   :  { %3455 = vtanh.f32 %v2087_v1  ;;  %v3228_v36 = vpop.f32.mrb[55].mxu1 }
0x2964   :  { %v2223_v36 = vld [vmem:[#allocation5 + $0x1a] sm:$0x3] }
0x296d   :  { %v3456_v35 = vpop.eup %3455 }
0x296e   :  { %v2094_v37 = vsub.f32 %v3456_v35, %v2044_v23 }
0x2970   :  { %v2095_v41 = vmul.f32 %v2094_v37, %v2041_v5 }
0x2972   :  { %v2096_v42 = vmul.f32 %v2095_v41, %v2093_v38 }
0x2974   :  { %2098 = vrot.lane.b32.xlu0 %v2096_v42, %s3545_s13 }
0x29e6   :  { %v2099_v30 = vpop.permute.xlu0 %2098 }
0x29e7   :  { %v2101_v44 = vadd.f32 %v2099_v30, %v1971_v50 }
0x29e9   :  { %2173 = vrot.lane.b32.xlu0 %v2101_v44, %s3544_s12  ;;  %v2102_v47 = vpack.c.bf16 %v2101_v44, %v2101_v44 }
0x29eb   :  { %2106 = vrot.lane.b32.xlu1 %v2102_v47, %s3544_s12 }
0x2a5b   :  { %v2174_v4 = vpop.permute.xlu0 %2173 }
0x2a5d   :  { %v2107_v32 = vpop.permute.xlu1 %2106 }
0x2a5e   :  { %3000 = vmatmul.mubr.msk.bf16.vlgmr.msra.gmra.mrb[56].mxu0 %vm166_vm2, %v2107_v32 }
0x2a5f   :  { %3238 = vmatpush3.bf16.msra.mxu0 %v4090_v62  ;;  %3241 = vmatprep.mubr.msk.bf16.mxu0 %vm3542_vm3, %v3541_v29 }
0x2a60   :  { %3239 = vmatprep.subr.bf16.mxu0 %v3541_v29 }
0x2a63   :  { %3240 = vmatpush3.bf16.msra.mxu0 %v4099_v63 }
0x2a64   :  { %3245 = vmatprep.subr.bf16.mxu0 %v3541_v29 }
0x2b31   :  { %v2151_v50 = vpop.f32.mrb[56].mxu0 }
0x2b32   :  { %v2152_v51 = vadd.f32 %v2151_v50, %v2110_v49  ;;  %v2153_v52 = vpop.f32.mrb[57].mxu0 }
0x2b33   :  { %v2155_v53 = vpop.f32.mrb[58].mxu0  ;;  %v2154_v23 = vadd.f32 %v2153_v52, %v2111_v9 }
0x2b34   :  { %v3001_v54 = vmul.f32 -1.442695, %v2152_v51  ;;  %v2156_v55 = vpop.f32.mrb[59].mxu0 }
0x2b35   :  { %v3002_v57 = vmul.f32 -1.442695, %v2154_v23 }
0x2b36   :  { %3457 = vpow2.f32 %v3001_v54 }
0x2b40   :  { %v3458_v7 = vpop.eup %3457 }
0x2b41   :  { %v2161_v33 = vadd.f32 1.0, %v3458_v7 }
0x2b43   :  { %3459 = vrcp.f32 %v2161_v33 }
0x2b44   :  { %3461 = vpow2.f32 %v3002_v57  ;;  %v2312_v57 = vld [vmem:[#allocation3 + $0x10] sm:$0x30] }
0x2b4d   :  { %v3460_v8 = vpop.eup %3459 }
0x2b4e   :  { %v2164_v0 = vmul.f32 0.8, %v3460_v8  ;;  %v3462_v58 = vpop.eup %3461 }
0x2b4f   :  { %v2168_v10 = vadd.f32 1.0, %v3462_v58  ;;  %v2319_v58 = vrot.slane %v2312_v57, 4 }
0x2b50   :  { %v2176_v13 = vmul.f32 %v2174_v4, %v2164_v0 }
0x2b51   :  { %3463 = vrcp.f32 %v2168_v10 }
0x2b52   :  { %v2177_v14 = vpack.c.bf16 %v2176_v13, %v2176_v13 }
0x2b54   :  { %3234 = vmatmul.mubr.msk.bf16.vlgmr.msra.gmra.mrb[56].mxu1 %vm166_vm2, %v2177_v14 }
0x2b55   :  { %2327 = vmatpush1.bf16.msra.mxu1 %v3950_v60  ;;  %2358 = vmatprep.mubr.bf16.mxu1 %v3540_v2 }
0x2b56   :  { %2328 = vmatprep.subr.bf16.mxu1 %v3957_v18 }
0x2b59   :  { %2329 = vmatpush1.bf16.msra.mxu1 %v3963_v20 }
0x2b5a   :  { %2456 = vmatprep.subr.bf16.mxu1 %v3969_v21 }
0x2b5b   :  { %v3464_v16 = vpop.eup %3463 }
0x2b5c   :  { %v2171_v19 = vmul.f32 0.4, %v3464_v16 }
0x2c27   :  { %v2216_v25 = vpop.f32.mrb[56].mxu1 }
0x2c28   :  { %v2217_v39 = vadd.f32 %v2216_v25, %v2178_v6  ;;  %v3235_v3 = vpop.f32.mrb[57].mxu1 }
0x2c29   :  { %v2219_v56 = vpop.f32.mrb[58].mxu1 }
0x2c2a   :  { %3465 = vtanh.f32 %v2217_v39  ;;  %v3236_v28 = vpop.f32.mrb[59].mxu1 }
0x2c34   :  { %v3466_v1 = vpop.eup %3465 }
0x2c35   :  { %v2224_v34 = vsub.f32 %v3466_v1, %v2174_v4 }
0x2c37   :  { %v2225_v40 = vmul.f32 %v2224_v34, %v2171_v19 }
0x2c39   :  { %v2226_v35 = vmul.f32 %v2225_v40, %v2223_v36 }
0x2c3b   :  { %2228 = vrot.lane.b32.xlu1 %v2226_v35, %s3545_s13  ;;  %v2313_v35 = vld [vmem:[#allocation3 + $0x18] sm:$0x30] }
0x2cad   :  { %v2229_v5 = vpop.permute.xlu1 %2228 }
0x2cae   :  { %v4181_v37 = vadd.f32 %v2229_v5, %v2101_v44  ;;  %v2320_v5 = vrot.slane %v2313_v35, 4 }
0x2cb0   :  { %v2238_v38 = vpack.c.bf16 %v4181_v37, %v4181_v37 }
0x2cb2   :  { %2240 = vrot.lane.b32.xlu0 %v2238_v38, %s3544_s12 }
0x2d24   :  { %v2241_v41 = vpop.permute.xlu0 %2240 }
0x2d25   :  { %3242 = vmatmul.mubr.msk.bf16.vlgmr.msra.gmra.mrb[60].mxu0 %vm166_vm2, %v2241_v41 }
0x2d26   :  { %3246 = vmatpush3.bf16.msra.mxu0 %v3982_v17  ;;  %3249 = vmatprep.mubr.msk.bf16.mxu0 %vm3542_vm3, %v3541_v29 }
0x2d27   :  { %3247 = vmatprep.subr.bf16.mxu0 %v3541_v29 }
0x2d2a   :  { %3248 = vmatpush3.bf16.msra.mxu0 %v3991_v43 }
0x2d2b   :  { %3253 = vmatprep.subr.bf16.mxu0 %v3541_v29 }
0x2df8   :  { %v2279_v42 = vpop.f32.mrb[60].mxu0 }
0x2df9   :  { %v2280_v30 = vadd.f32 %v4142_v27, %v2279_v42  ;;  %v3243_v44 = vpop.f32.mrb[61].mxu0 }
0x2dfa   :  { %v2282_v47 = vpop.f32.mrb[62].mxu0  ;;  %v2387_v44 = vld [vmem:[#allocation4 + $0xc] sm:$0x3] }
0x2dfb   :  { %2293 = vrot.lane.b32.xlu1 %v2280_v30, %s3543_s11  ;;  %v3244_v32 = vpop.f32.mrb[63].mxu0  ;;  %v2285_v49 = vadd.f32 %v2280_v30, %v2237_v48 }
0x2dfd   :  { %v3005_v50 = vmul.f32 -1.442695, %v2285_v49 }
0x2dff   :  { %3467 = vpow2.f32 %v3005_v50 }
0x2e09   :  { %v3468_v51 = vpop.eup %3467 }
0x2e0a   :  { %v2289_v52 = vadd.f32 1.0, %v3468_v51 }
0x2e0c   :  { %3469 = vrcp.f32 %v2289_v52 }
0x2e16   :  { %v3470_v53 = vpop.eup %3469 }
0x2e17   :  { %v2303_v0 = vsub.f32 1.0, %v3470_v53  ;;  %v2309_v13 = vmul.f32 %v3470_v53, %v4181_v37 }
0x2e6d   :  { %v2294_v54 = vpop.permute.xlu1 %2293 }
0x2e6e   :  { %v2296_v55 = vmul.f32 %v3470_v53, %v2294_v54 }
0x2e70   :  { %2298 = vrot.lane.b32.xlu0 %v2296_v55, %s3543_s11 }
0x2ee2   :  { %v2299_v7 = vpop.permute.xlu0 %2298 }
0x2ee3   :  { %v2301_v33 = vadd.f32 %v2299_v7, %v2237_v48 }
0x2ee5   :  { %3471 = vtanh.f32 %v2301_v33 }
0x2eef   :  { %v3472_v8 = vpop.eup %3471 }
0x2ef0   :  { %2305 = vrot.lane.b32.xlu1 %v3472_v8, %s3544_s12 }
0x2f62   :  { %v2306_v4 = vpop.permute.xlu1 %2305 }
0x2f63   :  { %v2308_v14 = vmul.f32 %v2306_v4, %v2303_v0 }
0x2f65   :  { %v2310_v22 = vadd.f32 %v2309_v13, %v2308_v14  ;;  %v2442_v13 = vld [vmem:[#allocation3 + $0x30] sm:$0x30] }
0x2f66   :  { %v2449_v14 = vrot.slane %v2442_v13, 4 }
0x2f67   :  { %2382 = vrot.lane.b32.xlu1 %v2310_v22, %s3544_s12  ;;  %v2311_v9 = vpack.c.bf16 %v2310_v22, %v2310_v22 }
0x2f69   :  { %2315 = vrot.lane.b32.xlu0 %v2311_v9, %s3544_s12 }
0x2fd9   :  { %v2383_v34 = vpop.permute.xlu1 %2382 }
0x2fdb   :  { %v2316_v23 = vpop.permute.xlu0 %2315 }
0x2fdc   :  { %3006 = vmatmul.mubr.msk.bf16.vlgmr.msra.gmra.mrb[60].mxu1 %vm166_vm2, %v2316_v23 }
0x2fdd   :  { %2457 = vmatpush1.bf16.msra.mxu1 %v4019_v11  ;;  %2488 = vmatprep.mubr.bf16.mxu1 %v3540_v2 }
0x2fde   :  { %2458 = vmatprep.subr.bf16.mxu1 %v4026_v12 }
0x2fe1   :  { %2459 = vmatpush1.bf16.msra.mxu1 %v4032_v24 }
0x2fe2   :  { %3261 = vmatprep.subr.bf16.mxu1 %v3541_v29 }
0x30af   :  { %v2360_v10 = vpop.f32.mrb[60].mxu1 }
0x30b0   :  { %v2361_v6 = vadd.f32 %v2360_v10, %v2319_v58  ;;  %v2362_v25 = vpop.f32.mrb[61].mxu1 }
0x30b1   :  { %v2364_v39 = vpop.f32.mrb[62].mxu1  ;;  %v2363_v38 = vadd.f32 %v2362_v25, %v2320_v5 }
0x30b2   :  { %v3007_v3 = vmul.f32 -1.442695, %v2361_v6  ;;  %v2365_v56 = vpop.f32.mrb[63].mxu1 }
0x30b3   :  { %v3008_v41 = vmul.f32 -1.442695, %v2363_v38 }
0x30b4   :  { %3473 = vpow2.f32 %v3007_v3 }
0x30be   :  { %v3474_v28 = vpop.eup %3473 }
0x30bf   :  { %v2370_v16 = vadd.f32 1.0, %v3474_v28 }
0x30c1   :  { %3475 = vrcp.f32 %v2370_v16 }
0x30c2   :  { %3477 = vpow2.f32 %v3008_v41 }
0x30cb   :  { %v3476_v1 = vpop.eup %3475 }
0x30cc   :  { %v2373_v19 = vmul.f32 0.8, %v3476_v1  ;;  %v3478_v42 = vpop.eup %3477 }
0x30cd   :  { %v2377_v30 = vadd.f32 1.0, %v3478_v42 }
0x30ce   :  { %v2385_v36 = vmul.f32 %v2383_v34, %v2373_v19 }
0x30cf   :  { %3479 = vrcp.f32 %v2377_v30 }
0x30d0   :  { %v2386_v40 = vpack.c.bf16 %v2385_v36, %v2385_v36 }
0x30d2   :  { %3250 = vmatmul.mubr.msk.bf16.vlgmr.msra.gmra.mrb[64].mxu0 %vm166_vm2, %v2386_v40  ;;  %v2517_v40 = vld [vmem:[#allocation4 + $0x1c] sm:$0x3] }
0x30d3   :  { %3254 = vmatpush3.bf16.msra.mxu0 %v4056_v45  ;;  %3257 = vmatprep.mubr.msk.bf16.mxu0 %vm3542_vm3, %v3541_v29 }
0x30d4   :  { %3255 = vmatprep.subr.bf16.mxu0 %v3541_v29 }
0x30d7   :  { %3256 = vmatpush3.bf16.msra.mxu0 %v4065_v46 }
0x30d8   :  { %2665 = vmatprep.subr.bf16.mxu0 %v3933_v59  ;;  %v2432_v59 = vld [vmem:[#allocation5 + $0xc] sm:$0x3] }
0x30d9   :  { %v3480_v51 = vpop.eup %3479 }
0x30da   :  { %v2380_v53 = vmul.f32 0.4, %v3480_v51 }
0x31a5   :  { %v2425_v47 = vpop.f32.mrb[64].mxu0 }
0x31a6   :  { %v2426_v32 = vadd.f32 %v2425_v47, %v2387_v44  ;;  %v3251_v48 = vpop.f32.mrb[65].mxu0 }
0x31a7   :  { %v2428_v49 = vpop.f32.mrb[66].mxu0 }
0x31a8   :  { %3481 = vtanh.f32 %v2426_v32  ;;  %v3252_v50 = vpop.f32.mrb[67].mxu0 }
0x31b2   :  { %v3482_v52 = vpop.eup %3481 }
0x31b3   :  { %v2433_v54 = vsub.f32 %v3482_v52, %v2383_v34 }
0x31b5   :  { %v2434_v55 = vmul.f32 %v2433_v54, %v2380_v53 }
0x31b7   :  { %v2435_v7 = vmul.f32 %v2434_v55, %v2432_v59  ;;  %v2576_v55 = vld [vmem:[#allocation2 + $0xc] sm:$0x3] }
0x31b9   :  { %2437 = vrot.lane.b32.xlu0 %v2435_v7, %s3545_s13 }
0x322b   :  { %v2438_v33 = vpop.permute.xlu0 %2437 }
0x322c   :  { %v2440_v8 = vadd.f32 %v2438_v33, %v2310_v22 }
0x322e   :  { %2512 = vrot.lane.b32.xlu0 %v2440_v8, %s3544_s12  ;;  %v2441_v0 = vpack.c.bf16 %v2440_v8, %v2440_v8 }
0x3230   :  { %2445 = vrot.lane.b32.xlu1 %v2441_v0, %s3544_s12 }
0x32a0   :  { %v2513_v3 = vpop.permute.xlu0 %2512 }
0x32a2   :  { %v2446_v4 = vpop.permute.xlu1 %2445 }
0x32a3   :  { %3010 = vmatmul.mubr.msk.bf16.vlgmr.msra.gmra.mrb[64].mxu1 %vm166_vm2, %v2446_v4 }
0x32a4   :  { %3262 = vmatpush3.bf16.msra.mxu1 %v4090_v62  ;;  %3265 = vmatprep.mubr.msk.bf16.mxu1 %vm3542_vm3, %v3541_v29 }
0x32a5   :  { %3263 = vmatprep.subr.bf16.mxu1 %v3541_v29 }
0x32a8   :  { %3264 = vmatpush3.bf16.msra.mxu1 %v4099_v63  ;;  %v2443_v63 = vld [vmem:[#allocation3 + $0x38] sm:$0x30] }
0x32a9   :  { %3269 = vmatprep.subr.bf16.mxu1 %v3541_v29  ;;  %v2450_v16 = vrot.slane %v2443_v63, 4 }
0x3376   :  { %v2490_v22 = vpop.f32.mrb[64].mxu1 }
0x3377   :  { %v2491_v9 = vadd.f32 %v2490_v22, %v2449_v14  ;;  %v2492_v23 = vpop.f32.mrb[65].mxu1 }
0x3378   :  { %v2494_v57 = vpop.f32.mrb[66].mxu1  ;;  %v2493_v1 = vadd.f32 %v2492_v23, %v2450_v16 }
0x3379   :  { %v3011_v58 = vmul.f32 -1.442695, %v2491_v9  ;;  %v2495_v10 = vpop.f32.mrb[67].mxu1 }
0x337a   :  { %v3012_v19 = vmul.f32 -1.442695, %v2493_v1 }
0x337b   :  { %3483 = vpow2.f32 %v3011_v58 }
0x3385   :  { %v3484_v6 = vpop.eup %3483 }
0x3386   :  { %v2500_v62 = vadd.f32 1.0, %v3484_v6 }
0x3388   :  { %3485 = vrcp.f32 %v2500_v62  ;;  %v2651_v62 = vld [vmem:[#allocation3 + $0x10] sm:$0xc0] }
0x3389   :  { %3487 = vpow2.f32 %v3012_v19 }
0x3392   :  { %v3486_v25 = vpop.eup %3485 }
0x3393   :  { %v2503_v39 = vmul.f32 0.8, %v3486_v25  ;;  %v3488_v34 = vpop.eup %3487  ;;  %v2658_v25 = vrot.slane %v2651_v62, 6 }
0x3394   :  { %v2507_v36 = vadd.f32 1.0, %v3488_v34 }
0x3395   :  { %v2515_v56 = vmul.f32 %v2513_v3, %v2503_v39 }
0x3396   :  { %3489 = vrcp.f32 %v2507_v36 }
0x3397   :  { %v2516_v28 = vpack.c.bf16 %v2515_v56, %v2515_v56 }
0x3399   :  { %3258 = vmatmul.mubr.msk.bf16.vlgmr.msra.gmra.mrb[68].mxu0 %vm166_vm2, %v2516_v28 }
0x339a   :  { %2666 = vmatpush1.bf16.msra.mxu0 %v3950_v60  ;;  %2697 = vmatprep.mubr.bf16.mxu0 %v3540_v2 }
0x339b   :  { %2667 = vmatprep.subr.bf16.mxu0 %v3957_v18 }
0x339e   :  { %2668 = vmatpush1.bf16.msra.mxu0 %v3963_v20 }
0x339f   :  { %2795 = vmatprep.subr.bf16.mxu0 %v3969_v21  ;;  %v2562_v21 = vld [vmem:[#allocation5 + $0x1c] sm:$0x3] }
0x33a0   :  { %v3490_v18 = vpop.eup %3489 }
0x33a1   :  { %v2510_v20 = vmul.f32 0.4, %v3490_v18 }
0x346c   :  { %v2555_v35 = vpop.f32.mrb[68].mxu0 }
0x346d   :  { %v2556_v5 = vadd.f32 %v2555_v35, %v2517_v40  ;;  %v3259_v60 = vpop.f32.mrb[69].mxu0 }
0x346e   :  { %v2558_v38 = vpop.f32.mrb[70].mxu0 }
0x346f   :  { %3491 = vtanh.f32 %v2556_v5  ;;  %v3260_v41 = vpop.f32.mrb[71].mxu0 }
0x3470   :  { %v2726_v41 = vld [vmem:[#allocation4 + $0xe] sm:$0x3] }
0x3479   :  { %v3492_v42 = vpop.eup %3491 }
0x347a   :  { %v2563_v30 = vsub.f32 %v3492_v42, %v2513_v3 }
0x347c   :  { %v2564_v44 = vmul.f32 %v2563_v30, %v2510_v20 }
0x347e   :  { %v2565_v47 = vmul.f32 %v2564_v44, %v2562_v21 }
0x3480   :  { %2567 = vrot.lane.b32.xlu1 %v2565_v47, %s3545_s13 }
0x34f2   :  { %v2568_v32 = vpop.permute.xlu1 %2567 }
0x34f3   :  { %v4230_v48 = vadd.f32 %v2568_v32, %v2440_v8 }
0x34f5   :  { %v2577_v49 = vpack.c.bf16 %v4230_v48, %v4230_v48 }
0x34f7   :  { %2579 = vrot.lane.b32.xlu0 %v2577_v49, %s3544_s12 }
0x3569   :  { %v2580_v50 = vpop.permute.xlu0 %2579 }
0x356a   :  { %3266 = vmatmul.mubr.msk.bf16.vlgmr.msra.gmra.mrb[68].mxu1 %vm166_vm2, %v2580_v50 }
0x356b   :  { %3270 = vmatpush3.bf16.msra.mxu1 %v3982_v17  ;;  %3273 = vmatprep.mubr.msk.bf16.mxu1 %vm3542_vm3, %v3541_v29 }
0x356c   :  { %3271 = vmatprep.subr.bf16.mxu1 %v3541_v29 }
0x356f   :  { %3272 = vmatpush3.bf16.msra.mxu1 %v3991_v43 }
0x3570   :  { %3277 = vmatprep.subr.bf16.mxu1 %v3541_v29 }
0x363d   :  { %v2618_v51 = vpop.f32.mrb[68].mxu1 }
0x363e   :  { %v2619_v52 = vadd.f32 %v4142_v27, %v2618_v51  ;;  %v3267_v53 = vpop.f32.mrb[69].mxu1 }
0x363f   :  { %v2621_v54 = vpop.f32.mrb[70].mxu1 }
0x3640   :  { %2632 = vrot.lane.b32.xlu1 %v2619_v52, %s3543_s11  ;;  %v3268_v59 = vpop.f32.mrb[71].mxu1  ;;  %v2624_v7 = vadd.f32 %v2619_v52, %v2576_v55 }
0x3642   :  { %v3015_v17 = vmul.f32 -1.442695, %v2624_v7 }
0x3644   :  { %3493 = vpow2.f32 %v3015_v17 }
0x364e   :  { %v3494_v33 = vpop.eup %3493 }
0x364f   :  { %v2628_v8 = vadd.f32 1.0, %v3494_v33 }
0x3651   :  { %3495 = vrcp.f32 %v2628_v8 }
0x365b   :  { %v3496_v0 = vpop.eup %3495 }
0x365c   :  { %v2642_v22 = vsub.f32 1.0, %v3496_v0  ;;  %v2648_v23 = vmul.f32 %v3496_v0, %v4230_v48 }
0x36b2   :  { %v2633_v4 = vpop.permute.xlu1 %2632 }
0x36b3   :  { %v2635_v43 = vmul.f32 %v3496_v0, %v2633_v4 }
0x36b5   :  { %2637 = vrot.lane.b32.xlu0 %v2635_v43, %s3543_s11 }
0x3727   :  { %v2638_v13 = vpop.permute.xlu0 %2637 }
0x3728   :  { %v2640_v14 = vadd.f32 %v2638_v13, %v2576_v55 }
0x372a   :  { %3497 = vtanh.f32 %v2640_v14 }
0x3734   :  { %v3498_v27 = vpop.eup %3497 }
0x3735   :  { %2644 = vrot.lane.b32.xlu1 %v3498_v27, %s3544_s12 }
0x37a7   :  { %v2645_v9 = vpop.permute.xlu1 %2644 }
0x37a8   :  { %v2647_v57 = vmul.f32 %v2645_v9, %v2642_v22 }
0x37aa   :  { %v2649_v58 = vadd.f32 %v2648_v23, %v2647_v57  ;;  %v2782_v23 = vld [vmem:[#allocation3 + $0x38] sm:$0xc0] }
0x37ab   :  { %v2789_v57 = vrot.slane %v2782_v23, 6 }
0x37ac   :  { %2721 = vrot.lane.b32.xlu1 %v2649_v58, %s3544_s12  ;;  %v2650_v10 = vpack.c.bf16 %v2649_v58, %v2649_v58 }
0x37ae   :  { %2654 = vrot.lane.b32.xlu0 %v2650_v10, %s3544_s12 }
0x381e   :  { %v2722_v36 = vpop.permute.xlu1 %2721 }
0x3820   :  { %v2655_v6 = vpop.permute.xlu0 %2654 }
0x3821   :  { %3016 = vmatmul.mubr.msk.bf16.vlgmr.msra.gmra.mrb[72].mxu0 %vm166_vm2, %v2655_v6 }
0x3822   :  { %2796 = vmatpush1.bf16.msra.mxu0 %v4019_v11  ;;  %2827 = vmatprep.mubr.bf16.mxu0 %v3540_v2 }
0x3823   :  { %2797 = vmatprep.subr.bf16.mxu0 %v4026_v12  ;;  %v2652_v12 = vld [vmem:[#allocation3 + $0x18] sm:$0xc0] }
0x3826   :  { %2798 = vmatpush1.bf16.msra.mxu0 %v4032_v24  ;;  %v2659_v24 = vrot.slane %v2652_v12, 6 }
0x38f4   :  { %v2699_v39 = vpop.f32.mrb[72].mxu0 }
0x38f5   :  { %v2700_v3 = vadd.f32 %v2699_v39, %v2658_v25  ;;  %v2701_v56 = vpop.f32.mrb[73].mxu0  ;;  %v2856_v25 = vld [vmem:[#allocation4 + $0x1e] sm:$0x3] }
0x38f6   :  { %v2703_v28 = vpop.f32.mrb[74].mxu0  ;;  %v2702_v35 = vadd.f32 %v2701_v56, %v2659_v24 }
0x38f7   :  { %v3017_v63 = vmul.f32 -1.442695, %v2700_v3  ;;  %v2704_v16 = vpop.f32.mrb[75].mxu0 }
0x38f8   :  { %v3018_v5 = vmul.f32 -1.442695, %v2702_v35 }
0x38f9   :  { %3499 = vpow2.f32 %v3017_v63 }
0x3903   :  { %v3500_v1 = vpop.eup %3499 }
0x3904   :  { %v2709_v19 = vadd.f32 1.0, %v3500_v1 }
0x3906   :  { %3501 = vrcp.f32 %v2709_v19 }
0x3907   :  { %3503 = vpow2.f32 %v3018_v5 }
0x3910   :  { %v3502_v34 = vpop.eup %3501 }
0x3911   :  { %v2712_v11 = vmul.f32 0.8, %v3502_v34  ;;  %v3504_v60 = vpop.eup %3503 }
0x3912   :  { %v2716_v38 = vadd.f32 1.0, %v3504_v60 }
0x3913   :  { %v2724_v2 = vmul.f32 %v2722_v36, %v2712_v11  ;;  %v2901_v11 = vld [vmem:[#allocation5 + $0x1e] sm:$0x3] }
0x3914   :  { %3505 = vrcp.f32 %v2716_v38 }
0x3915   :  { %v2725_v40 = vpack.c.bf16 %v2724_v2, %v2724_v2 }
0x3917   :  { %3274 = vmatmul.mubr.msk.bf16.vlgmr.msra.gmra.mrb[72].mxu1 %vm166_vm2, %v2725_v40 }
0x3918   :  { %3278 = vmatpush3.bf16.msra.mxu1 %v4056_v45  ;;  %3281 = vmatprep.mubr.msk.bf16.mxu1 %vm3542_vm3, %v3541_v29 }
0x3919   :  { %3279 = vmatprep.subr.bf16.mxu1 %v3541_v29 }
0x391c   :  { %3280 = vmatpush3.bf16.msra.mxu1 %v4065_v46  ;;  %v2771_v46 = vld [vmem:[#allocation5 + $0xe] sm:$0x3] }
0x391e   :  { %v3506_v21 = vpop.eup %3505 }
0x391f   :  { %v2719_v29 = vmul.f32 0.4, %v3506_v21 }
0x39ea   :  { %v2764_v18 = vpop.f32.mrb[72].mxu1 }
0x39eb   :  { %v2765_v42 = vadd.f32 %v2764_v18, %v2726_v41  ;;  %v3275_v20 = vpop.f32.mrb[73].mxu1 }
0x39ec   :  { %v2767_v45 = vpop.f32.mrb[74].mxu1 }
0x39ed   :  { %3507 = vtanh.f32 %v2765_v42  ;;  %v3276_v30 = vpop.f32.mrb[75].mxu1 }
0x39f7   :  { %v3508_v44 = vpop.eup %3507 }
0x39f8   :  { %v2772_v47 = vsub.f32 %v3508_v44, %v2722_v36 }
0x39fa   :  { %v2773_v32 = vmul.f32 %v2772_v47, %v2719_v29 }
0x39fc   :  { %v2774_v49 = vmul.f32 %v2773_v32, %v2771_v46 }
0x39fe   :  { %2776 = vrot.lane.b32.xlu0 %v2774_v49, %s3545_s13 }
0x3a70   :  { %v2777_v50 = vpop.permute.xlu0 %2776 }
0x3a71   :  { %v2779_v51 = vadd.f32 %v2777_v50, %v2649_v58 }
0x3a73   :  { %2851 = vrot.lane.b32.xlu0 %v2779_v51, %s3544_s12  ;;  %v2780_v52 = vpack.c.bf16 %v2779_v51, %v2779_v51 }
0x3a75   :  { %2784 = vrot.lane.b32.xlu1 %v2780_v52, %s3544_s12 }
0x3a77   :  { %889 = vrot.lane.b32.xlu0 %v3850_v61, %s3544_s12 }
0x3a7b   :  { %1567 = vrot.lane.b32.xlu0 %v3973_v15, %s3544_s12  ;;  %v2781_v15 = vld [vmem:[#allocation3 + $0x30] sm:$0xc0] }
0x3a7f   :  { %2233 = vrot.lane.b32.xlu0 %v4181_v37, %s3544_s12  ;;  %v2788_v37 = vrot.slane %v2781_v15, 6 }
0x3ae5   :  { %v2852_v53 = vpop.permute.xlu0 %2851 }
0x3ae7   :  { %v2785_v54 = vpop.permute.xlu1 %2784 }
0x3ae8   :  { %3020 = vmatmul.mubr.msk.bf16.vlgmr.msra.gmra.mrb[76].mxu0 %vm166_vm2, %v2785_v54 }
0x3ae9   :  { %v890_v59 = vpop.permute.xlu0 %889 }
0x3aea   :  { %892 = vst.msk [vmem:[%s4313_s6 + $0x2] sm:$0x3] %vm539_vm5, %v890_v59 }
0x3aed   :  { %v1568_v55 = vpop.permute.xlu0 %1567 }
0x3aee   :  { %1570 = vst.msk [vmem:[%s4313_s6 + $0x6] sm:$0x3] %vm539_vm5, %v1568_v55 }
0x3af1   :  { %v2234_v61 = vpop.permute.xlu0 %2233 }
0x3af2   :  { %2236 = vst.msk [vmem:[%s4313_s6 + $0xa] sm:$0x3] %vm539_vm5, %v2234_v61 }
0x3bbb   :  { %v2829_v7 = vpop.f32.mrb[76].mxu0 }
0x3bbc   :  { %v2830_v17 = vadd.f32 %v2829_v7, %v2788_v37  ;;  %v2831_v33 = vpop.f32.mrb[77].mxu0 }
0x3bbd   :  { %v2833_v8 = vpop.f32.mrb[78].mxu0  ;;  %v2832_v58 = vadd.f32 %v2831_v33, %v2789_v57 }
0x3bbe   :  { %v3021_v0 = vmul.f32 -1.442695, %v2830_v17  ;;  %v2834_v4 = vpop.f32.mrb[79].mxu0 }
0x3bbf   :  { %v3022_v10 = vmul.f32 -1.442695, %v2832_v58 }
0x3bc0   :  { %3509 = vpow2.f32 %v3021_v0 }
0x3bca   :  { %v3510_v43 = vpop.eup %3509 }
0x3bcb   :  { %v2839_v13 = vadd.f32 1.0, %v3510_v43 }
0x3bcd   :  { %3511 = vrcp.f32 %v2839_v13 }
0x3bce   :  { %3513 = vpow2.f32 %v3022_v10 }
0x3bd7   :  { %v3512_v14 = vpop.eup %3511 }
0x3bd8   :  { %v2842_v27 = vmul.f32 0.8, %v3512_v14  ;;  %v3514_v6 = vpop.eup %3513 }
0x3bd9   :  { %v2846_v62 = vadd.f32 1.0, %v3514_v6 }
0x3bda   :  { %v2854_v22 = vmul.f32 %v2852_v53, %v2842_v27 }
0x3bdb   :  { %3515 = vrcp.f32 %v2846_v62 }
0x3bdc   :  { %v2855_v9 = vpack.c.bf16 %v2854_v22, %v2854_v22 }
0x3bde   :  { %3282 = vmatmul.mubr.msk.bf16.vlgmr.msra.gmra.mrb[76].mxu1 %vm166_vm2, %v2855_v9 }
0x3be5   :  { %v3516_v16 = vpop.eup %3515 }
0x3be6   :  { %v2849_v19 = vmul.f32 0.4, %v3516_v16 }
0x3cb1   :  { %v2894_v39 = vpop.f32.mrb[76].mxu1 }
0x3cb2   :  { %v2895_v3 = vadd.f32 %v2894_v39, %v2856_v25  ;;  %v3283_v56 = vpop.f32.mrb[77].mxu1 }
0x3cb3   :  { %v2897_v28 = vpop.f32.mrb[78].mxu1 }
0x3cb4   :  { %3517 = vtanh.f32 %v2895_v3  ;;  %v3284_v63 = vpop.f32.mrb[79].mxu1 }
0x3cbe   :  { %v3518_v1 = vpop.eup %3517 }
0x3cbf   :  { %v2902_v34 = vsub.f32 %v3518_v1, %v2852_v53 }
0x3cc1   :  { %v2903_v36 = vmul.f32 %v2902_v34, %v2849_v19 }
0x3cc3   :  { %v2904_v2 = vmul.f32 %v2903_v36, %v2901_v11 }
0x3cc5   :  { %2906 = vrot.lane.b32.xlu1 %v2904_v2, %s3545_s13 }
0x3cc9   :  { %1228 = vrot.lane.b32.xlu1 %v3899_v31, %s3544_s12 }
0x3ccd   :  { %1894 = vrot.lane.b32.xlu1 %v4127_v26, %s3544_s12 }
0x3cd1   :  { %2572 = vrot.lane.b32.xlu1 %v4230_v48, %s3544_s12 }
0x3d37   :  { %v2907_v40 = vpop.permute.xlu1 %2906 }
0x3d38   :  { %v2909_v12 = vadd.f32 %v2907_v40, %v2779_v51 }
0x3d3a   :  { %2911 = vrot.lane.b32.xlu0 %v2909_v12, %s3544_s12 }
0x3d3b   :  { %v1229_v24 = vpop.permute.xlu1 %1228 }
0x3d3c   :  { %1231 = vst.msk [vmem:[%s4313_s6 + $0x4] sm:$0x3] %vm539_vm5, %v1229_v24 }
0x3d3f   :  { %v1895_v35 = vpop.permute.xlu1 %1894 }
0x3d40   :  { %1897 = vst.msk [vmem:[%s4313_s6 + $0x8] sm:$0x3] %vm539_vm5, %v1895_v35 }
0x3d43   :  { %v2573_v31 = vpop.permute.xlu1 %2572 }
0x3d44   :  { %2575 = vst.msk [vmem:[%s4313_s6 + $0xc] sm:$0x3] %vm539_vm5, %v2573_v31 }
0x3dac   :  { %v2912_v26 = vpop.permute.xlu0 %2911 }
0x3dad   :  { %2914 = vst.msk [vmem:[%s4313_s6 + $0xe] sm:$0x3] %vm539_vm5, %v2912_v26 }

</bundles_post_ra>
